<compile_context>
chip_gen: v5e
topology: v5e:2x2
jax: 0.10.0
libtpu: 0.0.40
codegen_flags: <defaults>
</compile_context>

<pallas_src>
import jax
import jax.numpy as jnp
from jax.experimental import pallas as pl
from jax.experimental.pallas import tpu as pltpu

K = 7          # conv kernel size
PAD = 3        # padding


def _make_kernel(C_total, H, W):
    inv_c = 1.0 / float(C_total)   # Python constant -> scalar-broadcast mul

    def kernel(w_ref, b_ref, x_ref, o_ref, sum_acc, max_acc, pad_a, pad_m):
        # w_ref:   (2*K*K,) SMEM flattened conv weight  [in_ch, kh, kw]
        # b_ref:   (1,)     SMEM conv bias
        # x_ref:   (Bt, Ct, H, W) VMEM input block
        # o_ref:   (Bt, H, W)     VMEM output block (resident across c axis)
        # sum_acc/max_acc: (Bt, H, W) f32 running channel reduction
        # pad_a/pad_m: (Bt, H+2*PAD, W+2*PAD) zero-padded planes for the conv
        c = pl.program_id(1)
        nc = pl.num_programs(1)

        x = x_ref[...].astype(jnp.float32)          # (Bt, Ct, H, W)
        csum = jnp.sum(x, axis=1)                   # (Bt, H, W)
        cmax = jnp.max(x, axis=1)                   # (Bt, H, W)

        @pl.when(c == 0)
        def _():
            sum_acc[...] = csum
            max_acc[...] = cmax

        @pl.when(c > 0)
        def _():
            sum_acc[...] = sum_acc[...] + csum
            max_acc[...] = jnp.maximum(max_acc[...], cmax)

        @pl.when(c == nc - 1)
        def _():
            avg = sum_acc[...] * inv_c              # (Bt, H, W)
            mx = max_acc[...]

            # Zero-padded planes for the "same" convolution. The interior is
            # fully overwritten every time this block runs, the halo stays 0.
            pad_a[...] = jnp.zeros_like(pad_a)
            pad_m[...] = jnp.zeros_like(pad_m)
            pad_a[:, PAD:PAD + H, PAD:PAD + W] = avg
            pad_m[:, PAD:PAD + H, PAD:PAD + W] = mx

            bt = avg.shape[0]
            acc = jnp.full((bt, H, W), b_ref[0], dtype=jnp.float32)

            # Unrolled 7x7 conv over the 2 input channels (avg, max).
            # One VMEM slab load per (kh, plane); kw shifts are value slices.
            for kh in range(K):
                slab_a = pad_a[:, kh:kh + H, :]     # (Bt, H, W + 2*PAD)
                slab_m = pad_m[:, kh:kh + H, :]
                for kw in range(K):
                    w_a = w_ref[0 * K * K + kh * K + kw]   # avg-channel tap
                    w_m = w_ref[1 * K * K + kh * K + kw]   # max-channel tap
                    acc = acc + slab_a[:, :, kw:kw + W] * w_a
                    acc = acc + slab_m[:, :, kw:kw + W] * w_m

            o_ref[...] = jax.nn.sigmoid(acc).astype(o_ref.dtype)

    return kernel


def _choose_tiles(B, C, H, W, block_budget_bytes=4 << 20):
    """Pick (batch_tile, channel_tile) so one x block stays within budget."""
    plane_bytes = H * W * 4
    Bt = max(1, min(B, 8))
    while Bt > 1 and Bt * plane_bytes > block_budget_bytes:
        Bt -= 1
    max_ct = max(1, block_budget_bytes // (Bt * plane_bytes))
    Ct = 1
    for d in range(1, C + 1):
        if C % d == 0 and d <= max_ct:
            Ct = d
    return Bt, Ct


def spatial_attention(x, weight, bias):
    """x: (B, C, H, W) f32; weight: (1, 2, K, K) f32; bias: (1,) f32.

    Returns (B, 1, H, W) f32 = sigmoid(conv2d(cat([mean_c(x), max_c(x)], 1))).
    """
    B, C, H, W = x.shape
    Bt, Ct = _choose_tiles(B, C, H, W)

    # Pad the batch so it divides evenly into Bt-sized tiles (sliced off below).
    B_pad = ((B + Bt - 1) // Bt) * Bt
    if B_pad != B:
        x = jnp.pad(x, ((0, B_pad - B), (0, 0), (0, 0), (0, 0)))

    w_flat = weight.reshape(-1).astype(jnp.float32)   # (2*K*K,)
    b_flat = bias.reshape(-1).astype(jnp.float32)     # (1,)

    kernel = _make_kernel(C, H, W)

    out = pl.pallas_call(
        kernel,
        out_shape=jax.ShapeDtypeStruct((B_pad, H, W), jnp.float32),
        grid_spec=pltpu.PrefetchScalarGridSpec(
            num_scalar_prefetch=0,
            grid=(B_pad // Bt, C // Ct),
            in_specs=[
                pl.BlockSpec(memory_space=pltpu.MemorySpace.SMEM),   # weights
                pl.BlockSpec(memory_space=pltpu.MemorySpace.SMEM),   # bias
                pl.BlockSpec((Bt, Ct, H, W), lambda b, c: (b, c, 0, 0)),  # x
            ],
            out_specs=pl.BlockSpec((Bt, H, W), lambda b, c: (b, 0, 0)),
            scratch_shapes=[
                pltpu.VMEM((Bt, H, W), jnp.float32),                      # sum
                pltpu.VMEM((Bt, H, W), jnp.float32),                      # max
                pltpu.VMEM((Bt, H + 2 * PAD, W + 2 * PAD), jnp.float32),  # pad avg
                pltpu.VMEM((Bt, H + 2 * PAD, W + 2 * PAD), jnp.float32),  # pad max
            ],
        ),
        compiler_params=pltpu.CompilerParams(
            dimension_semantics=("parallel", "arbitrary"),
            vmem_limit_bytes=32 * 1024 * 1024,
        ),
    )(w_flat, b_flat, x)

    return out[:B].reshape(B, 1, H, W)


def _reference(x, weight, bias):
    # Pure-JAX reference (NCHW conv) for a correctness check of the kernel.
    avg = jnp.mean(x, axis=1, keepdims=True)
    mx = jnp.max(x, axis=1, keepdims=True)
    cat = jnp.concatenate([avg, mx], axis=1)            # (B, 2, H, W)
    out = jax.lax.conv_general_dilated(
        cat, weight,
        window_strides=(1, 1),
        padding=((PAD, PAD), (PAD, PAD)),
        dimension_numbers=("NCHW", "OIHW", "NCHW"),
    ) + bias.reshape(1, 1, 1, 1)
    return jax.nn.sigmoid(out)


if __name__ == "__main__":
    key = jax.random.PRNGKey(0)
    kx, kw, kb = jax.random.split(key, 3)

    B, C, H, W = 2, 4, 16, 16
    x = jax.random.normal(kx, (B, C, H, W), dtype=jnp.float32)

    # Deterministic synthetic Conv2d(2 -> 1, kernel_size=7) parameters.
    weight = 0.05 * jax.random.normal(kw, (1, 2, K, K), dtype=jnp.float32)
    bias = 0.05 * jax.random.normal(kb, (1,), dtype=jnp.float32)

    out = spatial_attention(x, weight, bias)
    out = jax.block_until_ready(out)

    ref = _reference(x, weight, bias)
    assert out.shape == (B, 1, H, W)
    assert jnp.allclose(out, ref, atol=1e-5, rtol=1e-5)

    print("KERNEL_OK")
</pallas_src>

<mosaic_0001>
module attributes {stable_mosaic.version = 11 : i64} {
  func.func @kernel(%arg0: i32, %arg1: i32, %arg2: memref<98xf32, #tpu.memory_space<smem>>, %arg3: memref<1xf32, #tpu.memory_space<smem>>, %arg4: memref<2x4x16x16xf32, #tpu.memory_space<vmem>>, %arg5: memref<2x16x16xf32, #tpu.memory_space<vmem>>, %arg6: memref<2x16x16xf32, #tpu.memory_space<vmem>>, %arg7: memref<2x16x16xf32, #tpu.memory_space<vmem>>, %arg8: memref<2x22x22xf32, #tpu.memory_space<vmem>>, %arg9: memref<2x22x22xf32, #tpu.memory_space<vmem>>) attributes {dimension_semantics = [#tpu.dimension_semantics<parallel>, #tpu.dimension_semantics<arbitrary>], iteration_bounds = array<i64: 1, 1>, scalar_prefetch = 0 : i64, scratch_operands = 4 : i64, tpu.core_type = #tpu.core_type<tc>, window_params = [{transform_indices = @transform_0, window_bounds = array<i64: 98>}, {transform_indices = @transform_1, window_bounds = array<i64: 1>}, {transform_indices = @transform_2, window_bounds = array<i64: 2, 4, 16, 16>}, {transform_indices = @transform_3, window_bounds = array<i64: 2, 16, 16>}]} {
    %c0 = arith.constant 0 : index
    %c0_0 = arith.constant 0 : index
    %c0_1 = arith.constant 0 : index
    %c0_2 = arith.constant 0 : index
    %0 = vector.load %arg4[%c0, %c0_0, %c0_1, %c0_2] : memref<2x4x16x16xf32, #tpu.memory_space<vmem>>, vector<2x4x16x16xf32>
    %cst = arith.constant dense<0.000000e+00> : vector<2x16x16xf32>
    %1 = vector.multi_reduction <add>, %0, %cst [1] : vector<2x4x16x16xf32> to vector<2x16x16xf32>
    %cst_3 = arith.constant dense<0xFF800000> : vector<2x16x16xf32>
    %2 = vector.multi_reduction <maximumf>, %0, %cst_3 [1] : vector<2x4x16x16xf32> to vector<2x16x16xf32>
    %c0_i32 = arith.constant 0 : i32
    %3 = arith.cmpi eq, %arg1, %c0_i32 : i32
    %4 = arith.extui %3 : i1 to i32
    %c0_i32_4 = arith.constant 0 : i32
    %5 = arith.cmpi ne, %4, %c0_i32_4 : i32
    scf.if %5 {
      %c0_9 = arith.constant 0 : index
      %c0_10 = arith.constant 0 : index
      %c0_11 = arith.constant 0 : index
      %12 = vector.load %arg6[%c0_9, %c0_10, %c0_11] : memref<2x16x16xf32, #tpu.memory_space<vmem>>, vector<2x16x16xf32>
      tpu.vector_store %arg6[%c0_9, %c0_10, %c0_11], %1 {strides = array<i32>} : memref<2x16x16xf32, #tpu.memory_space<vmem>>, vector<2x16x16xf32>,
      %c0_12 = arith.constant 0 : index
      %c0_13 = arith.constant 0 : index
      %c0_14 = arith.constant 0 : index
      %13 = vector.load %arg7[%c0_12, %c0_13, %c0_14] : memref<2x16x16xf32, #tpu.memory_space<vmem>>, vector<2x16x16xf32>
      tpu.vector_store %arg7[%c0_12, %c0_13, %c0_14], %2 {strides = array<i32>} : memref<2x16x16xf32, #tpu.memory_space<vmem>>, vector<2x16x16xf32>,
    } else {
    }
    %c0_i32_5 = arith.constant 0 : i32
    %6 = arith.cmpi sgt, %arg1, %c0_i32_5 : i32
    %7 = arith.extui %6 : i1 to i32
    %c0_i32_6 = arith.constant 0 : i32
    %8 = arith.cmpi ne, %7, %c0_i32_6 : i32
    scf.if %8 {
      %c0_9 = arith.constant 0 : index
      %c0_10 = arith.constant 0 : index
      %c0_11 = arith.constant 0 : index
      %12 = vector.load %arg6[%c0_9, %c0_10, %c0_11] : memref<2x16x16xf32, #tpu.memory_space<vmem>>, vector<2x16x16xf32>
      %13 = arith.addf %12, %1 : vector<2x16x16xf32>
      %c0_12 = arith.constant 0 : index
      %c0_13 = arith.constant 0 : index
      %c0_14 = arith.constant 0 : index
      %14 = vector.load %arg6[%c0_12, %c0_13, %c0_14] : memref<2x16x16xf32, #tpu.memory_space<vmem>>, vector<2x16x16xf32>
      tpu.vector_store %arg6[%c0_12, %c0_13, %c0_14], %13 {strides = array<i32>} : memref<2x16x16xf32, #tpu.memory_space<vmem>>, vector<2x16x16xf32>,
      %c0_15 = arith.constant 0 : index
      %c0_16 = arith.constant 0 : index
      %c0_17 = arith.constant 0 : index
      %15 = vector.load %arg7[%c0_15, %c0_16, %c0_17] : memref<2x16x16xf32, #tpu.memory_space<vmem>>, vector<2x16x16xf32>
      %16 = arith.maximumf %15, %2 : vector<2x16x16xf32>
      %c0_18 = arith.constant 0 : index
      %c0_19 = arith.constant 0 : index
      %c0_20 = arith.constant 0 : index
      %17 = vector.load %arg7[%c0_18, %c0_19, %c0_20] : memref<2x16x16xf32, #tpu.memory_space<vmem>>, vector<2x16x16xf32>
      tpu.vector_store %arg7[%c0_18, %c0_19, %c0_20], %16 {strides = array<i32>} : memref<2x16x16xf32, #tpu.memory_space<vmem>>, vector<2x16x16xf32>,
    } else {
    }
    %c0_i32_7 = arith.constant 0 : i32
    %9 = arith.cmpi eq, %arg1, %c0_i32_7 : i32
    %10 = arith.extui %9 : i1 to i32
    %c0_i32_8 = arith.constant 0 : i32
    %11 = arith.cmpi ne, %10, %c0_i32_8 : i32
    scf.if %11 {
      %c0_9 = arith.constant 0 : index
      %c0_10 = arith.constant 0 : index
      %c0_11 = arith.constant 0 : index
      %12 = vector.load %arg6[%c0_9, %c0_10, %c0_11] : memref<2x16x16xf32, #tpu.memory_space<vmem>>, vector<2x16x16xf32>
      %cst_12 = arith.constant 2.500000e-01 : f32
      %13 = vector.broadcast %cst_12 : f32 to vector<2x16x16xf32>
      %14 = arith.mulf %12, %13 : vector<2x16x16xf32>
      %c0_13 = arith.constant 0 : index
      %c0_14 = arith.constant 0 : index
      %c0_15 = arith.constant 0 : index
      %15 = vector.load %arg7[%c0_13, %c0_14, %c0_15] : memref<2x16x16xf32, #tpu.memory_space<vmem>>, vector<2x16x16xf32>
      %cst_16 = arith.constant 0.000000e+00 : f32
      %16 = vector.broadcast %cst_16 : f32 to vector<2x22x22xf32>
      %c0_17 = arith.constant 0 : index
      %c0_18 = arith.constant 0 : index
      %c0_19 = arith.constant 0 : index
      %17 = vector.load %arg8[%c0_17, %c0_18, %c0_19] : memref<2x22x22xf32, #tpu.memory_space<vmem>>, vector<2x22x22xf32>
      tpu.vector_store %arg8[%c0_17, %c0_18, %c0_19], %16 {strides = array<i32>} : memref<2x22x22xf32, #tpu.memory_space<vmem>>, vector<2x22x22xf32>,
      %cst_20 = arith.constant 0.000000e+00 : f32
      %18 = vector.broadcast %cst_20 : f32 to vector<2x22x22xf32>
      %c0_21 = arith.constant 0 : index
      %c0_22 = arith.constant 0 : index
      %c0_23 = arith.constant 0 : index
      %19 = vector.load %arg9[%c0_21, %c0_22, %c0_23] : memref<2x22x22xf32, #tpu.memory_space<vmem>>, vector<2x22x22xf32>
      tpu.vector_store %arg9[%c0_21, %c0_22, %c0_23], %18 {strides = array<i32>} : memref<2x22x22xf32, #tpu.memory_space<vmem>>, vector<2x22x22xf32>,
      %c0_24 = arith.constant 0 : index
      %c3 = arith.constant 3 : index
      %c3_25 = arith.constant 3 : index
      %20 = vector.load %arg8[%c0_24, %c3, %c3_25] : memref<2x22x22xf32, #tpu.memory_space<vmem>>, vector<2x16x16xf32>
      tpu.vector_store %arg8[%c0_24, %c3, %c3_25], %14 {strides = array<i32>} : memref<2x22x22xf32, #tpu.memory_space<vmem>>, vector<2x16x16xf32>,
      %c0_26 = arith.constant 0 : index
      %c3_27 = arith.constant 3 : index
      %c3_28 = arith.constant 3 : index
      %21 = vector.load %arg9[%c0_26, %c3_27, %c3_28] : memref<2x22x22xf32, #tpu.memory_space<vmem>>, vector<2x16x16xf32>
      tpu.vector_store %arg9[%c0_26, %c3_27, %c3_28], %15 {strides = array<i32>} : memref<2x22x22xf32, #tpu.memory_space<vmem>>, vector<2x16x16xf32>,
      %c0_29 = arith.constant 0 : index
      %22 = memref.load %arg3[%c0_29] : memref<1xf32, #tpu.memory_space<smem>>
      %23 = vector.broadcast %22 : f32 to vector<2x16x16xf32>
      %c0_30 = arith.constant 0 : index
      %c0_31 = arith.constant 0 : index
      %c0_32 = arith.constant 0 : index
      %24 = vector.load %arg8[%c0_30, %c0_31, %c0_32] : memref<2x22x22xf32, #tpu.memory_space<vmem>>, vector<2x16x22xf32>
      %c0_33 = arith.constant 0 : index
      %c0_34 = arith.constant 0 : index
      %c0_35 = arith.constant 0 : index
      %25 = vector.load %arg9[%c0_33, %c0_34, %c0_35] : memref<2x22x22xf32, #tpu.memory_space<vmem>>, vector<2x16x22xf32>
      %c0_36 = arith.constant 0 : index
      %26 = memref.load %arg2[%c0_36] : memref<98xf32, #tpu.memory_space<smem>>
      %c49 = arith.constant 49 : index
      %27 = memref.load %arg2[%c49] : memref<98xf32, #tpu.memory_space<smem>>
      %28 = vector.extract_strided_slice %24 {offsets = [0, 0, 0], sizes = [2, 16, 16], strides = [1, 1, 1]} : vector<2x16x22xf32> to vector<2x16x16xf32>
      %29 = vector.broadcast %26 : f32 to vector<2x16x16xf32>
      %30 = arith.mulf %28, %29 : vector<2x16x16xf32>
      %31 = arith.addf %23, %30 : vector<2x16x16xf32>
      %32 = vector.extract_strided_slice %25 {offsets = [0, 0, 0], sizes = [2, 16, 16], strides = [1, 1, 1]} : vector<2x16x22xf32> to vector<2x16x16xf32>
      %33 = vector.broadcast %27 : f32 to vector<2x16x16xf32>
      %34 = arith.mulf %32, %33 : vector<2x16x16xf32>
      %35 = arith.addf %31, %34 : vector<2x16x16xf32>
      %c1 = arith.constant 1 : index
      %36 = memref.load %arg2[%c1] : memref<98xf32, #tpu.memory_space<smem>>
      %c50 = arith.constant 50 : index
      %37 = memref.load %arg2[%c50] : memref<98xf32, #tpu.memory_space<smem>>
      %38 = vector.extract_strided_slice %24 {offsets = [0, 0, 1], sizes = [2, 16, 16], strides = [1, 1, 1]} : vector<2x16x22xf32> to vector<2x16x16xf32>
      %39 = vector.broadcast %36 : f32 to vector<2x16x16xf32>
      %40 = arith.mulf %38, %39 : vector<2x16x16xf32>
      %41 = arith.addf %35, %40 : vector<2x16x16xf32>
      %42 = vector.extract_strided_slice %25 {offsets = [0, 0, 1], sizes = [2, 16, 16], strides = [1, 1, 1]} : vector<2x16x22xf32> to vector<2x16x16xf32>
      %43 = vector.broadcast %37 : f32 to vector<2x16x16xf32>
      %44 = arith.mulf %42, %43 : vector<2x16x16xf32>
      %45 = arith.addf %41, %44 : vector<2x16x16xf32>
      %c2 = arith.constant 2 : index
      %46 = memref.load %arg2[%c2] : memref<98xf32, #tpu.memory_space<smem>>
      %c51 = arith.constant 51 : index
      %47 = memref.load %arg2[%c51] : memref<98xf32, #tpu.memory_space<smem>>
      %48 = vector.extract_strided_slice %24 {offsets = [0, 0, 2], sizes = [2, 16, 16], strides = [1, 1, 1]} : vector<2x16x22xf32> to vector<2x16x16xf32>
      %49 = vector.broadcast %46 : f32 to vector<2x16x16xf32>
      %50 = arith.mulf %48, %49 : vector<2x16x16xf32>
      %51 = arith.addf %45, %50 : vector<2x16x16xf32>
      %52 = vector.extract_strided_slice %25 {offsets = [0, 0, 2], sizes = [2, 16, 16], strides = [1, 1, 1]} : vector<2x16x22xf32> to vector<2x16x16xf32>
      %53 = vector.broadcast %47 : f32 to vector<2x16x16xf32>
      %54 = arith.mulf %52, %53 : vector<2x16x16xf32>
      %55 = arith.addf %51, %54 : vector<2x16x16xf32>
      %c3_37 = arith.constant 3 : index
      %56 = memref.load %arg2[%c3_37] : memref<98xf32, #tpu.memory_space<smem>>
      %c52 = arith.constant 52 : index
      %57 = memref.load %arg2[%c52] : memref<98xf32, #tpu.memory_space<smem>>
      %58 = vector.extract_strided_slice %24 {offsets = [0, 0, 3], sizes = [2, 16, 16], strides = [1, 1, 1]} : vector<2x16x22xf32> to vector<2x16x16xf32>
      %59 = vector.broadcast %56 : f32 to vector<2x16x16xf32>
      %60 = arith.mulf %58, %59 : vector<2x16x16xf32>
      %61 = arith.addf %55, %60 : vector<2x16x16xf32>
      %62 = vector.extract_strided_slice %25 {offsets = [0, 0, 3], sizes = [2, 16, 16], strides = [1, 1, 1]} : vector<2x16x22xf32> to vector<2x16x16xf32>
      %63 = vector.broadcast %57 : f32 to vector<2x16x16xf32>
      %64 = arith.mulf %62, %63 : vector<2x16x16xf32>
      %65 = arith.addf %61, %64 : vector<2x16x16xf32>
      %c4 = arith.constant 4 : index
      %66 = memref.load %arg2[%c4] : memref<98xf32, #tpu.memory_space<smem>>
      %c53 = arith.constant 53 : index
      %67 = memref.load %arg2[%c53] : memref<98xf32, #tpu.memory_space<smem>>
      %68 = vector.extract_strided_slice %24 {offsets = [0, 0, 4], sizes = [2, 16, 16], strides = [1, 1, 1]} : vector<2x16x22xf32> to vector<2x16x16xf32>
      %69 = vector.broadcast %66 : f32 to vector<2x16x16xf32>
      %70 = arith.mulf %68, %69 : vector<2x16x16xf32>
      %71 = arith.addf %65, %70 : vector<2x16x16xf32>
      %72 = vector.extract_strided_slice %25 {offsets = [0, 0, 4], sizes = [2, 16, 16], strides = [1, 1, 1]} : vector<2x16x22xf32> to vector<2x16x16xf32>
      %73 = vector.broadcast %67 : f32 to vector<2x16x16xf32>
      %74 = arith.mulf %72, %73 : vector<2x16x16xf32>
      %75 = arith.addf %71, %74 : vector<2x16x16xf32>
      %c5 = arith.constant 5 : index
      %76 = memref.load %arg2[%c5] : memref<98xf32, #tpu.memory_space<smem>>
      %c54 = arith.constant 54 : index
      %77 = memref.load %arg2[%c54] : memref<98xf32, #tpu.memory_space<smem>>
      %78 = vector.extract_strided_slice %24 {offsets = [0, 0, 5], sizes = [2, 16, 16], strides = [1, 1, 1]} : vector<2x16x22xf32> to vector<2x16x16xf32>
      %79 = vector.broadcast %76 : f32 to vector<2x16x16xf32>
      %80 = arith.mulf %78, %79 : vector<2x16x16xf32>
      %81 = arith.addf %75, %80 : vector<2x16x16xf32>
      %82 = vector.extract_strided_slice %25 {offsets = [0, 0, 5], sizes = [2, 16, 16], strides = [1, 1, 1]} : vector<2x16x22xf32> to vector<2x16x16xf32>
      %83 = vector.broadcast %77 : f32 to vector<2x16x16xf32>
      %84 = arith.mulf %82, %83 : vector<2x16x16xf32>
      %85 = arith.addf %81, %84 : vector<2x16x16xf32>
      %c6 = arith.constant 6 : index
      %86 = memref.load %arg2[%c6] : memref<98xf32, #tpu.memory_space<smem>>
      %c55 = arith.constant 55 : index
      %87 = memref.load %arg2[%c55] : memref<98xf32, #tpu.memory_space<smem>>
      %88 = vector.extract_strided_slice %24 {offsets = [0, 0, 6], sizes = [2, 16, 16], strides = [1, 1, 1]} : vector<2x16x22xf32> to vector<2x16x16xf32>
      %89 = vector.broadcast %86 : f32 to vector<2x16x16xf32>
      %90 = arith.mulf %88, %89 : vector<2x16x16xf32>
      %91 = arith.addf %85, %90 : vector<2x16x16xf32>
      %92 = vector.extract_strided_slice %25 {offsets = [0, 0, 6], sizes = [2, 16, 16], strides = [1, 1, 1]} : vector<2x16x22xf32> to vector<2x16x16xf32>
      %93 = vector.broadcast %87 : f32 to vector<2x16x16xf32>
      %94 = arith.mulf %92, %93 : vector<2x16x16xf32>
      %95 = arith.addf %91, %94 : vector<2x16x16xf32>
      %c0_38 = arith.constant 0 : index
      %c1_39 = arith.constant 1 : index
      %c0_40 = arith.constant 0 : index
      %96 = vector.load %arg8[%c0_38, %c1_39, %c0_40] : memref<2x22x22xf32, #tpu.memory_space<vmem>>, vector<2x16x22xf32>
      %c0_41 = arith.constant 0 : index
      %c1_42 = arith.constant 1 : index
      %c0_43 = arith.constant 0 : index
      %97 = vector.load %arg9[%c0_41, %c1_42, %c0_43] : memref<2x22x22xf32, #tpu.memory_space<vmem>>, vector<2x16x22xf32>
      %c7 = arith.constant 7 : index
      %98 = memref.load %arg2[%c7] : memref<98xf32, #tpu.memory_space<smem>>
      %c56 = arith.constant 56 : index
      %99 = memref.load %arg2[%c56] : memref<98xf32, #tpu.memory_space<smem>>
      %100 = vector.extract_strided_slice %96 {offsets = [0, 0, 0], sizes = [2, 16, 16], strides = [1, 1, 1]} : vector<2x16x22xf32> to vector<2x16x16xf32>
      %101 = vector.broadcast %98 : f32 to vector<2x16x16xf32>
      %102 = arith.mulf %100, %101 : vector<2x16x16xf32>
      %103 = arith.addf %95, %102 : vector<2x16x16xf32>
      %104 = vector.extract_strided_slice %97 {offsets = [0, 0, 0], sizes = [2, 16, 16], strides = [1, 1, 1]} : vector<2x16x22xf32> to vector<2x16x16xf32>
      %105 = vector.broadcast %99 : f32 to vector<2x16x16xf32>
      %106 = arith.mulf %104, %105 : vector<2x16x16xf32>
      %107 = arith.addf %103, %106 : vector<2x16x16xf32>
      %c8 = arith.constant 8 : index
      %108 = memref.load %arg2[%c8] : memref<98xf32, #tpu.memory_space<smem>>
      %c57 = arith.constant 57 : index
      %109 = memref.load %arg2[%c57] : memref<98xf32, #tpu.memory_space<smem>>
      %110 = vector.extract_strided_slice %96 {offsets = [0, 0, 1], sizes = [2, 16, 16], strides = [1, 1, 1]} : vector<2x16x22xf32> to vector<2x16x16xf32>
      %111 = vector.broadcast %108 : f32 to vector<2x16x16xf32>
      %112 = arith.mulf %110, %111 : vector<2x16x16xf32>
      %113 = arith.addf %107, %112 : vector<2x16x16xf32>
      %114 = vector.extract_strided_slice %97 {offsets = [0, 0, 1], sizes = [2, 16, 16], strides = [1, 1, 1]} : vector<2x16x22xf32> to vector<2x16x16xf32>
      %115 = vector.broadcast %109 : f32 to vector<2x16x16xf32>
      %116 = arith.mulf %114, %115 : vector<2x16x16xf32>
      %117 = arith.addf %113, %116 : vector<2x16x16xf32>
      %c9 = arith.constant 9 : index
      %118 = memref.load %arg2[%c9] : memref<98xf32, #tpu.memory_space<smem>>
      %c58 = arith.constant 58 : index
      %119 = memref.load %arg2[%c58] : memref<98xf32, #tpu.memory_space<smem>>
      %120 = vector.extract_strided_slice %96 {offsets = [0, 0, 2], sizes = [2, 16, 16], strides = [1, 1, 1]} : vector<2x16x22xf32> to vector<2x16x16xf32>
      %121 = vector.broadcast %118 : f32 to vector<2x16x16xf32>
      %122 = arith.mulf %120, %121 : vector<2x16x16xf32>
      %123 = arith.addf %117, %122 : vector<2x16x16xf32>
      %124 = vector.extract_strided_slice %97 {offsets = [0, 0, 2], sizes = [2, 16, 16], strides = [1, 1, 1]} : vector<2x16x22xf32> to vector<2x16x16xf32>
      %125 = vector.broadcast %119 : f32 to vector<2x16x16xf32>
      %126 = arith.mulf %124, %125 : vector<2x16x16xf32>
      %127 = arith.addf %123, %126 : vector<2x16x16xf32>
      %c10 = arith.constant 10 : index
      %128 = memref.load %arg2[%c10] : memref<98xf32, #tpu.memory_space<smem>>
      %c59 = arith.constant 59 : index
      %129 = memref.load %arg2[%c59] : memref<98xf32, #tpu.memory_space<smem>>
      %130 = vector.extract_strided_slice %96 {offsets = [0, 0, 3], sizes = [2, 16, 16], strides = [1, 1, 1]} : vector<2x16x22xf32> to vector<2x16x16xf32>
      %131 = vector.broadcast %128 : f32 to vector<2x16x16xf32>
      %132 = arith.mulf %130, %131 : vector<2x16x16xf32>
      %133 = arith.addf %127, %132 : vector<2x16x16xf32>
      %134 = vector.extract_strided_slice %97 {offsets = [0, 0, 3], sizes = [2, 16, 16], strides = [1, 1, 1]} : vector<2x16x22xf32> to vector<2x16x16xf32>
      %135 = vector.broadcast %129 : f32 to vector<2x16x16xf32>
      %136 = arith.mulf %134, %135 : vector<2x16x16xf32>
      %137 = arith.addf %133, %136 : vector<2x16x16xf32>
      %c11 = arith.constant 11 : index
      %138 = memref.load %arg2[%c11] : memref<98xf32, #tpu.memory_space<smem>>
      %c60 = arith.constant 60 : index
      %139 = memref.load %arg2[%c60] : memref<98xf32, #tpu.memory_space<smem>>
      %140 = vector.extract_strided_slice %96 {offsets = [0, 0, 4], sizes = [2, 16, 16], strides = [1, 1, 1]} : vector<2x16x22xf32> to vector<2x16x16xf32>
      %141 = vector.broadcast %138 : f32 to vector<2x16x16xf32>
      %142 = arith.mulf %140, %141 : vector<2x16x16xf32>
      %143 = arith.addf %137, %142 : vector<2x16x16xf32>
      %144 = vector.extract_strided_slice %97 {offsets = [0, 0, 4], sizes = [2, 16, 16], strides = [1, 1, 1]} : vector<2x16x22xf32> to vector<2x16x16xf32>
      %145 = vector.broadcast %139 : f32 to vector<2x16x16xf32>
      %146 = arith.mulf %144, %145 : vector<2x16x16xf32>
      %147 = arith.addf %143, %146 : vector<2x16x16xf32>
      %c12 = arith.constant 12 : index
      %148 = memref.load %arg2[%c12] : memref<98xf32, #tpu.memory_space<smem>>
      %c61 = arith.constant 61 : index
      %149 = memref.load %arg2[%c61] : memref<98xf32, #tpu.memory_space<smem>>
      %150 = vector.extract_strided_slice %96 {offsets = [0, 0, 5], sizes = [2, 16, 16], strides = [1, 1, 1]} : vector<2x16x22xf32> to vector<2x16x16xf32>
      %151 = vector.broadcast %148 : f32 to vector<2x16x16xf32>
      %152 = arith.mulf %150, %151 : vector<2x16x16xf32>
      %153 = arith.addf %147, %152 : vector<2x16x16xf32>
      %154 = vector.extract_strided_slice %97 {offsets = [0, 0, 5], sizes = [2, 16, 16], strides = [1, 1, 1]} : vector<2x16x22xf32> to vector<2x16x16xf32>
      %155 = vector.broadcast %149 : f32 to vector<2x16x16xf32>
      %156 = arith.mulf %154, %155 : vector<2x16x16xf32>
      %157 = arith.addf %153, %156 : vector<2x16x16xf32>
      %c13 = arith.constant 13 : index
      %158 = memref.load %arg2[%c13] : memref<98xf32, #tpu.memory_space<smem>>
      %c62 = arith.constant 62 : index
      %159 = memref.load %arg2[%c62] : memref<98xf32, #tpu.memory_space<smem>>
      %160 = vector.extract_strided_slice %96 {offsets = [0, 0, 6], sizes = [2, 16, 16], strides = [1, 1, 1]} : vector<2x16x22xf32> to vector<2x16x16xf32>
      %161 = vector.broadcast %158 : f32 to vector<2x16x16xf32>
      %162 = arith.mulf %160, %161 : vector<2x16x16xf32>
      %163 = arith.addf %157, %162 : vector<2x16x16xf32>
      %164 = vector.extract_strided_slice %97 {offsets = [0, 0, 6], sizes = [2, 16, 16], strides = [1, 1, 1]} : vector<2x16x22xf32> to vector<2x16x16xf32>
      %165 = vector.broadcast %159 : f32 to vector<2x16x16xf32>
      %166 = arith.mulf %164, %165 : vector<2x16x16xf32>
      %167 = arith.addf %163, %166 : vector<2x16x16xf32>
      %c0_44 = arith.constant 0 : index
      %c2_45 = arith.constant 2 : index
      %c0_46 = arith.constant 0 : index
      %168 = vector.load %arg8[%c0_44, %c2_45, %c0_46] : memref<2x22x22xf32, #tpu.memory_space<vmem>>, vector<2x16x22xf32>
      %c0_47 = arith.constant 0 : index
      %c2_48 = arith.constant 2 : index
      %c0_49 = arith.constant 0 : index
      %169 = vector.load %arg9[%c0_47, %c2_48, %c0_49] : memref<2x22x22xf32, #tpu.memory_space<vmem>>, vector<2x16x22xf32>
      %c14 = arith.constant 14 : index
      %170 = memref.load %arg2[%c14] : memref<98xf32, #tpu.memory_space<smem>>
      %c63 = arith.constant 63 : index
      %171 = memref.load %arg2[%c63] : memref<98xf32, #tpu.memory_space<smem>>
      %172 = vector.extract_strided_slice %168 {offsets = [0, 0, 0], sizes = [2, 16, 16], strides = [1, 1, 1]} : vector<2x16x22xf32> to vector<2x16x16xf32>
      %173 = vector.broadcast %170 : f32 to vector<2x16x16xf32>
      %174 = arith.mulf %172, %173 : vector<2x16x16xf32>
      %175 = arith.addf %167, %174 : vector<2x16x16xf32>
      %176 = vector.extract_strided_slice %169 {offsets = [0, 0, 0], sizes = [2, 16, 16], strides = [1, 1, 1]} : vector<2x16x22xf32> to vector<2x16x16xf32>
      %177 = vector.broadcast %171 : f32 to vector<2x16x16xf32>
      %178 = arith.mulf %176, %177 : vector<2x16x16xf32>
      %179 = arith.addf %175, %178 : vector<2x16x16xf32>
      %c15 = arith.constant 15 : index
      %180 = memref.load %arg2[%c15] : memref<98xf32, #tpu.memory_space<smem>>
      %c64 = arith.constant 64 : index
      %181 = memref.load %arg2[%c64] : memref<98xf32, #tpu.memory_space<smem>>
      %182 = vector.extract_strided_slice %168 {offsets = [0, 0, 1], sizes = [2, 16, 16], strides = [1, 1, 1]} : vector<2x16x22xf32> to vector<2x16x16xf32>
      %183 = vector.broadcast %180 : f32 to vector<2x16x16xf32>
      %184 = arith.mulf %182, %183 : vector<2x16x16xf32>
      %185 = arith.addf %179, %184 : vector<2x16x16xf32>
      %186 = vector.extract_strided_slice %169 {offsets = [0, 0, 1], sizes = [2, 16, 16], strides = [1, 1, 1]} : vector<2x16x22xf32> to vector<2x16x16xf32>
      %187 = vector.broadcast %181 : f32 to vector<2x16x16xf32>
      %188 = arith.mulf %186, %187 : vector<2x16x16xf32>
      %189 = arith.addf %185, %188 : vector<2x16x16xf32>
      %c16 = arith.constant 16 : index
      %190 = memref.load %arg2[%c16] : memref<98xf32, #tpu.memory_space<smem>>
      %c65 = arith.constant 65 : index
      %191 = memref.load %arg2[%c65] : memref<98xf32, #tpu.memory_space<smem>>
      %192 = vector.extract_strided_slice %168 {offsets = [0, 0, 2], sizes = [2, 16, 16], strides = [1, 1, 1]} : vector<2x16x22xf32> to vector<2x16x16xf32>
      %193 = vector.broadcast %190 : f32 to vector<2x16x16xf32>
      %194 = arith.mulf %192, %193 : vector<2x16x16xf32>
      %195 = arith.addf %189, %194 : vector<2x16x16xf32>
      %196 = vector.extract_strided_slice %169 {offsets = [0, 0, 2], sizes = [2, 16, 16], strides = [1, 1, 1]} : vector<2x16x22xf32> to vector<2x16x16xf32>
      %197 = vector.broadcast %191 : f32 to vector<2x16x16xf32>
      %198 = arith.mulf %196, %197 : vector<2x16x16xf32>
      %199 = arith.addf %195, %198 : vector<2x16x16xf32>
      %c17 = arith.constant 17 : index
      %200 = memref.load %arg2[%c17] : memref<98xf32, #tpu.memory_space<smem>>
      %c66 = arith.constant 66 : index
      %201 = memref.load %arg2[%c66] : memref<98xf32, #tpu.memory_space<smem>>
      %202 = vector.extract_strided_slice %168 {offsets = [0, 0, 3], sizes = [2, 16, 16], strides = [1, 1, 1]} : vector<2x16x22xf32> to vector<2x16x16xf32>
      %203 = vector.broadcast %200 : f32 to vector<2x16x16xf32>
      %204 = arith.mulf %202, %203 : vector<2x16x16xf32>
      %205 = arith.addf %199, %204 : vector<2x16x16xf32>
      %206 = vector.extract_strided_slice %169 {offsets = [0, 0, 3], sizes = [2, 16, 16], strides = [1, 1, 1]} : vector<2x16x22xf32> to vector<2x16x16xf32>
      %207 = vector.broadcast %201 : f32 to vector<2x16x16xf32>
      %208 = arith.mulf %206, %207 : vector<2x16x16xf32>
      %209 = arith.addf %205, %208 : vector<2x16x16xf32>
      %c18 = arith.constant 18 : index
      %210 = memref.load %arg2[%c18] : memref<98xf32, #tpu.memory_space<smem>>
      %c67 = arith.constant 67 : index
      %211 = memref.load %arg2[%c67] : memref<98xf32, #tpu.memory_space<smem>>
      %212 = vector.extract_strided_slice %168 {offsets = [0, 0, 4], sizes = [2, 16, 16], strides = [1, 1, 1]} : vector<2x16x22xf32> to vector<2x16x16xf32>
      %213 = vector.broadcast %210 : f32 to vector<2x16x16xf32>
      %214 = arith.mulf %212, %213 : vector<2x16x16xf32>
      %215 = arith.addf %209, %214 : vector<2x16x16xf32>
      %216 = vector.extract_strided_slice %169 {offsets = [0, 0, 4], sizes = [2, 16, 16], strides = [1, 1, 1]} : vector<2x16x22xf32> to vector<2x16x16xf32>
      %217 = vector.broadcast %211 : f32 to vector<2x16x16xf32>
      %218 = arith.mulf %216, %217 : vector<2x16x16xf32>
      %219 = arith.addf %215, %218 : vector<2x16x16xf32>
      %c19 = arith.constant 19 : index
      %220 = memref.load %arg2[%c19] : memref<98xf32, #tpu.memory_space<smem>>
      %c68 = arith.constant 68 : index
      %221 = memref.load %arg2[%c68] : memref<98xf32, #tpu.memory_space<smem>>
      %222 = vector.extract_strided_slice %168 {offsets = [0, 0, 5], sizes = [2, 16, 16], strides = [1, 1, 1]} : vector<2x16x22xf32> to vector<2x16x16xf32>
      %223 = vector.broadcast %220 : f32 to vector<2x16x16xf32>
      %224 = arith.mulf %222, %223 : vector<2x16x16xf32>
      %225 = arith.addf %219, %224 : vector<2x16x16xf32>
      %226 = vector.extract_strided_slice %169 {offsets = [0, 0, 5], sizes = [2, 16, 16], strides = [1, 1, 1]} : vector<2x16x22xf32> to vector<2x16x16xf32>
      %227 = vector.broadcast %221 : f32 to vector<2x16x16xf32>
      %228 = arith.mulf %226, %227 : vector<2x16x16xf32>
      %229 = arith.addf %225, %228 : vector<2x16x16xf32>
      %c20 = arith.constant 20 : index
      %230 = memref.load %arg2[%c20] : memref<98xf32, #tpu.memory_space<smem>>
      %c69 = arith.constant 69 : index
      %231 = memref.load %arg2[%c69] : memref<98xf32, #tpu.memory_space<smem>>
      %232 = vector.extract_strided_slice %168 {offsets = [0, 0, 6], sizes = [2, 16, 16], strides = [1, 1, 1]} : vector<2x16x22xf32> to vector<2x16x16xf32>
      %233 = vector.broadcast %230 : f32 to vector<2x16x16xf32>
      %234 = arith.mulf %232, %233 : vector<2x16x16xf32>
      %235 = arith.addf %229, %234 : vector<2x16x16xf32>
      %236 = vector.extract_strided_slice %169 {offsets = [0, 0, 6], sizes = [2, 16, 16], strides = [1, 1, 1]} : vector<2x16x22xf32> to vector<2x16x16xf32>
      %237 = vector.broadcast %231 : f32 to vector<2x16x16xf32>
      %238 = arith.mulf %236, %237 : vector<2x16x16xf32>
      %239 = arith.addf %235, %238 : vector<2x16x16xf32>
      %c0_50 = arith.constant 0 : index
      %c3_51 = arith.constant 3 : index
      %c0_52 = arith.constant 0 : index
      %240 = vector.load %arg8[%c0_50, %c3_51, %c0_52] : memref<2x22x22xf32, #tpu.memory_space<vmem>>, vector<2x16x22xf32>
      %c0_53 = arith.constant 0 : index
      %c3_54 = arith.constant 3 : index
      %c0_55 = arith.constant 0 : index
      %241 = vector.load %arg9[%c0_53, %c3_54, %c0_55] : memref<2x22x22xf32, #tpu.memory_space<vmem>>, vector<2x16x22xf32>
      %c21 = arith.constant 21 : index
      %242 = memref.load %arg2[%c21] : memref<98xf32, #tpu.memory_space<smem>>
      %c70 = arith.constant 70 : index
      %243 = memref.load %arg2[%c70] : memref<98xf32, #tpu.memory_space<smem>>
      %244 = vector.extract_strided_slice %240 {offsets = [0, 0, 0], sizes = [2, 16, 16], strides = [1, 1, 1]} : vector<2x16x22xf32> to vector<2x16x16xf32>
      %245 = vector.broadcast %242 : f32 to vector<2x16x16xf32>
      %246 = arith.mulf %244, %245 : vector<2x16x16xf32>
      %247 = arith.addf %239, %246 : vector<2x16x16xf32>
      %248 = vector.extract_strided_slice %241 {offsets = [0, 0, 0], sizes = [2, 16, 16], strides = [1, 1, 1]} : vector<2x16x22xf32> to vector<2x16x16xf32>
      %249 = vector.broadcast %243 : f32 to vector<2x16x16xf32>
      %250 = arith.mulf %248, %249 : vector<2x16x16xf32>
      %251 = arith.addf %247, %250 : vector<2x16x16xf32>
      %c22 = arith.constant 22 : index
      %252 = memref.load %arg2[%c22] : memref<98xf32, #tpu.memory_space<smem>>
      %c71 = arith.constant 71 : index
      %253 = memref.load %arg2[%c71] : memref<98xf32, #tpu.memory_space<smem>>
      %254 = vector.extract_strided_slice %240 {offsets = [0, 0, 1], sizes = [2, 16, 16], strides = [1, 1, 1]} : vector<2x16x22xf32> to vector<2x16x16xf32>
      %255 = vector.broadcast %252 : f32 to vector<2x16x16xf32>
      %256 = arith.mulf %254, %255 : vector<2x16x16xf32>
      %257 = arith.addf %251, %256 : vector<2x16x16xf32>
      %258 = vector.extract_strided_slice %241 {offsets = [0, 0, 1], sizes = [2, 16, 16], strides = [1, 1, 1]} : vector<2x16x22xf32> to vector<2x16x16xf32>
      %259 = vector.broadcast %253 : f32 to vector<2x16x16xf32>
      %260 = arith.mulf %258, %259 : vector<2x16x16xf32>
      %261 = arith.addf %257, %260 : vector<2x16x16xf32>
      %c23 = arith.constant 23 : index
      %262 = memref.load %arg2[%c23] : memref<98xf32, #tpu.memory_space<smem>>
      %c72 = arith.constant 72 : index
      %263 = memref.load %arg2[%c72] : memref<98xf32, #tpu.memory_space<smem>>
      %264 = vector.extract_strided_slice %240 {offsets = [0, 0, 2], sizes = [2, 16, 16], strides = [1, 1, 1]} : vector<2x16x22xf32> to vector<2x16x16xf32>
      %265 = vector.broadcast %262 : f32 to vector<2x16x16xf32>
      %266 = arith.mulf %264, %265 : vector<2x16x16xf32>
      %267 = arith.addf %261, %266 : vector<2x16x16xf32>
      %268 = vector.extract_strided_slice %241 {offsets = [0, 0, 2], sizes = [2, 16, 16], strides = [1, 1, 1]} : vector<2x16x22xf32> to vector<2x16x16xf32>
      %269 = vector.broadcast %263 : f32 to vector<2x16x16xf32>
      %270 = arith.mulf %268, %269 : vector<2x16x16xf32>
      %271 = arith.addf %267, %270 : vector<2x16x16xf32>
      %c24 = arith.constant 24 : index
      %272 = memref.load %arg2[%c24] : memref<98xf32, #tpu.memory_space<smem>>
      %c73 = arith.constant 73 : index
      %273 = memref.load %arg2[%c73] : memref<98xf32, #tpu.memory_space<smem>>
      %274 = vector.extract_strided_slice %240 {offsets = [0, 0, 3], sizes = [2, 16, 16], strides = [1, 1, 1]} : vector<2x16x22xf32> to vector<2x16x16xf32>
      %275 = vector.broadcast %272 : f32 to vector<2x16x16xf32>
      %276 = arith.mulf %274, %275 : vector<2x16x16xf32>
      %277 = arith.addf %271, %276 : vector<2x16x16xf32>
      %278 = vector.extract_strided_slice %241 {offsets = [0, 0, 3], sizes = [2, 16, 16], strides = [1, 1, 1]} : vector<2x16x22xf32> to vector<2x16x16xf32>
      %279 = vector.broadcast %273 : f32 to vector<2x16x16xf32>
      %280 = arith.mulf %278, %279 : vector<2x16x16xf32>
      %281 = arith.addf %277, %280 : vector<2x16x16xf32>
      %c25 = arith.constant 25 : index
      %282 = memref.load %arg2[%c25] : memref<98xf32, #tpu.memory_space<smem>>
      %c74 = arith.constant 74 : index
      %283 = memref.load %arg2[%c74] : memref<98xf32, #tpu.memory_space<smem>>
      %284 = vector.extract_strided_slice %240 {offsets = [0, 0, 4], sizes = [2, 16, 16], strides = [1, 1, 1]} : vector<2x16x22xf32> to vector<2x16x16xf32>
      %285 = vector.broadcast %282 : f32 to vector<2x16x16xf32>
      %286 = arith.mulf %284, %285 : vector<2x16x16xf32>
      %287 = arith.addf %281, %286 : vector<2x16x16xf32>
      %288 = vector.extract_strided_slice %241 {offsets = [0, 0, 4], sizes = [2, 16, 16], strides = [1, 1, 1]} : vector<2x16x22xf32> to vector<2x16x16xf32>
      %289 = vector.broadcast %283 : f32 to vector<2x16x16xf32>
      %290 = arith.mulf %288, %289 : vector<2x16x16xf32>
      %291 = arith.addf %287, %290 : vector<2x16x16xf32>
      %c26 = arith.constant 26 : index
      %292 = memref.load %arg2[%c26] : memref<98xf32, #tpu.memory_space<smem>>
      %c75 = arith.constant 75 : index
      %293 = memref.load %arg2[%c75] : memref<98xf32, #tpu.memory_space<smem>>
      %294 = vector.extract_strided_slice %240 {offsets = [0, 0, 5], sizes = [2, 16, 16], strides = [1, 1, 1]} : vector<2x16x22xf32> to vector<2x16x16xf32>
      %295 = vector.broadcast %292 : f32 to vector<2x16x16xf32>
      %296 = arith.mulf %294, %295 : vector<2x16x16xf32>
      %297 = arith.addf %291, %296 : vector<2x16x16xf32>
      %298 = vector.extract_strided_slice %241 {offsets = [0, 0, 5], sizes = [2, 16, 16], strides = [1, 1, 1]} : vector<2x16x22xf32> to vector<2x16x16xf32>
      %299 = vector.broadcast %293 : f32 to vector<2x16x16xf32>
      %300 = arith.mulf %298, %299 : vector<2x16x16xf32>
      %301 = arith.addf %297, %300 : vector<2x16x16xf32>
      %c27 = arith.constant 27 : index
      %302 = memref.load %arg2[%c27] : memref<98xf32, #tpu.memory_space<smem>>
      %c76 = arith.constant 76 : index
      %303 = memref.load %arg2[%c76] : memref<98xf32, #tpu.memory_space<smem>>
      %304 = vector.extract_strided_slice %240 {offsets = [0, 0, 6], sizes = [2, 16, 16], strides = [1, 1, 1]} : vector<2x16x22xf32> to vector<2x16x16xf32>
      %305 = vector.broadcast %302 : f32 to vector<2x16x16xf32>
      %306 = arith.mulf %304, %305 : vector<2x16x16xf32>
      %307 = arith.addf %301, %306 : vector<2x16x16xf32>
      %308 = vector.extract_strided_slice %241 {offsets = [0, 0, 6], sizes = [2, 16, 16], strides = [1, 1, 1]} : vector<2x16x22xf32> to vector<2x16x16xf32>
      %309 = vector.broadcast %303 : f32 to vector<2x16x16xf32>
      %310 = arith.mulf %308, %309 : vector<2x16x16xf32>
      %311 = arith.addf %307, %310 : vector<2x16x16xf32>
      %c0_56 = arith.constant 0 : index
      %c4_57 = arith.constant 4 : index
      %c0_58 = arith.constant 0 : index
      %312 = vector.load %arg8[%c0_56, %c4_57, %c0_58] : memref<2x22x22xf32, #tpu.memory_space<vmem>>, vector<2x16x22xf32>
      %c0_59 = arith.constant 0 : index
      %c4_60 = arith.constant 4 : index
      %c0_61 = arith.constant 0 : index
      %313 = vector.load %arg9[%c0_59, %c4_60, %c0_61] : memref<2x22x22xf32, #tpu.memory_space<vmem>>, vector<2x16x22xf32>
      %c28 = arith.constant 28 : index
      %314 = memref.load %arg2[%c28] : memref<98xf32, #tpu.memory_space<smem>>
      %c77 = arith.constant 77 : index
      %315 = memref.load %arg2[%c77] : memref<98xf32, #tpu.memory_space<smem>>
      %316 = vector.extract_strided_slice %312 {offsets = [0, 0, 0], sizes = [2, 16, 16], strides = [1, 1, 1]} : vector<2x16x22xf32> to vector<2x16x16xf32>
      %317 = vector.broadcast %314 : f32 to vector<2x16x16xf32>
      %318 = arith.mulf %316, %317 : vector<2x16x16xf32>
      %319 = arith.addf %311, %318 : vector<2x16x16xf32>
      %320 = vector.extract_strided_slice %313 {offsets = [0, 0, 0], sizes = [2, 16, 16], strides = [1, 1, 1]} : vector<2x16x22xf32> to vector<2x16x16xf32>
      %321 = vector.broadcast %315 : f32 to vector<2x16x16xf32>
      %322 = arith.mulf %320, %321 : vector<2x16x16xf32>
      %323 = arith.addf %319, %322 : vector<2x16x16xf32>
      %c29 = arith.constant 29 : index
      %324 = memref.load %arg2[%c29] : memref<98xf32, #tpu.memory_space<smem>>
      %c78 = arith.constant 78 : index
      %325 = memref.load %arg2[%c78] : memref<98xf32, #tpu.memory_space<smem>>
      %326 = vector.extract_strided_slice %312 {offsets = [0, 0, 1], sizes = [2, 16, 16], strides = [1, 1, 1]} : vector<2x16x22xf32> to vector<2x16x16xf32>
      %327 = vector.broadcast %324 : f32 to vector<2x16x16xf32>
      %328 = arith.mulf %326, %327 : vector<2x16x16xf32>
      %329 = arith.addf %323, %328 : vector<2x16x16xf32>
      %330 = vector.extract_strided_slice %313 {offsets = [0, 0, 1], sizes = [2, 16, 16], strides = [1, 1, 1]} : vector<2x16x22xf32> to vector<2x16x16xf32>
      %331 = vector.broadcast %325 : f32 to vector<2x16x16xf32>
      %332 = arith.mulf %330, %331 : vector<2x16x16xf32>
      %333 = arith.addf %329, %332 : vector<2x16x16xf32>
      %c30 = arith.constant 30 : index
      %334 = memref.load %arg2[%c30] : memref<98xf32, #tpu.memory_space<smem>>
      %c79 = arith.constant 79 : index
      %335 = memref.load %arg2[%c79] : memref<98xf32, #tpu.memory_space<smem>>
      %336 = vector.extract_strided_slice %312 {offsets = [0, 0, 2], sizes = [2, 16, 16], strides = [1, 1, 1]} : vector<2x16x22xf32> to vector<2x16x16xf32>
      %337 = vector.broadcast %334 : f32 to vector<2x16x16xf32>
      %338 = arith.mulf %336, %337 : vector<2x16x16xf32>
      %339 = arith.addf %333, %338 : vector<2x16x16xf32>
      %340 = vector.extract_strided_slice %313 {offsets = [0, 0, 2], sizes = [2, 16, 16], strides = [1, 1, 1]} : vector<2x16x22xf32> to vector<2x16x16xf32>
      %341 = vector.broadcast %335 : f32 to vector<2x16x16xf32>
      %342 = arith.mulf %340, %341 : vector<2x16x16xf32>
      %343 = arith.addf %339, %342 : vector<2x16x16xf32>
      %c31 = arith.constant 31 : index
      %344 = memref.load %arg2[%c31] : memref<98xf32, #tpu.memory_space<smem>>
      %c80 = arith.constant 80 : index
      %345 = memref.load %arg2[%c80] : memref<98xf32, #tpu.memory_space<smem>>
      %346 = vector.extract_strided_slice %312 {offsets = [0, 0, 3], sizes = [2, 16, 16], strides = [1, 1, 1]} : vector<2x16x22xf32> to vector<2x16x16xf32>
      %347 = vector.broadcast %344 : f32 to vector<2x16x16xf32>
      %348 = arith.mulf %346, %347 : vector<2x16x16xf32>
      %349 = arith.addf %343, %348 : vector<2x16x16xf32>
      %350 = vector.extract_strided_slice %313 {offsets = [0, 0, 3], sizes = [2, 16, 16], strides = [1, 1, 1]} : vector<2x16x22xf32> to vector<2x16x16xf32>
      %351 = vector.broadcast %345 : f32 to vector<2x16x16xf32>
      %352 = arith.mulf %350, %351 : vector<2x16x16xf32>
      %353 = arith.addf %349, %352 : vector<2x16x16xf32>
      %c32 = arith.constant 32 : index
      %354 = memref.load %arg2[%c32] : memref<98xf32, #tpu.memory_space<smem>>
      %c81 = arith.constant 81 : index
      %355 = memref.load %arg2[%c81] : memref<98xf32, #tpu.memory_space<smem>>
      %356 = vector.extract_strided_slice %312 {offsets = [0, 0, 4], sizes = [2, 16, 16], strides = [1, 1, 1]} : vector<2x16x22xf32> to vector<2x16x16xf32>
      %357 = vector.broadcast %354 : f32 to vector<2x16x16xf32>
      %358 = arith.mulf %356, %357 : vector<2x16x16xf32>
      %359 = arith.addf %353, %358 : vector<2x16x16xf32>
      %360 = vector.extract_strided_slice %313 {offsets = [0, 0, 4], sizes = [2, 16, 16], strides = [1, 1, 1]} : vector<2x16x22xf32> to vector<2x16x16xf32>
      %361 = vector.broadcast %355 : f32 to vector<2x16x16xf32>
      %362 = arith.mulf %360, %361 : vector<2x16x16xf32>
      %363 = arith.addf %359, %362 : vector<2x16x16xf32>
      %c33 = arith.constant 33 : index
      %364 = memref.load %arg2[%c33] : memref<98xf32, #tpu.memory_space<smem>>
      %c82 = arith.constant 82 : index
      %365 = memref.load %arg2[%c82] : memref<98xf32, #tpu.memory_space<smem>>
      %366 = vector.extract_strided_slice %312 {offsets = [0, 0, 5], sizes = [2, 16, 16], strides = [1, 1, 1]} : vector<2x16x22xf32> to vector<2x16x16xf32>
      %367 = vector.broadcast %364 : f32 to vector<2x16x16xf32>
      %368 = arith.mulf %366, %367 : vector<2x16x16xf32>
      %369 = arith.addf %363, %368 : vector<2x16x16xf32>
      %370 = vector.extract_strided_slice %313 {offsets = [0, 0, 5], sizes = [2, 16, 16], strides = [1, 1, 1]} : vector<2x16x22xf32> to vector<2x16x16xf32>
      %371 = vector.broadcast %365 : f32 to vector<2x16x16xf32>
      %372 = arith.mulf %370, %371 : vector<2x16x16xf32>
      %373 = arith.addf %369, %372 : vector<2x16x16xf32>
      %c34 = arith.constant 34 : index
      %374 = memref.load %arg2[%c34] : memref<98xf32, #tpu.memory_space<smem>>
      %c83 = arith.constant 83 : index
      %375 = memref.load %arg2[%c83] : memref<98xf32, #tpu.memory_space<smem>>
      %376 = vector.extract_strided_slice %312 {offsets = [0, 0, 6], sizes = [2, 16, 16], strides = [1, 1, 1]} : vector<2x16x22xf32> to vector<2x16x16xf32>
      %377 = vector.broadcast %374 : f32 to vector<2x16x16xf32>
      %378 = arith.mulf %376, %377 : vector<2x16x16xf32>
      %379 = arith.addf %373, %378 : vector<2x16x16xf32>
      %380 = vector.extract_strided_slice %313 {offsets = [0, 0, 6], sizes = [2, 16, 16], strides = [1, 1, 1]} : vector<2x16x22xf32> to vector<2x16x16xf32>
      %381 = vector.broadcast %375 : f32 to vector<2x16x16xf32>
      %382 = arith.mulf %380, %381 : vector<2x16x16xf32>
      %383 = arith.addf %379, %382 : vector<2x16x16xf32>
      %c0_62 = arith.constant 0 : index
      %c5_63 = arith.constant 5 : index
      %c0_64 = arith.constant 0 : index
      %384 = vector.load %arg8[%c0_62, %c5_63, %c0_64] : memref<2x22x22xf32, #tpu.memory_space<vmem>>, vector<2x16x22xf32>
      %c0_65 = arith.constant 0 : index
      %c5_66 = arith.constant 5 : index
      %c0_67 = arith.constant 0 : index
      %385 = vector.load %arg9[%c0_65, %c5_66, %c0_67] : memref<2x22x22xf32, #tpu.memory_space<vmem>>, vector<2x16x22xf32>
      %c35 = arith.constant 35 : index
      %386 = memref.load %arg2[%c35] : memref<98xf32, #tpu.memory_space<smem>>
      %c84 = arith.constant 84 : index
      %387 = memref.load %arg2[%c84] : memref<98xf32, #tpu.memory_space<smem>>
      %388 = vector.extract_strided_slice %384 {offsets = [0, 0, 0], sizes = [2, 16, 16], strides = [1, 1, 1]} : vector<2x16x22xf32> to vector<2x16x16xf32>
      %389 = vector.broadcast %386 : f32 to vector<2x16x16xf32>
      %390 = arith.mulf %388, %389 : vector<2x16x16xf32>
      %391 = arith.addf %383, %390 : vector<2x16x16xf32>
      %392 = vector.extract_strided_slice %385 {offsets = [0, 0, 0], sizes = [2, 16, 16], strides = [1, 1, 1]} : vector<2x16x22xf32> to vector<2x16x16xf32>
      %393 = vector.broadcast %387 : f32 to vector<2x16x16xf32>
      %394 = arith.mulf %392, %393 : vector<2x16x16xf32>
      %395 = arith.addf %391, %394 : vector<2x16x16xf32>
      %c36 = arith.constant 36 : index
      %396 = memref.load %arg2[%c36] : memref<98xf32, #tpu.memory_space<smem>>
      %c85 = arith.constant 85 : index
      %397 = memref.load %arg2[%c85] : memref<98xf32, #tpu.memory_space<smem>>
      %398 = vector.extract_strided_slice %384 {offsets = [0, 0, 1], sizes = [2, 16, 16], strides = [1, 1, 1]} : vector<2x16x22xf32> to vector<2x16x16xf32>
      %399 = vector.broadcast %396 : f32 to vector<2x16x16xf32>
      %400 = arith.mulf %398, %399 : vector<2x16x16xf32>
      %401 = arith.addf %395, %400 : vector<2x16x16xf32>
      %402 = vector.extract_strided_slice %385 {offsets = [0, 0, 1], sizes = [2, 16, 16], strides = [1, 1, 1]} : vector<2x16x22xf32> to vector<2x16x16xf32>
      %403 = vector.broadcast %397 : f32 to vector<2x16x16xf32>
      %404 = arith.mulf %402, %403 : vector<2x16x16xf32>
      %405 = arith.addf %401, %404 : vector<2x16x16xf32>
      %c37 = arith.constant 37 : index
      %406 = memref.load %arg2[%c37] : memref<98xf32, #tpu.memory_space<smem>>
      %c86 = arith.constant 86 : index
      %407 = memref.load %arg2[%c86] : memref<98xf32, #tpu.memory_space<smem>>
      %408 = vector.extract_strided_slice %384 {offsets = [0, 0, 2], sizes = [2, 16, 16], strides = [1, 1, 1]} : vector<2x16x22xf32> to vector<2x16x16xf32>
      %409 = vector.broadcast %406 : f32 to vector<2x16x16xf32>
      %410 = arith.mulf %408, %409 : vector<2x16x16xf32>
      %411 = arith.addf %405, %410 : vector<2x16x16xf32>
      %412 = vector.extract_strided_slice %385 {offsets = [0, 0, 2], sizes = [2, 16, 16], strides = [1, 1, 1]} : vector<2x16x22xf32> to vector<2x16x16xf32>
      %413 = vector.broadcast %407 : f32 to vector<2x16x16xf32>
      %414 = arith.mulf %412, %413 : vector<2x16x16xf32>
      %415 = arith.addf %411, %414 : vector<2x16x16xf32>
      %c38 = arith.constant 38 : index
      %416 = memref.load %arg2[%c38] : memref<98xf32, #tpu.memory_space<smem>>
      %c87 = arith.constant 87 : index
      %417 = memref.load %arg2[%c87] : memref<98xf32, #tpu.memory_space<smem>>
      %418 = vector.extract_strided_slice %384 {offsets = [0, 0, 3], sizes = [2, 16, 16], strides = [1, 1, 1]} : vector<2x16x22xf32> to vector<2x16x16xf32>
      %419 = vector.broadcast %416 : f32 to vector<2x16x16xf32>
      %420 = arith.mulf %418, %419 : vector<2x16x16xf32>
      %421 = arith.addf %415, %420 : vector<2x16x16xf32>
      %422 = vector.extract_strided_slice %385 {offsets = [0, 0, 3], sizes = [2, 16, 16], strides = [1, 1, 1]} : vector<2x16x22xf32> to vector<2x16x16xf32>
      %423 = vector.broadcast %417 : f32 to vector<2x16x16xf32>
      %424 = arith.mulf %422, %423 : vector<2x16x16xf32>
      %425 = arith.addf %421, %424 : vector<2x16x16xf32>
      %c39 = arith.constant 39 : index
      %426 = memref.load %arg2[%c39] : memref<98xf32, #tpu.memory_space<smem>>
      %c88 = arith.constant 88 : index
      %427 = memref.load %arg2[%c88] : memref<98xf32, #tpu.memory_space<smem>>
      %428 = vector.extract_strided_slice %384 {offsets = [0, 0, 4], sizes = [2, 16, 16], strides = [1, 1, 1]} : vector<2x16x22xf32> to vector<2x16x16xf32>
      %429 = vector.broadcast %426 : f32 to vector<2x16x16xf32>
      %430 = arith.mulf %428, %429 : vector<2x16x16xf32>
      %431 = arith.addf %425, %430 : vector<2x16x16xf32>
      %432 = vector.extract_strided_slice %385 {offsets = [0, 0, 4], sizes = [2, 16, 16], strides = [1, 1, 1]} : vector<2x16x22xf32> to vector<2x16x16xf32>
      %433 = vector.broadcast %427 : f32 to vector<2x16x16xf32>
      %434 = arith.mulf %432, %433 : vector<2x16x16xf32>
      %435 = arith.addf %431, %434 : vector<2x16x16xf32>
      %c40 = arith.constant 40 : index
      %436 = memref.load %arg2[%c40] : memref<98xf32, #tpu.memory_space<smem>>
      %c89 = arith.constant 89 : index
      %437 = memref.load %arg2[%c89] : memref<98xf32, #tpu.memory_space<smem>>
      %438 = vector.extract_strided_slice %384 {offsets = [0, 0, 5], sizes = [2, 16, 16], strides = [1, 1, 1]} : vector<2x16x22xf32> to vector<2x16x16xf32>
      %439 = vector.broadcast %436 : f32 to vector<2x16x16xf32>
      %440 = arith.mulf %438, %439 : vector<2x16x16xf32>
      %441 = arith.addf %435, %440 : vector<2x16x16xf32>
      %442 = vector.extract_strided_slice %385 {offsets = [0, 0, 5], sizes = [2, 16, 16], strides = [1, 1, 1]} : vector<2x16x22xf32> to vector<2x16x16xf32>
      %443 = vector.broadcast %437 : f32 to vector<2x16x16xf32>
      %444 = arith.mulf %442, %443 : vector<2x16x16xf32>
      %445 = arith.addf %441, %444 : vector<2x16x16xf32>
      %c41 = arith.constant 41 : index
      %446 = memref.load %arg2[%c41] : memref<98xf32, #tpu.memory_space<smem>>
      %c90 = arith.constant 90 : index
      %447 = memref.load %arg2[%c90] : memref<98xf32, #tpu.memory_space<smem>>
      %448 = vector.extract_strided_slice %384 {offsets = [0, 0, 6], sizes = [2, 16, 16], strides = [1, 1, 1]} : vector<2x16x22xf32> to vector<2x16x16xf32>
      %449 = vector.broadcast %446 : f32 to vector<2x16x16xf32>
      %450 = arith.mulf %448, %449 : vector<2x16x16xf32>
      %451 = arith.addf %445, %450 : vector<2x16x16xf32>
      %452 = vector.extract_strided_slice %385 {offsets = [0, 0, 6], sizes = [2, 16, 16], strides = [1, 1, 1]} : vector<2x16x22xf32> to vector<2x16x16xf32>
      %453 = vector.broadcast %447 : f32 to vector<2x16x16xf32>
      %454 = arith.mulf %452, %453 : vector<2x16x16xf32>
      %455 = arith.addf %451, %454 : vector<2x16x16xf32>
      %c0_68 = arith.constant 0 : index
      %c6_69 = arith.constant 6 : index
      %c0_70 = arith.constant 0 : index
      %456 = vector.load %arg8[%c0_68, %c6_69, %c0_70] : memref<2x22x22xf32, #tpu.memory_space<vmem>>, vector<2x16x22xf32>
      %c0_71 = arith.constant 0 : index
      %c6_72 = arith.constant 6 : index
      %c0_73 = arith.constant 0 : index
      %457 = vector.load %arg9[%c0_71, %c6_72, %c0_73] : memref<2x22x22xf32, #tpu.memory_space<vmem>>, vector<2x16x22xf32>
      %c42 = arith.constant 42 : index
      %458 = memref.load %arg2[%c42] : memref<98xf32, #tpu.memory_space<smem>>
      %c91 = arith.constant 91 : index
      %459 = memref.load %arg2[%c91] : memref<98xf32, #tpu.memory_space<smem>>
      %460 = vector.extract_strided_slice %456 {offsets = [0, 0, 0], sizes = [2, 16, 16], strides = [1, 1, 1]} : vector<2x16x22xf32> to vector<2x16x16xf32>
      %461 = vector.broadcast %458 : f32 to vector<2x16x16xf32>
      %462 = arith.mulf %460, %461 : vector<2x16x16xf32>
      %463 = arith.addf %455, %462 : vector<2x16x16xf32>
      %464 = vector.extract_strided_slice %457 {offsets = [0, 0, 0], sizes = [2, 16, 16], strides = [1, 1, 1]} : vector<2x16x22xf32> to vector<2x16x16xf32>
      %465 = vector.broadcast %459 : f32 to vector<2x16x16xf32>
      %466 = arith.mulf %464, %465 : vector<2x16x16xf32>
      %467 = arith.addf %463, %466 : vector<2x16x16xf32>
      %c43 = arith.constant 43 : index
      %468 = memref.load %arg2[%c43] : memref<98xf32, #tpu.memory_space<smem>>
      %c92 = arith.constant 92 : index
      %469 = memref.load %arg2[%c92] : memref<98xf32, #tpu.memory_space<smem>>
      %470 = vector.extract_strided_slice %456 {offsets = [0, 0, 1], sizes = [2, 16, 16], strides = [1, 1, 1]} : vector<2x16x22xf32> to vector<2x16x16xf32>
      %471 = vector.broadcast %468 : f32 to vector<2x16x16xf32>
      %472 = arith.mulf %470, %471 : vector<2x16x16xf32>
      %473 = arith.addf %467, %472 : vector<2x16x16xf32>
      %474 = vector.extract_strided_slice %457 {offsets = [0, 0, 1], sizes = [2, 16, 16], strides = [1, 1, 1]} : vector<2x16x22xf32> to vector<2x16x16xf32>
      %475 = vector.broadcast %469 : f32 to vector<2x16x16xf32>
      %476 = arith.mulf %474, %475 : vector<2x16x16xf32>
      %477 = arith.addf %473, %476 : vector<2x16x16xf32>
      %c44 = arith.constant 44 : index
      %478 = memref.load %arg2[%c44] : memref<98xf32, #tpu.memory_space<smem>>
      %c93 = arith.constant 93 : index
      %479 = memref.load %arg2[%c93] : memref<98xf32, #tpu.memory_space<smem>>
      %480 = vector.extract_strided_slice %456 {offsets = [0, 0, 2], sizes = [2, 16, 16], strides = [1, 1, 1]} : vector<2x16x22xf32> to vector<2x16x16xf32>
      %481 = vector.broadcast %478 : f32 to vector<2x16x16xf32>
      %482 = arith.mulf %480, %481 : vector<2x16x16xf32>
      %483 = arith.addf %477, %482 : vector<2x16x16xf32>
      %484 = vector.extract_strided_slice %457 {offsets = [0, 0, 2], sizes = [2, 16, 16], strides = [1, 1, 1]} : vector<2x16x22xf32> to vector<2x16x16xf32>
      %485 = vector.broadcast %479 : f32 to vector<2x16x16xf32>
      %486 = arith.mulf %484, %485 : vector<2x16x16xf32>
      %487 = arith.addf %483, %486 : vector<2x16x16xf32>
      %c45 = arith.constant 45 : index
      %488 = memref.load %arg2[%c45] : memref<98xf32, #tpu.memory_space<smem>>
      %c94 = arith.constant 94 : index
      %489 = memref.load %arg2[%c94] : memref<98xf32, #tpu.memory_space<smem>>
      %490 = vector.extract_strided_slice %456 {offsets = [0, 0, 3], sizes = [2, 16, 16], strides = [1, 1, 1]} : vector<2x16x22xf32> to vector<2x16x16xf32>
      %491 = vector.broadcast %488 : f32 to vector<2x16x16xf32>
      %492 = arith.mulf %490, %491 : vector<2x16x16xf32>
      %493 = arith.addf %487, %492 : vector<2x16x16xf32>
      %494 = vector.extract_strided_slice %457 {offsets = [0, 0, 3], sizes = [2, 16, 16], strides = [1, 1, 1]} : vector<2x16x22xf32> to vector<2x16x16xf32>
      %495 = vector.broadcast %489 : f32 to vector<2x16x16xf32>
      %496 = arith.mulf %494, %495 : vector<2x16x16xf32>
      %497 = arith.addf %493, %496 : vector<2x16x16xf32>
      %c46 = arith.constant 46 : index
      %498 = memref.load %arg2[%c46] : memref<98xf32, #tpu.memory_space<smem>>
      %c95 = arith.constant 95 : index
      %499 = memref.load %arg2[%c95] : memref<98xf32, #tpu.memory_space<smem>>
      %500 = vector.extract_strided_slice %456 {offsets = [0, 0, 4], sizes = [2, 16, 16], strides = [1, 1, 1]} : vector<2x16x22xf32> to vector<2x16x16xf32>
      %501 = vector.broadcast %498 : f32 to vector<2x16x16xf32>
      %502 = arith.mulf %500, %501 : vector<2x16x16xf32>
      %503 = arith.addf %497, %502 : vector<2x16x16xf32>
      %504 = vector.extract_strided_slice %457 {offsets = [0, 0, 4], sizes = [2, 16, 16], strides = [1, 1, 1]} : vector<2x16x22xf32> to vector<2x16x16xf32>
      %505 = vector.broadcast %499 : f32 to vector<2x16x16xf32>
      %506 = arith.mulf %504, %505 : vector<2x16x16xf32>
      %507 = arith.addf %503, %506 : vector<2x16x16xf32>
      %c47 = arith.constant 47 : index
      %508 = memref.load %arg2[%c47] : memref<98xf32, #tpu.memory_space<smem>>
      %c96 = arith.constant 96 : index
      %509 = memref.load %arg2[%c96] : memref<98xf32, #tpu.memory_space<smem>>
      %510 = vector.extract_strided_slice %456 {offsets = [0, 0, 5], sizes = [2, 16, 16], strides = [1, 1, 1]} : vector<2x16x22xf32> to vector<2x16x16xf32>
      %511 = vector.broadcast %508 : f32 to vector<2x16x16xf32>
      %512 = arith.mulf %510, %511 : vector<2x16x16xf32>
      %513 = arith.addf %507, %512 : vector<2x16x16xf32>
      %514 = vector.extract_strided_slice %457 {offsets = [0, 0, 5], sizes = [2, 16, 16], strides = [1, 1, 1]} : vector<2x16x22xf32> to vector<2x16x16xf32>
      %515 = vector.broadcast %509 : f32 to vector<2x16x16xf32>
      %516 = arith.mulf %514, %515 : vector<2x16x16xf32>
      %517 = arith.addf %513, %516 : vector<2x16x16xf32>
      %c48 = arith.constant 48 : index
      %518 = memref.load %arg2[%c48] : memref<98xf32, #tpu.memory_space<smem>>
      %c97 = arith.constant 97 : index
      %519 = memref.load %arg2[%c97] : memref<98xf32, #tpu.memory_space<smem>>
      %520 = vector.extract_strided_slice %456 {offsets = [0, 0, 6], sizes = [2, 16, 16], strides = [1, 1, 1]} : vector<2x16x22xf32> to vector<2x16x16xf32>
      %521 = vector.broadcast %518 : f32 to vector<2x16x16xf32>
      %522 = arith.mulf %520, %521 : vector<2x16x16xf32>
      %523 = arith.addf %517, %522 : vector<2x16x16xf32>
      %524 = vector.extract_strided_slice %457 {offsets = [0, 0, 6], sizes = [2, 16, 16], strides = [1, 1, 1]} : vector<2x16x22xf32> to vector<2x16x16xf32>
      %525 = vector.broadcast %519 : f32 to vector<2x16x16xf32>
      %526 = arith.mulf %524, %525 : vector<2x16x16xf32>
      %527 = arith.addf %523, %526 : vector<2x16x16xf32>
      %528 = arith.negf %527 : vector<2x16x16xf32>
      %529 = math.exp %528 : vector<2x16x16xf32>
      %cst_74 = arith.constant 1.000000e+00 : f32
      %530 = vector.broadcast %cst_74 : f32 to vector<2x16x16xf32>
      %531 = arith.addf %530, %529 : vector<2x16x16xf32>
      %532 = arith.divf %530, %531 : vector<2x16x16xf32>
      %c0_75 = arith.constant 0 : index
      %c0_76 = arith.constant 0 : index
      %c0_77 = arith.constant 0 : index
      %533 = vector.load %arg5[%c0_75, %c0_76, %c0_77] : memref<2x16x16xf32, #tpu.memory_space<vmem>>, vector<2x16x16xf32>
      tpu.vector_store %arg5[%c0_75, %c0_76, %c0_77], %532 {strides = array<i32>} : memref<2x16x16xf32, #tpu.memory_space<vmem>>, vector<2x16x16xf32>,
    } else {
    }
    return
  }
  func.func @transform_0(%arg0: i32, %arg1: i32) -> i32 {
    %c0_i32 = arith.constant 0 : i32
    %c0_i32_0 = arith.constant 0 : i32
    return %c0_i32 : i32
  }
  func.func @transform_1(%arg0: i32, %arg1: i32) -> i32 {
    %c0_i32 = arith.constant 0 : i32
    %c0_i32_0 = arith.constant 0 : i32
    return %c0_i32 : i32
  }
  func.func @transform_2(%arg0: i32, %arg1: i32) -> (i32, i32, i32, i32) {
    %c0_i32 = arith.constant 0 : i32
    %c0_i32_0 = arith.constant 0 : i32
    %c0_i32_1 = arith.constant 0 : i32
    return %arg0, %arg1, %c0_i32, %c0_i32_0 : i32, i32, i32, i32
  }
  func.func @transform_3(%arg0: i32, %arg1: i32) -> (i32, i32, i32) {
    %c0_i32 = arith.constant 0 : i32
    %c0_i32_0 = arith.constant 0 : i32
    %c0_i32_1 = arith.constant 0 : i32
    return %arg0, %c0_i32, %c0_i32_0 : i32, i32, i32
  }
}

</mosaic_0001>

<bundles_post_ra>
// kernel: tpu_custom_call.1
= control target key start
LH: loop header
LB: loop body
LE: loop exit
PB: predicated region body
PF: predicated region fallthrough
CT: control target
= control target key end

     0   :  { %9 = vsyncpa [#allocation10], 0  ;;  %s4333_s0 = inlined_call_operand.vmem [shape: f32[98], index: 0, kind: input, shape index: {}]   ;;  %s4334_s1 = inlined_call_operand.<no memory space> [shape: f32[1], index: 1, kind: input, shape index: {}]   ;;  %s4335_s2 = inlined_call_operand.hbm [shape: f32[2,4,16,16], index: 2, kind: input, shape index: {}]   ;;  %s4336_s3 = inlined_call_operand.hbm [shape: f32[2,16,16], index: 3, kind: output, shape index: {}]  }
   0x1   :  { %10 = vsyncpa [#allocation8], 0 }
   0x2   :  { %11 = vsyncpa [#allocation9], 0  ;;  %s17_s14 = sshll.u32 %s4333_s0, 4  ;;  %s27_s17 = sshll.u32 %s4335_s2, 4  ;;  %s18_s14 = int_to_ptr.vmem [resolvable:$true] %s17_s14  ;;  %s28_s17 = int_to_ptr.hbm [resolvable:$true] %s27_s17 }
   0x3   :  { %s2906_s18 = smov [#allocation7]   ;;  %s2907_s19 = smov [#allocation11]  }
   0x4   :  { %20 = dma.vmem_to_smem %s18_s14, 16, %s2906_s18, [#allocation10]  }
   0x5   :  { %s29_s20 = sshll.u32 %s2907_s19, 4  ;;  %s2908_s21 = smov 128   ;;  %s30_s20 = int_to_ptr.vmem [resolvable:$true] %s29_s20 }
   0x6   :  { %s2909_s22 = smov 8  }
   0x7   :  { %35 = dma.hbm_to_vmem [thread:$0]  %s28_s17, 2048, %s30_s20, [#allocation8], %s2908_s21, %s2908_s21, %s2909_s22  }
   0x8   :  { %2900 = dma.done.wait [#allocation10], 16  }
   0x9   :  { %2901 = vsyncadd [#allocation10], 4294967280 }
   0xa   :  { %2902 = dma.done.wait [#allocation8], 2048  }
   0xb   :  { %2903 = vsyncadd [#allocation8], 4294965248 }
   0xc   :  { %44 = sfence }
   0xd   :  { %v54_v0 = vld [vmem:[#allocation11 + $0x48] sm:$0xff]  ;;  %v56_v1 = vld [vmem:[#allocation11 + $0x58] sm:$0xff]  ;;  %vm61_vm0 = vcmask 130048   ;;  %v53_v8 = vld [vmem:[#allocation11 + $0x40] sm:$0xff]  ;;  %vm173_vm1 = vcmask 179200   ;;  %s2910_s0 = smov 3  }
   0xe   :  { %v58_v2 = vld [vmem:[#allocation11 + $0x68] sm:$0xff]  ;;  %v60_v3 = vld [vmem:[#allocation11 + $0x78] sm:$0xff]  ;;  %v84_v4 = vsel %vm61_vm0, %v56_v1, 0.0  ;;  %v111_v6 = vsel %vm61_vm0, %v54_v0, -inf  ;;  %v112_v7 = vsel %vm61_vm0, %v56_v1, -inf  ;;  %v55_v13 = vld [vmem:[#allocation11 + $0x50] sm:$0xff] }
   0xf   :  { %v2950_v5 = vsel %vm61_vm0, %v58_v2, 0.0  ;;  %v2955_v9 = vsel %vm61_vm0, %v60_v3, 0.0  ;;  %v113_v10 = vmax.f32 %v111_v6, %v112_v7  ;;  %v114_v11 = vsel %vm61_vm0, %v58_v2, -inf  ;;  %v57_v14 = vld [vmem:[#allocation11 + $0x60] sm:$0xff]  ;;  %v59_v15 = vld [vmem:[#allocation11 + $0x70] sm:$0xff]  ;;  %v46_v40 = vld [vmem:[#allocation11 + $0x8] sm:$0xff] }
  0x10   :  { %v116_v12 = vsel %vm61_vm0, %v60_v3, -inf  ;;  %v83_v16 = vsel %vm61_vm0, %v54_v0, 0.0  ;;  %v77_v17 = vsel %vm61_vm0, %v55_v13, 0.0  ;;  %v79_v18 = vsel %vm61_vm0, %v57_v14, 0.0  ;;  %v45_v20 = vld [vmem:[#allocation11] sm:$0xff]  ;;  %v47_v25 = vld [vmem:[#allocation11 + $0x10] sm:$0xff] }
  0x11   :  { %v81_v19 = vsel %vm61_vm0, %v59_v15, 0.0  ;;  %v115_v21 = vmax.f32 %v113_v10, %v114_v11  ;;  %v104_v22 = vsel %vm61_vm0, %v53_v8, -inf  ;;  %v105_v23 = vsel %vm61_vm0, %v55_v13, -inf  ;;  %v49_v26 = vld [vmem:[#allocation11 + $0x20] sm:$0xff]  ;;  %v51_v27 = vld [vmem:[#allocation11 + $0x30] sm:$0xff]  ;;  %v48_v41 = vld [vmem:[#allocation11 + $0x18] sm:$0xff] }
  0x12   :  { %v107_v24 = vsel %vm61_vm0, %v57_v14, -inf  ;;  %v106_v28 = vmax.f32 %v104_v22, %v105_v23  ;;  %v109_v29 = vsel %vm61_vm0, %v59_v15, -inf  ;;  %v76_v30 = vsel %vm61_vm0, %v53_v8, 0.0  ;;  %v50_v45 = vld [vmem:[#allocation11 + $0x28] sm:$0xff]  ;;  %v52_v46 = vld [vmem:[#allocation11 + $0x38] sm:$0xff]  ;;  %s2712_s2 = sld [smem:[#allocation7 + $0x32]] }
  0x13   :  { %v63_v31 = vsel %vm61_vm0, %v47_v25, 0.0  ;;  %v117_v32 = vmax.f32 %v115_v21, %v116_v12  ;;  %v65_v33 = vsel %vm61_vm0, %v49_v26, 0.0  ;;  %v67_v34 = vsel %vm61_vm0, %v51_v27, 0.0  ;;  %s2912_s23 = smov 127   ;;  %s2714_s24 = sld [smem:[#allocation7 + $0x33]] }
  0x14   :  { %v90_v35 = vsel %vm61_vm0, %v45_v20, -inf  ;;  %v108_v36 = vmax.f32 %v106_v28, %v107_v24  ;;  %v91_v37 = vsel %vm61_vm0, %v47_v25, -inf  ;;  %v93_v38 = vsel %vm61_vm0, %v49_v26, -inf  ;;  %s2722_s25 = sld [smem:[#allocation7 + $0x37]]  ;;  %s2913_s29 = smov 126  }
  0x15   :  { %v95_v39 = vsel %vm61_vm0, %v51_v27, -inf  ;;  %129 = vst.msk [vmem:[#allocation3 + $0x18] sm:$0xff] %vm61_vm0, %v117_v32  ;;  %v92_v42 = vmax.f32 %v90_v35, %v91_v37  ;;  %v62_v43 = vsel %vm61_vm0, %v45_v20, 0.0  ;;  %v78_v44 = vadd.f32 %v77_v17, %v76_v30  ;;  %s238_s26 = sld [smem:[#allocation7]]  ;;  %s2915_s7 = smov 124  }
  0x16   :  { %v69_v47 = vsel %vm61_vm0, %v46_v40, 0.0  ;;  %v110_v48 = vmax.f32 %v108_v36, %v109_v29  ;;  %v70_v49 = vsel %vm61_vm0, %v48_v41, 0.0  ;;  %v72_v50 = vsel %vm61_vm0, %v50_v45, 0.0  ;;  %s2716_s27 = sld [smem:[#allocation7 + $0x34]]  ;;  %s2916_s8 = smov 123  }
  0x17   :  { %v74_v51 = vsel %vm61_vm0, %v52_v46, 0.0  ;;  %v94_v52 = vmax.f32 %v92_v42, %v93_v38  ;;  %v80_v53 = vadd.f32 %v79_v18, %v78_v44  ;;  %v97_v54 = vsel %vm61_vm0, %v46_v40, -inf  ;;  %s2710_s28 = sld [smem:[#allocation7 + $0x31]]  ;;  %s2917_s10 = smov 122  }
  0x18   :  { %v98_v55 = vsel %vm61_vm0, %v48_v41, -inf  ;;  %128 = vst.msk [vmem:[#allocation3 + $0x10] sm:$0xff] %vm61_vm0, %v110_v48  ;;  %v100_v57 = vsel %vm61_vm0, %v50_v45, -inf  ;;  %v102_v58 = vsel %vm61_vm0, %v52_v46, -inf  ;;  %v64_v59 = vadd.f32 %v63_v31, %v62_v43  ;;  %s2718_s5 = sld [smem:[#allocation7 + $0x35]] }
  0x19   :  { %v99_v56 = vmax.f32 %v97_v54, %v98_v55  ;;  %v96_v60 = vmax.f32 %v94_v52, %v95_v39  ;;  %v82_v61 = vadd.f32 %v81_v19, %v80_v53  ;;  %v85_v62 = vadd.f32 %v84_v4, %v83_v16  ;;  %s2720_s6 = sld [smem:[#allocation7 + $0x36]] }
  0x1a   :  { %v71_v63 = vadd.f32 %v70_v49, %v69_v47  ;;  %v66_v1 = vadd.f32 %v65_v33, %v64_v59  ;;  %v2911_v11 = vmov 0.0   ;;  %vm176_vm2 = vcmask 177152   ;;  %s2711_s9 = sld [smem:[#allocation7 + $0x1]] }
  0x1b   :  { %v101_v0 = vmax.f32 %v99_v56, %v100_v57  ;;  %126 = vst.msk [vmem:[#allocation3] sm:$0xff] %vm61_vm0, %v96_v60  ;;  %v87_v2 = vadd.f32 %v2950_v5, %v85_v62  ;;  %vm203_vm3 = vcmask 154648   ;;  %v285_v22 = vstv %s2712_s2  ;;  %s2713_s11 = sld [smem:[#allocation7 + $0x2]] }
  0x1c   :  { %v73_v3 = vadd.f32 %v72_v50, %v71_v63  ;;  %v172_v6 = vld [vmem:[#allocation3 + $0x18] sm:$0xff]  ;;  %124 = vst.msk [vmem:[#allocation2 + $0x10] sm:$0xff] %vm61_vm0, %v82_v61  ;;  %v68_v8 = vadd.f32 %v67_v34, %v66_v1  ;;  %v337_v35 = vstv %s2714_s24  ;;  %v240_v38 = vstv %s238_s26  ;;  %s2715_s12 = sld [smem:[#allocation7 + $0x3]] }
  0x1d   :  { %v103_v7 = vmax.f32 %v101_v0, %v102_v58  ;;  %218 = vrot.lane.b32.xlu1 %v172_v6, %s2910_s0  ;;  %v89_v10 = vadd.f32 %v2955_v9, %v87_v2  ;;  %181 = vst.msk [vmem:[#allocation5] sm:$0xff] %vm173_vm1, %v2911_v11  ;;  %v3033_v39 = vstv %s2722_s25  ;;  %v229_v42 = vstv %s4334_s1  ;;  %s2914_s1 = smov 125   ;;  %s2717_s13 = sld [smem:[#allocation7 + $0x4]] }
  0x1e   :  { %v75_v4 = vadd.f32 %v74_v51, %v73_v3  ;;  %122 = vst.msk [vmem:[#allocation2] sm:$0xff] %vm61_vm0, %v68_v8  ;;  %v389_v46 = vstv %s2716_s27  ;;  %v249_v47 = vstv %s2710_s28  ;;  %s2719_s14 = sld [smem:[#allocation7 + $0x5]] }
  0x1f   :  { %127 = vst.msk [vmem:[#allocation3 + $0x8] sm:$0xff] %vm61_vm0, %v103_v7  ;;  %v171_v12 = vld [vmem:[#allocation3 + $0x10] sm:$0xff]  ;;  %s2721_s15 = sld [smem:[#allocation7 + $0x6]] }
  0x20   :  { %216 = vrot.lane.b32.xlu0 %v171_v12, %s2910_s0  ;;  %125 = vst.msk [vmem:[#allocation2 + $0x18] sm:$0xff] %vm61_vm0, %v89_v10  ;;  %s2725_s16 = sld [smem:[#allocation7 + $0x8]] }
  0x21   :  { %123 = vst.msk [vmem:[#allocation2 + $0x8] sm:$0xff] %vm61_vm0, %v75_v4  ;;  %s2726_s17 = sld [smem:[#allocation7 + $0x39]] }
  0x22   :  { %v169_v5 = vld [vmem:[#allocation3] sm:$0xff]  ;;  %182 = vst.msk [vmem:[#allocation5 + $0x8] sm:$0xff] %vm173_vm1, %v2911_v11  ;;  %s2727_s18 = sld [smem:[#allocation7 + $0x9]] }
  0x23   :  { %212 = vrot.lane.b32.xlu2 %v169_v5, %s2910_s0  ;;  %v163_v9 = vld [vmem:[#allocation2 + $0x10] sm:$0xff]  ;;  %174 = vst.msk [vmem:[#allocation4] sm:$0xff] %vm173_vm1, %v2911_v11  ;;  %s2728_s19 = sld [smem:[#allocation7 + $0x3a]] }
  0x24   :  { %v167_v13 = vmul.f32 0.25, %v163_v9  ;;  %175 = vst.msk [vmem:[#allocation4 + $0x8] sm:$0xff] %vm173_vm1, %v2911_v11  ;;  %s2729_s20 = sld [smem:[#allocation7 + $0xa]] }
  0x25   :  { %178 = vst.msk [vmem:[#allocation4 + $0x18] sm:$0xff] %vm173_vm1, %v2911_v11  ;;  %v161_v14 = vld [vmem:[#allocation2] sm:$0xff]  ;;  %s2731_s2 = sld [smem:[#allocation7 + $0xb]] }
  0x26   :  { %195 = vrot.lane.b32.xlu1 %v167_v13, %s2910_s0  ;;  %179 = vst.msk [vmem:[#allocation4 + $0x20] sm:$0xff] %vm173_vm1, %v2911_v11  ;;  %v165_v15 = vmul.f32 0.25, %v161_v14  ;;  %v170_v17 = vld [vmem:[#allocation3 + $0x8] sm:$0xff]  ;;  %v493_v14 = vstv %s2720_s6  ;;  %s2732_s24 = sld [smem:[#allocation7 + $0x3c]] }
  0x27   :  { %v164_v16 = vld [vmem:[#allocation2 + $0x18] sm:$0xff]  ;;  %184 = vst.msk [vmem:[#allocation5 + $0x18] sm:$0xff] %vm173_vm1, %v2911_v11  ;;  %s2733_s25 = sld [smem:[#allocation7 + $0xc]] }
  0x28   :  { %185 = vst.msk [vmem:[#allocation5 + $0x20] sm:$0xff] %vm173_vm1, %v2911_v11  ;;  %191 = vrot.lane.b32.xlu0 %v165_v15, %s2910_s0  ;;  %v168_v18 = vmul.f32 0.25, %v164_v16  ;;  %v162_v19 = vld [vmem:[#allocation2 + $0x8] sm:$0xff]  ;;  %s2723_s26 = sld [smem:[#allocation7 + $0x7]] }
  0x29   :  { %v166_v20 = vmul.f32 0.25, %v162_v19  ;;  %183 = vst.msk [vmem:[#allocation5 + $0x10] sm:$0x3f] %vm176_vm2, %v2911_v11  ;;  %s2734_s27 = sld [smem:[#allocation7 + $0x3d]] }
  0x2a   :  { %177 = vst.msk [vmem:[#allocation4 + $0x10] sm:$0x3f] %vm176_vm2, %v2911_v11  ;;  %s2724_s28 = sld [smem:[#allocation7 + $0x38]] }
  0x2b   :  { %214 = vrot.lane.b32.xlu2 %v170_v17, %s2910_s0  ;;  %180 = vst.msk [vmem:[#allocation4 + $0x28] sm:$0x3f] %vm176_vm2, %v2911_v11  ;;  %s2735_s30 = sld [smem:[#allocation7 + $0xd]] }
  0x2c   :  { %186 = vst.msk [vmem:[#allocation5 + $0x28] sm:$0x3f] %vm176_vm2, %v2911_v11  ;;  %v441_v11 = vstv %s2718_s5  ;;  %s2736_s4 = sld [smem:[#allocation7 + $0x3e]] }
  0x2d   :  { %s2739_s5 = sld [smem:[#allocation7 + $0xf]] }
  0x2e   :  { %197 = vrot.lane.b32.xlu1 %v168_v18, %s2910_s0  ;;  %s2740_s6 = sld [smem:[#allocation7 + $0x40]] }
  0x30   :  { %193 = vrot.lane.b32.xlu0 %v166_v20, %s2910_s0  ;;  %v260_v20 = vstv %s2711_s9  ;;  %s2730_s0 = sld [smem:[#allocation7 + $0x3b]] }
  0x31   :  { %s2741_s9 = sld [smem:[#allocation7 + $0x10]] }
  0x7d   :  { %v213_v21 = vpop.permute.xlu2 %212 }
  0x7e   :  { %224 = vst.msk [vmem:[#allocation5 + $0x3] sm:$0xff] %vm203_vm3, %v213_v21 }
  0x85   :  { %v3011_v23 = vld [vmem:[#allocation5] sm:$0xff]  ;;  %v215_v24 = vpop.permute.xlu2 %214 }
  0x86   :  { %225 = vst.msk [vmem:[#allocation5 + $0xb] sm:$0xff] %vm203_vm3, %v215_v24  ;;  %v286_v25 = vmul.f32 %v285_v22, %v3011_v23  ;;  %v338_v52 = vmul.f32 %v337_v35, %v3011_v23  ;;  %v390_v54 = vmul.f32 %v389_v46, %v3011_v23  ;;  %v250_v57 = vmul.f32 %v249_v47, %v3011_v23 }
  0x87   :  { %v442_v9 = vmul.f32 %v441_v11, %v3011_v23  ;;  %v494_v17 = vmul.f32 %v493_v14, %v3011_v23  ;;  %v546_v18 = vmul.f32 %v3033_v39, %v3011_v23  ;;  %v312_v23 = vstv %s2713_s11  ;;  %s2742_s11 = sld [smem:[#allocation7 + $0x41]] }
  0x88   :  { %294 = vrot.lane.b32.xlu0 %v286_v25, %s2912_s23 }
  0x8d   :  { %v3016_v26 = vld [vmem:[#allocation5 + $0x8] sm:$0xff] }
  0x8e   :  { %v287_v27 = vmul.f32 %v285_v22, %v3016_v26  ;;  %v339_v56 = vmul.f32 %v337_v35, %v3016_v26  ;;  %v251_v8 = vmul.f32 %v249_v47, %v3016_v26  ;;  %v391_v12 = vmul.f32 %v389_v46, %v3016_v26 }
  0x8f   :  { %v219_v28 = vpop.permute.xlu1 %218  ;;  %v443_v5 = vmul.f32 %v441_v11, %v3016_v26  ;;  %v495_v19 = vmul.f32 %v493_v14, %v3016_v26  ;;  %v547_v25 = vmul.f32 %v3033_v39, %v3016_v26 }
  0x90   :  { %296 = vrot.lane.b32.xlu1 %v287_v27, %s2912_s23  ;;  %227 = vst.msk [vmem:[#allocation5 + $0x23] sm:$0xff] %vm203_vm3, %v219_v28 }
  0x92   :  { %v217_v29 = vpop.permute.xlu0 %216 }
  0x93   :  { %226 = vst.msk [vmem:[#allocation5 + $0x1b] sm:$0xff] %vm203_vm3, %v217_v29  ;;  %v364_v29 = vstv %s2715_s12  ;;  %s2743_s12 = sld [smem:[#allocation7 + $0x11]] }
  0x98   :  { %v196_v30 = vpop.permute.xlu1 %195 }
  0x99   :  { %206 = vst.msk [vmem:[#allocation4 + $0x1b] sm:$0xff] %vm203_vm3, %v196_v30 }
  0x9a   :  { %v3023_v31 = vld [vmem:[#allocation5 + $0x18] sm:$0xff]  ;;  %v3025_v32 = vld [vmem:[#allocation5 + $0x20] sm:$0xff]  ;;  %v192_v33 = vpop.permute.xlu0 %191 }
  0x9b   :  { %v288_v34 = vmul.f32 %v285_v22, %v3023_v31  ;;  %204 = vst.msk [vmem:[#allocation4 + $0x3] sm:$0xff] %vm203_vm3, %v192_v33  ;;  %v340_v36 = vmul.f32 %v337_v35, %v3023_v31  ;;  %v289_v37 = vmul.f32 %v285_v22, %v3025_v32  ;;  %v3038_v40 = vmul.f32 %v3033_v39, %v3025_v32 }
  0x9c   :  { %v3042_v41 = vmul.f32 %v3033_v39, %v3023_v31  ;;  %v252_v48 = vmul.f32 %v249_v47, %v3023_v31  ;;  %v253_v62 = vmul.f32 %v249_v47, %v3025_v32  ;;  %v341_v1 = vmul.f32 %v337_v35, %v3025_v32 }
  0x9d   :  { %298 = vrot.lane.b32.xlu2 %v288_v34, %s2912_s23  ;;  %350 = vrot.lane.b32.xlu1 %v340_v36, %s2913_s29  ;;  %v393_v3 = vmul.f32 %v389_v46, %v3025_v32  ;;  %v392_v7 = vmul.f32 %v389_v46, %v3023_v31  ;;  %v444_v13 = vmul.f32 %v441_v11, %v3023_v31  ;;  %v416_v35 = vstv %s2717_s13  ;;  %s2744_s13 = sld [smem:[#allocation7 + $0x42]] }
  0x9e   :  { %300 = vrot.lane.b32.xlu0 %v289_v37, %s2912_s23  ;;  %v496_v15 = vmul.f32 %v493_v14, %v3023_v31  ;;  %v445_v16 = vmul.f32 %v441_v11, %v3025_v32  ;;  %v497_v22 = vmul.f32 %v493_v14, %v3025_v32  ;;  %v468_v39 = vstv %s2719_s14  ;;  %v3191_v11 = vld [vmem:[#allocation5 + $0x9] sm:$0xff]  ;;  %s2745_s14 = sld [smem:[#allocation7 + $0x12]] }
  0x9f   :  { %v520_v47 = vstv %s2721_s15  ;;  %s2746_s15 = sld [smem:[#allocation7 + $0x43]] }
  0xa0   :  { %v3047_v43 = vld [vmem:[#allocation4 + $0x18] sm:$0xff]  ;;  %v198_v44 = vpop.permute.xlu1 %197 }
  0xa1   :  { %v243_v45 = vmul.f32 %v240_v38, %v3047_v43  ;;  %207 = vst.msk [vmem:[#allocation4 + $0x23] sm:$0xff] %vm203_vm3, %v198_v44  ;;  %v263_v21 = vmul.f32 %v260_v20, %v3047_v43  ;;  %v315_v28 = vmul.f32 %v312_v23, %v3047_v43  ;;  %v419_v37 = vmul.f32 %v416_v35, %v3047_v43 }
  0xa2   :  { %v3052_v50 = vld [vmem:[#allocation4] sm:$0xff]  ;;  %v194_v51 = vpop.permute.xlu0 %193 }
  0xa3   :  { %v247_v49 = vadd.f32 %v243_v45, %v229_v42  ;;  %v241_v53 = vmul.f32 %v240_v38, %v3052_v50  ;;  %205 = vst.msk [vmem:[#allocation4 + $0xb] sm:$0xff] %vm203_vm3, %v194_v51  ;;  %v313_v27 = vmul.f32 %v312_v23, %v3052_v50  ;;  %v261_v30 = vmul.f32 %v260_v20, %v3052_v50 }
  0xa4   :  { %v365_v32 = vmul.f32 %v364_v29, %v3052_v50  ;;  %v469_v44 = vmul.f32 %v468_v39, %v3052_v50  ;;  %v471_v45 = vmul.f32 %v468_v39, %v3047_v43  ;;  %v521_v51 = vmul.f32 %v520_v47, %v3052_v50 }
  0xa5   :  { %v3058_v55 = vadd.f32 %v252_v48, %v247_v49  ;;  %346 = vrot.lane.b32.xlu2 %v338_v52, %s2913_s29  ;;  %v245_v58 = vadd.f32 %v241_v53, %v229_v42  ;;  %398 = vrot.lane.b32.xlu1 %v390_v54, %s2914_s1  ;;  %v417_v48 = vmul.f32 %v416_v35, %v3052_v50 }
  0xa6   :  { %348 = vrot.lane.b32.xlu0 %v339_v56, %s2913_s29 }
  0xa7   :  { %v3065_v59 = vadd.f32 %v250_v57, %v245_v58 }
  0xa8   :  { %v3067_v60 = vld [vmem:[#allocation4 + $0x20] sm:$0xff] }
  0xa9   :  { %v244_v61 = vmul.f32 %v240_v38, %v3067_v60  ;;  %v316_v31 = vmul.f32 %v312_v23, %v3067_v60  ;;  %v264_v26 = vmul.f32 %v260_v20, %v3067_v60  ;;  %v368_v34 = vmul.f32 %v364_v29, %v3067_v60 }
  0xaa   :  { %v3071_v0 = vld [vmem:[#allocation4 + $0x8] sm:$0xff]  ;;  %v472_v49 = vmul.f32 %v468_v39, %v3067_v60  ;;  %v420_v53 = vmul.f32 %v416_v35, %v3067_v60  ;;  %v524_v56 = vmul.f32 %v520_v47, %v3067_v60 }
  0xab   :  { %v248_v63 = vadd.f32 %v244_v61, %v229_v42  ;;  %v242_v2 = vmul.f32 %v240_v38, %v3071_v0  ;;  %v262_v24 = vmul.f32 %v260_v20, %v3071_v0  ;;  %v366_v33 = vmul.f32 %v364_v29, %v3071_v0  ;;  %v3211_v20 = vld [vmem:[#allocation5 + $0x21] sm:$0xff] }
  0xac   :  { %v314_v36 = vmul.f32 %v312_v23, %v3071_v0  ;;  %v418_v38 = vmul.f32 %v416_v35, %v3071_v0  ;;  %v522_v54 = vmul.f32 %v520_v47, %v3071_v0  ;;  %v470_v61 = vmul.f32 %v468_v39, %v3071_v0 }
  0xad   :  { %v3076_v6 = vadd.f32 %v253_v62, %v248_v63  ;;  %352 = vrot.lane.b32.xlu2 %v341_v1, %s2913_s29  ;;  %v246_v10 = vadd.f32 %v242_v2, %v229_v42  ;;  %404 = vrot.lane.b32.xlu1 %v393_v3, %s2914_s1  ;;  %v367_v42 = vmul.f32 %v364_v29, %v3047_v43  ;;  %v3173_v63 = vld [vmem:[#allocation4 + $0x19] sm:$0xff]  ;;  %v3177_v2 = vld [vmem:[#allocation4 + $0x9] sm:$0xff]  ;;  %v600_v0 = vstv %s2725_s16  ;;  %s2747_s16 = sld [smem:[#allocation7 + $0x13]] }
  0xae   :  { %402 = vrot.lane.b32.xlu0 %v392_v7, %s2914_s1  ;;  %v523_v3 = vmul.f32 %v520_v47, %v3047_v43  ;;  %v603_v7 = vmul.f32 %v600_v0, %v3173_v63  ;;  %v625_v43 = vstv %s2726_s17  ;;  %s2737_s17 = sld [smem:[#allocation7 + $0xe]] }
  0xaf   :  { %v3083_v4 = vadd.f32 %v251_v8, %v246_v10  ;;  %v3187_v8 = vld [vmem:[#allocation4 + $0x1] sm:$0xff] }
  0xb5   :  { %400 = vrot.lane.b32.xlu2 %v391_v12, %s2914_s1  ;;  %452 = vrot.lane.b32.xlu1 %v443_v5, %s2915_s7  ;;  %v3195_v5 = vld [vmem:[#allocation5 + $0x1] sm:$0xff] }
  0xb6   :  { %450 = vrot.lane.b32.xlu0 %v442_v9, %s2915_s7  ;;  %v601_v9 = vmul.f32 %v600_v0, %v3187_v8  ;;  %v626_v14 = vmul.f32 %v625_v43, %v3195_v5 }
  0xbd   :  { %454 = vrot.lane.b32.xlu2 %v444_v13, %s2915_s7  ;;  %506 = vrot.lane.b32.xlu1 %v496_v15, %s2916_s8  ;;  %v627_v13 = vmul.f32 %v625_v43, %v3191_v11 }
  0xbe   :  { %456 = vrot.lane.b32.xlu0 %v445_v16, %s2915_s7  ;;  %v3205_v16 = vld [vmem:[#allocation4 + $0x21] sm:$0xff] }
  0xc5   :  { %502 = vrot.lane.b32.xlu2 %v494_v17, %s2916_s8  ;;  %554 = vrot.lane.b32.xlu1 %v546_v18, %s2917_s10 }
  0xc6   :  { %504 = vrot.lane.b32.xlu0 %v495_v19, %s2916_s8  ;;  %v652_v19 = vstv %s2727_s18  ;;  %s2738_s18 = sld [smem:[#allocation7 + $0x3f]] }
  0xc7   :  { %v654_v35 = vmul.f32 %v652_v19, %v3177_v2 }
  0xcd   :  { %508 = vrot.lane.b32.xlu2 %v497_v22, %s2916_s8  ;;  %273 = vrot.lane.b32.xlu1 %v263_v21, %s2912_s23  ;;  %v604_v21 = vmul.f32 %v600_v0, %v3205_v16  ;;  %v653_v22 = vmul.f32 %v652_v19, %v3187_v8 }
  0xce   :  { %271 = vrot.lane.b32.xlu0 %v262_v24, %s2912_s23  ;;  %v629_v24 = vmul.f32 %v625_v43, %v3211_v20 }
  0xd5   :  { %556 = vrot.lane.b32.xlu2 %v547_v25, %s2917_s10  ;;  %321 = vrot.lane.b32.xlu1 %v313_v27, %s2913_s29  ;;  %v3221_v25 = vld [vmem:[#allocation5 + $0x19] sm:$0xff] }
  0xd6   :  { %325 = vrot.lane.b32.xlu0 %v315_v28, %s2913_s29  ;;  %v628_v29 = vmul.f32 %v625_v43, %v3221_v25 }
  0xdd   :  { %269 = vrot.lane.b32.xlu2 %v261_v30, %s2912_s23  ;;  %327 = vrot.lane.b32.xlu1 %v316_v31, %s2913_s29  ;;  %v656_v30 = vmul.f32 %v652_v19, %v3205_v16  ;;  %v655_v31 = vmul.f32 %v652_v19, %v3173_v63 }
  0xde   :  { %373 = vrot.lane.b32.xlu0 %v365_v32, %s2914_s1 }
  0xe5   :  { %275 = vrot.lane.b32.xlu2 %v264_v26, %s2912_s23  ;;  %375 = vrot.lane.b32.xlu1 %v366_v33, %s2914_s1 }
  0xe6   :  { %379 = vrot.lane.b32.xlu0 %v368_v34, %s2914_s1  ;;  %v677_v34 = vstv %s2728_s19  ;;  %s2748_s19 = sld [smem:[#allocation7 + $0x44]] }
  0xed   :  { %323 = vrot.lane.b32.xlu2 %v314_v36, %s2913_s29  ;;  %429 = vrot.lane.b32.xlu1 %v419_v37, %s2915_s7  ;;  %v680_v36 = vmul.f32 %v677_v34, %v3221_v25  ;;  %v679_v37 = vmul.f32 %v677_v34, %v3191_v11 }
  0xee   :  { %427 = vrot.lane.b32.xlu0 %v418_v38, %s2915_s7 }
  0xf5   :  { %377 = vrot.lane.b32.xlu2 %v367_v42, %s2914_s1  ;;  %477 = vrot.lane.b32.xlu1 %v469_v44, %s2916_s8  ;;  %v704_v44 = vstv %s2729_s20  ;;  %s2749_s20 = sld [smem:[#allocation7 + $0x14]] }
  0xf6   :  { %481 = vrot.lane.b32.xlu0 %v471_v45, %s2916_s8  ;;  %v678_v45 = vmul.f32 %v677_v34, %v3195_v5  ;;  %v706_v47 = vmul.f32 %v704_v44, %v3177_v2  ;;  %v707_v43 = vmul.f32 %v704_v44, %v3173_v63 }
  0xf7   :  { %v3141_v46 = vpop.permute.xlu2 %298 }
  0xfa   :  { %v3161_v58 = vpop.permute.xlu0 %294 }
  0xfd   :  { %425 = vrot.lane.b32.xlu2 %v417_v48, %s2915_s7  ;;  %483 = vrot.lane.b32.xlu1 %v472_v49, %s2916_s8  ;;  %v705_v48 = vmul.f32 %v704_v44, %v3187_v8 }
  0xfe   :  { %529 = vrot.lane.b32.xlu0 %v521_v51, %s2917_s10 }
  0xff   :  { %v3149_v52 = vpop.permute.xlu2 %346 }
 0x102   :  { %v3159_v50 = vpop.permute.xlu1 %296 }
 0x105   :  { %431 = vrot.lane.b32.xlu2 %v420_v53, %s2915_s7  ;;  %531 = vrot.lane.b32.xlu1 %v522_v54, %s2917_s10  ;;  %v729_v54 = vstv %s2730_s0  ;;  %s2750_s0 = sld [smem:[#allocation7 + $0x45]] }
 0x106   :  { %535 = vrot.lane.b32.xlu0 %v524_v56, %s2917_s10  ;;  %v681_v56 = vmul.f32 %v677_v34, %v3211_v20 }
 0x107   :  { %v3157_v57 = vpop.permute.xlu2 %352 }
 0x10d   :  { %479 = vrot.lane.b32.xlu2 %v470_v61, %s2916_s8  ;;  %560 = vrot.lane.b32.xlu1 %v3038_v40, %s2917_s10  ;;  %v602_v40 = vmul.f32 %v600_v0, %v3177_v2  ;;  %v730_v61 = vmul.f32 %v729_v54, %v3195_v5  ;;  %v708_v0 = vmul.f32 %v704_v44, %v3205_v16  ;;  %v781_v44 = vstv %s2732_s24  ;;  %s2754_s24 = sld [smem:[#allocation7 + $0x47]] }
 0x10e   :  { %558 = vrot.lane.b32.xlu0 %v3042_v41, %s2917_s10 }
 0x10f   :  { %v3169_v60 = vpop.permute.xlu2 %400  ;;  %v3171_v62 = vpop.permute.xlu1 %350 }
 0x110   :  { %v3175_v1 = vpop.permute.xlu0 %300 }
 0x115   :  { %533 = vrot.lane.b32.xlu2 %v523_v3, %s2917_s10  ;;  %613 = vrot.lane.b32.xlu1 %v603_v7, %s2912_s23 }
 0x116   :  { %611 = vrot.lane.b32.xlu0 %v602_v40, %s2912_s23 }
 0x117   :  { %v3185_v41 = vpop.permute.xlu2 %454  ;;  %v3189_v10 = vpop.permute.xlu1 %398 }
 0x118   :  { %v3193_v12 = vpop.permute.xlu0 %348 }
 0x11d   :  { %609 = vrot.lane.b32.xlu2 %v601_v9, %s2912_s23  ;;  %636 = vrot.lane.b32.xlu1 %v627_v13, %s2912_s23  ;;  %v733_v9 = vmul.f32 %v729_v54, %v3211_v20  ;;  %v732_v13 = vmul.f32 %v729_v54, %v3221_v25 }
 0x11e   :  { %634 = vrot.lane.b32.xlu0 %v626_v14, %s2912_s23 }
 0x11f   :  { %v3203_v15 = vpop.permute.xlu2 %502  ;;  %v3207_v17 = vpop.permute.xlu1 %404 }
 0x120   :  { %v3209_v18 = vpop.permute.xlu0 %402 }
 0x125   :  { %615 = vrot.lane.b32.xlu2 %v604_v21, %s2912_s23  ;;  %661 = vrot.lane.b32.xlu1 %v653_v22, %s2913_s29  ;;  %v756_v22 = vstv %s2731_s2  ;;  %s2753_s2 = sld [smem:[#allocation7 + $0x16]] }
 0x126   :  { %640 = vrot.lane.b32.xlu0 %v629_v24, %s2912_s23  ;;  %v731_v24 = vmul.f32 %v729_v54, %v3191_v11 }
 0x127   :  { %v3219_v23 = vpop.permute.xlu2 %508  ;;  %v3223_v27 = vpop.permute.xlu1 %452 }
 0x128   :  { %v3225_v28 = vpop.permute.xlu0 %450 }
 0x12d   :  { %638 = vrot.lane.b32.xlu2 %v628_v29, %s2912_s23  ;;  %667 = vrot.lane.b32.xlu1 %v656_v30, %s2913_s29  ;;  %v759_v30 = vmul.f32 %v756_v22, %v3173_v63 }
 0x12e   :  { %665 = vrot.lane.b32.xlu0 %v655_v31, %s2913_s29  ;;  %v758_v31 = vmul.f32 %v756_v22, %v3177_v2 }
 0x12f   :  { %v3233_v32 = vpop.permute.xlu2 %556  ;;  %v3235_v26 = vpop.permute.xlu1 %506 }
 0x130   :  { %v3237_v33 = vpop.permute.xlu0 %456 }
 0x135   :  { %663 = vrot.lane.b32.xlu2 %v654_v35, %s2913_s29  ;;  %690 = vrot.lane.b32.xlu1 %v680_v36, %s2913_s29 }
 0x136   :  { %688 = vrot.lane.b32.xlu0 %v679_v37, %s2913_s29 }
 0x137   :  { %v270_v38 = vpop.permute.xlu2 %269  ;;  %v3245_v39 = vpop.permute.xlu1 %554 }
 0x138   :  { %v3247_v42 = vpop.permute.xlu0 %504  ;;  %v281_v29 = vadd.f32 %v270_v38, %v3065_v59  ;;  %v757_v38 = vmul.f32 %v756_v22, %v3187_v8 }
 0x13a   :  { %v306_v35 = vadd.f32 %v3161_v58, %v281_v29 }
 0x13d   :  { %686 = vrot.lane.b32.xlu2 %v678_v45, %s2913_s29  ;;  %715 = vrot.lane.b32.xlu1 %v706_v47, %s2914_s1  ;;  %v783_v47 = vmul.f32 %v781_v44, %v3191_v11 }
 0x13e   :  { %713 = vrot.lane.b32.xlu0 %v705_v48, %s2914_s1  ;;  %v782_v48 = vmul.f32 %v781_v44, %v3195_v5 }
 0x13f   :  { %v276_v49 = vpop.permute.xlu2 %275  ;;  %v274_v51 = vpop.permute.xlu1 %273 }
 0x140   :  { %v272_v53 = vpop.permute.xlu0 %271 }
 0x141   :  { %v282_v59 = vadd.f32 %v272_v53, %v3083_v4  ;;  %v284_v4 = vadd.f32 %v276_v49, %v3076_v6 }
 0x143   :  { %v307_v58 = vadd.f32 %v3159_v50, %v282_v59  ;;  %v309_v50 = vadd.f32 %v3175_v1, %v284_v4 }
 0x145   :  { %692 = vrot.lane.b32.xlu2 %v681_v56, %s2913_s29  ;;  %738 = vrot.lane.b32.xlu1 %v730_v61, %s2914_s1 }
 0x146   :  { %719 = vrot.lane.b32.xlu0 %v708_v0, %s2914_s1 }
 0x147   :  { %v324_v3 = vpop.permute.xlu2 %323  ;;  %v322_v7 = vpop.permute.xlu1 %321 }
 0x148   :  { %v326_v40 = vpop.permute.xlu0 %325  ;;  %v333_v45 = vadd.f32 %v322_v7, %v306_v35  ;;  %v334_v53 = vadd.f32 %v324_v3, %v307_v58 }
 0x14a   :  { %v358_v54 = vadd.f32 %v3149_v52, %v333_v45  ;;  %v359_v29 = vadd.f32 %v3193_v12, %v334_v53 }
 0x14d   :  { %717 = vrot.lane.b32.xlu2 %v707_v43, %s2914_s1  ;;  %744 = vrot.lane.b32.xlu1 %v733_v9, %s2914_s1  ;;  %v808_v43 = vstv %s2733_s25  ;;  %v283_v9 = vadd.f32 %v274_v51, %v3058_v55  ;;  %s2755_s25 = sld [smem:[#allocation7 + $0x17]] }
 0x14e   :  { %742 = vrot.lane.b32.xlu0 %v732_v13, %s2914_s1  ;;  %v760_v13 = vmul.f32 %v756_v22, %v3205_v16  ;;  %v812_v35 = vmul.f32 %v808_v43, %v3205_v16  ;;  %v811_v45 = vmul.f32 %v808_v43, %v3173_v63  ;;  %v810_v4 = vmul.f32 %v808_v43, %v3177_v2 }
 0x14f   :  { %v3267_v14 = vpop.permute.xlu2 %377  ;;  %v328_v19 = vpop.permute.xlu1 %327  ;;  %v308_v6 = vadd.f32 %v3141_v46, %v283_v9 }
 0x150   :  { %v374_v21 = vpop.permute.xlu0 %373  ;;  %v336_v55 = vadd.f32 %v328_v19, %v309_v50 }
 0x151   :  { %v385_v61 = vadd.f32 %v374_v21, %v358_v54  ;;  %v785_v21 = vmul.f32 %v781_v44, %v3211_v20  ;;  %v335_v3 = vadd.f32 %v326_v40, %v308_v6  ;;  %v833_v54 = vstv %s2734_s27  ;;  %s2757_s27 = sld [smem:[#allocation7 + $0x18]] }
 0x153   :  { %v410_v52 = vadd.f32 %v3189_v10, %v385_v61  ;;  %v360_v19 = vadd.f32 %v3171_v62, %v335_v3  ;;  %v580_v62 = vstv %s2723_s26  ;;  %s2756_s26 = sld [smem:[#allocation7 + $0x48]] }
 0x154   :  { %v581_v53 = vmul.f32 %v580_v62, %v3187_v8 }
 0x155   :  { %740 = vrot.lane.b32.xlu2 %v731_v24, %s2914_s1  ;;  %769 = vrot.lane.b32.xlu1 %v759_v30, %s2915_s7  ;;  %v809_v24 = vmul.f32 %v808_v43, %v3187_v8  ;;  %v361_v30 = vadd.f32 %v3157_v57, %v336_v55 }
 0x156   :  { %767 = vrot.lane.b32.xlu0 %v758_v31, %s2915_s7  ;;  %v784_v31 = vmul.f32 %v781_v44, %v3221_v25 }
 0x157   :  { %v426_v34 = vpop.permute.xlu2 %425  ;;  %v376_v36 = vpop.permute.xlu1 %375 }
 0x158   :  { %v380_v37 = vpop.permute.xlu0 %379  ;;  %v437_v49 = vadd.f32 %v426_v34, %v410_v52  ;;  %v386_v51 = vadd.f32 %v376_v36, %v359_v29 }
 0x159   :  { %v388_v36 = vadd.f32 %v380_v37, %v361_v30 }
 0x15a   :  { %v462_v12 = vadd.f32 %v3225_v28, %v437_v49  ;;  %v411_v46 = vadd.f32 %v3169_v60, %v386_v51  ;;  %v387_v28 = vadd.f32 %v3267_v14, %v360_v19  ;;  %v589_v14 = vstv %s2724_s28  ;;  %s2758_s28 = sld [smem:[#allocation7 + $0x49]] }
 0x15b   :  { %v413_v59 = vadd.f32 %v3207_v17, %v388_v36  ;;  %v836_v17 = vmul.f32 %v833_v54, %v3221_v25  ;;  %v582_v49 = vmul.f32 %v580_v62, %v3177_v2  ;;  %v591_v51 = vmul.f32 %v589_v14, %v3191_v11 }
 0x15c   :  { %v885_v19 = vstv %s2736_s4  ;;  %v837_v36 = vmul.f32 %v833_v54, %v3211_v20  ;;  %s2760_s4 = sld [smem:[#allocation7 + $0x4a]] }
 0x15d   :  { %765 = vrot.lane.b32.xlu2 %v757_v38, %s2915_s7  ;;  %792 = vrot.lane.b32.xlu1 %v783_v47, %s2915_s7  ;;  %v412_v47 = vadd.f32 %v3209_v18, %v387_v28  ;;  %v590_v18 = vmul.f32 %v589_v14, %v3195_v5  ;;  %v886_v28 = vmul.f32 %v885_v19, %v3195_v5 }
 0x15e   :  { %790 = vrot.lane.b32.xlu0 %v782_v48, %s2915_s7 }
 0x15f   :  { %v432_v56 = vpop.permute.xlu2 %431  ;;  %v430_v0 = vpop.permute.xlu1 %429 }
 0x160   :  { %v428_v7 = vpop.permute.xlu0 %427  ;;  %v440_v58 = vadd.f32 %v432_v56, %v413_v59 }
 0x161   :  { %v438_v40 = vadd.f32 %v428_v7, %v411_v46 }
 0x162   :  { %v465_v56 = vadd.f32 %v3237_v33, %v440_v58  ;;  %v887_v58 = vmul.f32 %v885_v19, %v3191_v11 }
 0x163   :  { %v463_v37 = vadd.f32 %v3223_v27, %v438_v40  ;;  %v835_v27 = vmul.f32 %v833_v54, %v3191_v11  ;;  %v592_v40 = vmul.f32 %v589_v14, %v3221_v25  ;;  %v965_v11 = vstv %s2740_s6  ;;  %s2751_s6 = sld [smem:[#allocation7 + $0x15]] }
 0x165   :  { %771 = vrot.lane.b32.xlu2 %v760_v13, %s2915_s7  ;;  %817 = vrot.lane.b32.xlu1 %v809_v24, %s2916_s8 }
 0x166   :  { %796 = vrot.lane.b32.xlu0 %v785_v21, %s2915_s7  ;;  %v860_v21 = vstv %s2735_s30  ;;  %s2759_s30 = sld [smem:[#allocation7 + $0x19]] }
 0x167   :  { %v480_v10 = vpop.permute.xlu2 %479  ;;  %v478_v22 = vpop.permute.xlu1 %477  ;;  %v862_v55 = vmul.f32 %v860_v21, %v3177_v2  ;;  %v861_v3 = vmul.f32 %v860_v21, %v3187_v8  ;;  %v583_v8 = vmul.f32 %v580_v62, %v3173_v63 }
 0x168   :  { %v482_v1 = vpop.permute.xlu0 %481  ;;  %v489_v34 = vadd.f32 %v478_v22, %v462_v12  ;;  %v490_v61 = vadd.f32 %v480_v10, %v463_v37 }
 0x16a   :  { %v514_v60 = vadd.f32 %v3203_v15, %v489_v34  ;;  %v439_v15 = vadd.f32 %v430_v0, %v412_v47  ;;  %v515_v43 = vadd.f32 %v3247_v42, %v490_v61  ;;  %v834_v42 = vmul.f32 %v833_v54, %v3195_v5  ;;  %v3374_v54 = vld [vmem:[#allocation4 + $0x1a] sm:$0xff] }
 0x16b   :  { %v863_v5 = vmul.f32 %v860_v21, %v3173_v63  ;;  %v3378_v63 = vld [vmem:[#allocation4 + $0xa] sm:$0xff] }
 0x16d   :  { %794 = vrot.lane.b32.xlu2 %v784_v31, %s2915_s7  ;;  %823 = vrot.lane.b32.xlu1 %v812_v35, %s2916_s8 }
 0x16e   :  { %821 = vrot.lane.b32.xlu0 %v811_v45, %s2916_s8 }
 0x16f   :  { %v534_v57 = vpop.permute.xlu2 %533  ;;  %v484_v44 = vpop.permute.xlu1 %483 }
 0x170   :  { %v530_v38 = vpop.permute.xlu0 %529  ;;  %v492_v24 = vadd.f32 %v484_v44, %v465_v56 }
 0x171   :  { %v541_v48 = vadd.f32 %v530_v38, %v514_v60  ;;  %v864_v60 = vmul.f32 %v860_v21, %v3205_v16  ;;  %v889_v38 = vmul.f32 %v885_v19, %v3211_v20 }
 0x173   :  { %v566_v7 = vadd.f32 %v3245_v39, %v541_v48  ;;  %v464_v39 = vadd.f32 %v3185_v41, %v439_v15  ;;  %v517_v41 = vadd.f32 %v3219_v23, %v492_v24  ;;  %v584_v23 = vmul.f32 %v580_v62, %v3205_v16 }
 0x174   :  { %v888_v16 = vmul.f32 %v885_v19, %v3221_v25 }
 0x175   :  { %819 = vrot.lane.b32.xlu2 %v810_v4, %s2916_s8  ;;  %v585_v9 = vadd.f32 %v581_v53, %v566_v7  ;;  %846 = vrot.lane.b32.xlu1 %v836_v17, %s2916_s8  ;;  %v491_v6 = vadd.f32 %v482_v1, %v464_v39  ;;  %v3388_v53 = vld [vmem:[#allocation4 + $0x2] sm:$0xff]  ;;  %v3392_v7 = vld [vmem:[#allocation5 + $0xa] sm:$0xff] }
 0x176   :  { %844 = vrot.lane.b32.xlu0 %v835_v27, %s2916_s8  ;;  %v3396_v27 = vld [vmem:[#allocation5 + $0x2] sm:$0xff]  ;;  %v3406_v39 = vld [vmem:[#allocation4 + $0x22] sm:$0xff] }
 0x177   :  { %v3324_v0 = vpop.permute.xlu2 %609  ;;  %v3327_v13 = vadd.f32 %v590_v18, %v585_v9  ;;  %v532_v52 = vpop.permute.xlu1 %531  ;;  %v516_v22 = vadd.f32 %v3235_v26, %v491_v6  ;;  %v593_v26 = vmul.f32 %v589_v14, %v3211_v20  ;;  %v940_v20 = vstv %s2739_s5  ;;  %s2761_s5 = sld [smem:[#allocation7 + $0x1a]] }
 0x178   :  { %v542_v50 = vadd.f32 %v532_v52, %v515_v43  ;;  %v536_v29 = vpop.permute.xlu0 %535  ;;  %v943_v25 = vmul.f32 %v940_v20, %v3374_v54  ;;  %v942_v61 = vmul.f32 %v940_v20, %v3378_v63  ;;  %v941_v18 = vmul.f32 %v940_v20, %v3388_v53 }
 0x179   :  { %v543_v2 = vadd.f32 %v534_v57, %v516_v22  ;;  %v967_v9 = vmul.f32 %v965_v11, %v3392_v7  ;;  %v966_v56 = vmul.f32 %v965_v11, %v3396_v27  ;;  %v944_v21 = vmul.f32 %v940_v20, %v3406_v39 }
 0x17a   :  { %v567_v33 = vadd.f32 %v3233_v32, %v542_v50  ;;  %v544_v32 = vadd.f32 %v536_v29, %v517_v41  ;;  %v992_v50 = vstv %s2741_s9  ;;  %v3412_v29 = vld [vmem:[#allocation5 + $0x22] sm:$0xff]  ;;  %s2752_s9 = sld [smem:[#allocation7 + $0x46]] }
 0x17b   :  { %v993_v6 = vmul.f32 %v992_v50, %v3388_v53 }
 0x17c   :  { %v586_v10 = vadd.f32 %v582_v49, %v567_v33  ;;  %v969_v49 = vmul.f32 %v965_v11, %v3412_v29 }
 0x17d   :  { %842 = vrot.lane.b32.xlu2 %v834_v42, %s2916_s8  ;;  %871 = vrot.lane.b32.xlu1 %v862_v55, %s2917_s10  ;;  %v3422_v42 = vld [vmem:[#allocation5 + $0x1a] sm:$0xff] }
 0x17e   :  { %v3339_v1 = vadd.f32 %v591_v51, %v586_v10  ;;  %869 = vrot.lane.b32.xlu0 %v861_v3, %s2917_s10  ;;  %v968_v41 = vmul.f32 %v965_v11, %v3422_v42  ;;  %v996_v10 = vmul.f32 %v992_v50, %v3406_v39  ;;  %v995_v3 = vmul.f32 %v992_v50, %v3374_v54 }
 0x17f   :  { %v3342_v12 = vpop.permute.xlu2 %615  ;;  %v561_v30 = vpop.permute.xlu1 %560 }
 0x180   :  { %v569_v46 = vadd.f32 %v561_v30, %v544_v32  ;;  %v559_v31 = vpop.permute.xlu0 %558  ;;  %v1017_v30 = vstv %s2742_s11  ;;  %s2762_s11 = sld [smem:[#allocation7 + $0x4b]] }
 0x181   :  { %v568_v34 = vadd.f32 %v559_v31, %v543_v2  ;;  %v1019_v31 = vmul.f32 %v1017_v30, %v3392_v7 }
 0x182   :  { %v588_v35 = vadd.f32 %v584_v23, %v569_v46  ;;  %v994_v23 = vmul.f32 %v992_v50, %v3378_v63  ;;  %v1020_v46 = vmul.f32 %v1017_v30, %v3422_v42 }
 0x183   :  { %v587_v45 = vadd.f32 %v583_v8, %v568_v34 }
 0x184   :  { %v3350_v57 = vadd.f32 %v593_v26, %v588_v35  ;;  %v1044_v26 = vstv %s2743_s12  ;;  %v1018_v35 = vmul.f32 %v1017_v30, %v3396_v27  ;;  %s2763_s12 = sld [smem:[#allocation7 + $0x1b]] }
 0x185   :  { %848 = vrot.lane.b32.xlu2 %v837_v36, %s2916_s8  ;;  %v3354_v44 = vadd.f32 %v592_v40, %v587_v45  ;;  %894 = vrot.lane.b32.xlu1 %v886_v28, %s2917_s10  ;;  %v1046_v36 = vmul.f32 %v1044_v26, %v3378_v63  ;;  %v1045_v40 = vmul.f32 %v1044_v26, %v3388_v53 }
 0x186   :  { %875 = vrot.lane.b32.xlu0 %v864_v60, %s2917_s10  ;;  %v1048_v20 = vmul.f32 %v1044_v26, %v3406_v39  ;;  %v1047_v11 = vmul.f32 %v1044_v26, %v3374_v54  ;;  %v1121_v26 = vstv %s2746_s15  ;;  %s2768_s15 = sld [smem:[#allocation7 + $0x4e]] }
 0x187   :  { %v3358_v62 = vpop.permute.xlu2 %638  ;;  %v3360_v59 = vpop.permute.xlu1 %613 }
 0x188   :  { %v3362_v37 = vpop.permute.xlu0 %611 }
 0x18d   :  { %873 = vrot.lane.b32.xlu2 %v863_v5, %s2917_s10  ;;  %900 = vrot.lane.b32.xlu1 %v889_v38, %s2917_s10  ;;  %v1069_v5 = vstv %s2744_s13  ;;  %v1021_v38 = vmul.f32 %v1017_v30, %v3412_v29  ;;  %s2764_s13 = sld [smem:[#allocation7 + $0x4c]] }
 0x18e   :  { %898 = vrot.lane.b32.xlu0 %v888_v16, %s2917_s10  ;;  %v1070_v16 = vmul.f32 %v1069_v5, %v3396_v27 }
 0x18f   :  { %v3370_v47 = vpop.permute.xlu2 %663  ;;  %v3372_v48 = vpop.permute.xlu1 %636 }
 0x190   :  { %v3376_v14 = vpop.permute.xlu0 %634 }
 0x195   :  { %896 = vrot.lane.b32.xlu2 %v887_v58, %s2917_s10  ;;  %953 = vrot.lane.b32.xlu1 %v943_v25, %s2912_s23 }
 0x196   :  { %951 = vrot.lane.b32.xlu0 %v942_v61, %s2912_s23 }
 0x197   :  { %v3386_v4 = vpop.permute.xlu2 %686  ;;  %v3390_v15 = vpop.permute.xlu1 %661 }
 0x198   :  { %v3394_v17 = vpop.permute.xlu0 %640 }
 0x19d   :  { %949 = vrot.lane.b32.xlu2 %v941_v18, %s2912_s23  ;;  %976 = vrot.lane.b32.xlu1 %v967_v9, %s2912_s23  ;;  %v1073_v18 = vmul.f32 %v1069_v5, %v3412_v29  ;;  %v1072_v9 = vmul.f32 %v1069_v5, %v3422_v42 }
 0x19e   :  { %974 = vrot.lane.b32.xlu0 %v966_v56, %s2912_s23 }
 0x19f   :  { %v3404_v43 = vpop.permute.xlu2 %692  ;;  %v3408_v52 = vpop.permute.xlu1 %667 }
 0x1a0   :  { %v3410_v24 = vpop.permute.xlu0 %665 }
 0x1a5   :  { %955 = vrot.lane.b32.xlu2 %v944_v21, %s2912_s23  ;;  %1001 = vrot.lane.b32.xlu1 %v993_v6, %s2913_s29  ;;  %v1096_v6 = vstv %s2745_s14  ;;  %s2767_s14 = sld [smem:[#allocation7 + $0x1d]] }
 0x1a6   :  { %980 = vrot.lane.b32.xlu0 %v969_v49, %s2912_s23  ;;  %v1071_v49 = vmul.f32 %v1069_v5, %v3392_v7 }
 0x1a7   :  { %v3420_v33 = vpop.permute.xlu2 %717  ;;  %v3424_v55 = vpop.permute.xlu1 %690 }
 0x1a8   :  { %v3426_v51 = vpop.permute.xlu0 %688 }
 0x1ad   :  { %978 = vrot.lane.b32.xlu2 %v968_v41, %s2912_s23  ;;  %1007 = vrot.lane.b32.xlu1 %v996_v10, %s2913_s29  ;;  %v1099_v41 = vmul.f32 %v1096_v6, %v3374_v54  ;;  %v1098_v10 = vmul.f32 %v1096_v6, %v3378_v63 }
 0x1ae   :  { %1005 = vrot.lane.b32.xlu0 %v995_v3, %s2913_s29  ;;  %v622_v3 = vadd.f32 %v3362_v37, %v3339_v1  ;;  %v1122_v37 = vmul.f32 %v1121_v26, %v3396_v27 }
 0x1af   :  { %v3434_v22 = vpop.permute.xlu2 %740  ;;  %v3436_v32 = vpop.permute.xlu1 %715 }
 0x1b0   :  { %v3438_v2 = vpop.permute.xlu0 %713 }
 0x1b5   :  { %1003 = vrot.lane.b32.xlu2 %v994_v23, %s2913_s29  ;;  %1030 = vrot.lane.b32.xlu1 %v1020_v46, %s2913_s29  ;;  %v647_v46 = vadd.f32 %v3372_v48, %v622_v3 }
 0x1b6   :  { %1028 = vrot.lane.b32.xlu0 %v1019_v31, %s2913_s29 }
 0x1b7   :  { %v3446_v19 = vpop.permute.xlu2 %765  ;;  %v3448_v8 = vpop.permute.xlu1 %738  ;;  %v674_v1 = vadd.f32 %v3370_v47, %v647_v46 }
 0x1b8   :  { %v3450_v34 = vpop.permute.xlu0 %719 }
 0x1b9   :  { %v699_v5 = vadd.f32 %v3426_v51, %v674_v1 }
 0x1bd   :  { %1026 = vrot.lane.b32.xlu2 %v1018_v35, %s2913_s29  ;;  %1055 = vrot.lane.b32.xlu1 %v1046_v36, %s2914_s1  ;;  %v1097_v35 = vmul.f32 %v1096_v6, %v3388_v53  ;;  %v1123_v36 = vmul.f32 %v1121_v26, %v3392_v7 }
 0x1be   :  { %1053 = vrot.lane.b32.xlu0 %v1045_v40, %s2914_s1  ;;  %v621_v40 = vadd.f32 %v3324_v0, %v3327_v13  ;;  %v726_v13 = vadd.f32 %v3436_v32, %v699_v5 }
 0x1bf   :  { %v3458_v45 = vpop.permute.xlu2 %771  ;;  %v3460_v28 = vpop.permute.xlu1 %744 }
 0x1c0   :  { %v3462_v60 = vpop.permute.xlu0 %742  ;;  %v646_v48 = vadd.f32 %v3376_v14, %v621_v40  ;;  %v623_v14 = vadd.f32 %v3360_v59, %v3354_v44 }
 0x1c2   :  { %v673_v0 = vadd.f32 %v3390_v15, %v646_v48  ;;  %v1125_v15 = vmul.f32 %v1121_v26, %v3412_v29  ;;  %v1173_v48 = vstv %s2748_s19  ;;  %s2772_s19 = sld [smem:[#allocation7 + $0x50]] }
 0x1c5   :  { %1032 = vrot.lane.b32.xlu2 %v1021_v38, %s2913_s29  ;;  %1078 = vrot.lane.b32.xlu1 %v1070_v16, %s2914_s1 }
 0x1c6   :  { %1059 = vrot.lane.b32.xlu0 %v1048_v20, %s2914_s1  ;;  %v1148_v20 = vstv %s2747_s16  ;;  %s2769_s16 = sld [smem:[#allocation7 + $0x1e]] }
 0x1c7   :  { %v3470_v58 = vpop.permute.xlu2 %794  ;;  %v3472_v25 = vpop.permute.xlu1 %769  ;;  %v1149_v51 = vmul.f32 %v1148_v20, %v3388_v53  ;;  %v1152_v3 = vmul.f32 %v1148_v20, %v3406_v39 }
 0x1c8   :  { %v768_v61 = vpop.permute.xlu0 %767 }
 0x1cd   :  { %1057 = vrot.lane.b32.xlu2 %v1047_v11, %s2914_s1  ;;  %1084 = vrot.lane.b32.xlu1 %v1073_v18, %s2914_s1  ;;  %v1100_v11 = vmul.f32 %v1096_v6, %v3406_v39  ;;  %v624_v18 = vadd.f32 %v3342_v12, %v3350_v57  ;;  %v648_v12 = vadd.f32 %v3358_v62, %v623_v14 }
 0x1ce   :  { %1082 = vrot.lane.b32.xlu0 %v1072_v9, %s2914_s1  ;;  %v698_v9 = vadd.f32 %v3386_v4, %v673_v0  ;;  %v1150_v0 = vmul.f32 %v1148_v20, %v3378_v63 }
 0x1cf   :  { %v3480_v56 = vpop.permute.xlu2 %819  ;;  %v793_v50 = vpop.permute.xlu1 %792  ;;  %v649_v32 = vadd.f32 %v3394_v17, %v624_v18  ;;  %v675_v17 = vadd.f32 %v3410_v24, %v648_v12 }
 0x1d0   :  { %v3482_v21 = vpop.permute.xlu0 %790  ;;  %v725_v6 = vadd.f32 %v3438_v2, %v698_v9  ;;  %v1124_v2 = vmul.f32 %v1121_v26, %v3422_v42  ;;  %v920_v26 = vstv %s2737_s17  ;;  %s2770_s17 = sld [smem:[#allocation7 + $0x4f]] }
 0x1d1   :  { %v676_v4 = vadd.f32 %v3408_v52, %v649_v32  ;;  %v1151_v52 = vmul.f32 %v1148_v20, %v3374_v54 }
 0x1d3   :  { %v701_v46 = vadd.f32 %v3404_v43, %v676_v4  ;;  %v1174_v4 = vmul.f32 %v1173_v48, %v3396_v27 }
 0x1d5   :  { %1080 = vrot.lane.b32.xlu2 %v1071_v49, %s2914_s1  ;;  %1109 = vrot.lane.b32.xlu1 %v1099_v41, %s2915_s7  ;;  %v751_v49 = vadd.f32 %v3434_v22, %v726_v13  ;;  %v750_v22 = vadd.f32 %v3448_v8, %v725_v6  ;;  %v728_v24 = vadd.f32 %v3450_v34, %v701_v46  ;;  %v1200_v6 = vstv %s2749_s20  ;;  %s2773_s20 = sld [smem:[#allocation7 + $0x20]] }
 0x1d6   :  { %1107 = vrot.lane.b32.xlu0 %v1098_v10, %s2915_s7  ;;  %v923_v46 = vmul.f32 %v920_v26, %v3374_v54 }
 0x1d7   :  { %v3492_v30 = vpop.permute.xlu2 %842  ;;  %v3494_v23 = vpop.permute.xlu1 %817  ;;  %v778_v44 = vadd.f32 %v768_v61, %v751_v49  ;;  %v700_v61 = vadd.f32 %v3424_v55, %v675_v17  ;;  %v777_v62 = vadd.f32 %v3446_v19, %v750_v22 }
 0x1d8   :  { %v3497_v31 = vpop.permute.xlu0 %796 }
 0x1d9   :  { %v803_v41 = vadd.f32 %v793_v50, %v778_v44  ;;  %v802_v8 = vadd.f32 %v3482_v21, %v777_v62  ;;  %v727_v43 = vadd.f32 %v3420_v33, %v700_v61  ;;  %v922_v21 = vmul.f32 %v920_v26, %v3378_v63 }
 0x1db   :  { %v829_v40 = vadd.f32 %v3494_v23, %v802_v8  ;;  %v752_v34 = vadd.f32 %v3462_v60, %v727_v43  ;;  %v1175_v60 = vmul.f32 %v1173_v48, %v3392_v7 }
 0x1dd   :  { %1105 = vrot.lane.b32.xlu2 %v1097_v35, %s2915_s7  ;;  %1132 = vrot.lane.b32.xlu1 %v1123_v36, %s2915_s7  ;;  %v830_v35 = vadd.f32 %v3480_v56, %v803_v41  ;;  %v929_v36 = vstv %s2738_s18  ;;  %v753_v56 = vadd.f32 %v3460_v28, %v728_v24  ;;  %v779_v33 = vadd.f32 %v3472_v25, %v752_v34  ;;  %s2771_s18 = sld [smem:[#allocation7 + $0x1f]] }
 0x1de   :  { %1130 = vrot.lane.b32.xlu0 %v1122_v37, %s2915_s7  ;;  %v931_v13 = vmul.f32 %v929_v36, %v3392_v7  ;;  %v854_v23 = vadd.f32 %v3492_v30, %v829_v40  ;;  %v921_v30 = vmul.f32 %v920_v26, %v3388_v53  ;;  %v930_v44 = vmul.f32 %v929_v36, %v3396_v27 }
 0x1df   :  { %v3510_v38 = vpop.permute.xlu2 %848  ;;  %v3512_v16 = vpop.permute.xlu1 %823  ;;  %v780_v28 = vadd.f32 %v3458_v45, %v753_v56  ;;  %v804_v45 = vadd.f32 %v3470_v58, %v779_v33  ;;  %v1202_v41 = vmul.f32 %v1200_v6, %v3378_v63  ;;  %v924_v63 = vmul.f32 %v920_v26, %v3406_v39 }
 0x1e0   :  { %v3516_v47 = vpop.permute.xlu0 %821  ;;  %v932_v24 = vmul.f32 %v929_v36, %v3422_v42 }
 0x1e5   :  { %1111 = vrot.lane.b32.xlu2 %v1100_v11, %s2915_s7  ;;  %1157 = vrot.lane.b32.xlu1 %v1149_v51, %s2916_s8  ;;  %v1176_v11 = vmul.f32 %v1173_v48, %v3422_v42  ;;  %v805_v51 = vadd.f32 %v3497_v31, %v780_v28  ;;  %v831_v31 = vadd.f32 %v3516_v47, %v804_v45  ;;  %v3639_v28 = vld [vmem:[#allocation5 + $0x3] sm:$0xff] }
 0x1e6   :  { %1136 = vrot.lane.b32.xlu0 %v1125_v15, %s2915_s7 }
 0x1e7   :  { %v3532_v59 = vpop.permute.xlu2 %873  ;;  %v847_v57 = vpop.permute.xlu1 %846  ;;  %v832_v49 = vadd.f32 %v3512_v16, %v805_v51  ;;  %v1201_v16 = vmul.f32 %v1200_v6, %v3388_v53  ;;  %v933_v53 = vmul.f32 %v929_v36, %v3412_v29 }
 0x1e8   :  { %v845_v10 = vpop.permute.xlu0 %844  ;;  %v856_v22 = vadd.f32 %v847_v57, %v831_v31 }
 0x1e9   :  { %v855_v50 = vadd.f32 %v845_v10, %v830_v35  ;;  %v857_v58 = vadd.f32 %v3510_v38, %v832_v49  ;;  %v3655_v49 = vld [vmem:[#allocation5 + $0x23] sm:$0xff] }
 0x1ed   :  { %1134 = vrot.lane.b32.xlu2 %v1124_v2, %s2915_s7  ;;  %1163 = vrot.lane.b32.xlu1 %v1152_v3, %s2916_s8  ;;  %v883_v2 = vadd.f32 %v3532_v59, %v856_v22  ;;  %v1225_v3 = vstv %s2750_s0  ;;  %s2774_s0 = sld [smem:[#allocation7 + $0x51]] }
 0x1ee   :  { %1161 = vrot.lane.b32.xlu0 %v1151_v52, %s2916_s8  ;;  %v1177_v52 = vmul.f32 %v1173_v48, %v3412_v29  ;;  %v1229_v56 = vmul.f32 %v1225_v3, %v3412_v29  ;;  %v1280_v29 = vstv %s2753_s2  ;;  %v1227_v48 = vmul.f32 %v1225_v3, %v3392_v7  ;;  %s2775_s2 = sld [smem:[#allocation7 + $0x21]] }
 0x1ef   :  { %v897_v55 = vpop.permute.xlu2 %896  ;;  %v872_v19 = vpop.permute.xlu1 %871  ;;  %v1305_v7 = vstv %s2754_s24  ;;  %s2766_s24 = sld [smem:[#allocation7 + $0x4d]] }
 0x1f0   :  { %v882_v1 = vadd.f32 %v872_v19, %v855_v50  ;;  %v870_v37 = vpop.permute.xlu0 %869  ;;  %v1226_v50 = vmul.f32 %v1225_v3, %v3396_v27  ;;  %v1203_v27 = vmul.f32 %v1200_v6, %v3374_v54  ;;  %v3621_v54 = vld [vmem:[#allocation4 + $0xb] sm:$0xff] }
 0x1f1   :  { %v881_v18 = vadd.f32 %v870_v37, %v854_v23  ;;  %v3617_v37 = vld [vmem:[#allocation4 + $0x1b] sm:$0xff] }
 0x1f2   :  { %v907_v5 = vadd.f32 %v897_v55, %v882_v1  ;;  %v1204_v55 = vmul.f32 %v1200_v6, %v3406_v39  ;;  %v1228_v39 = vmul.f32 %v1225_v3, %v3422_v42  ;;  %v1283_v42 = vmul.f32 %v1280_v29, %v3617_v37 }
 0x1f3   :  { %v1309_v6 = vmul.f32 %v1305_v7, %v3655_v49 }
 0x1f4   :  { %v926_v14 = vadd.f32 %v922_v21, %v907_v5  ;;  %v1282_v21 = vmul.f32 %v1280_v29, %v3621_v54 }
 0x1f5   :  { %1159 = vrot.lane.b32.xlu2 %v1150_v0, %s2916_s8  ;;  %1186 = vrot.lane.b32.xlu1 %v1176_v11, %s2916_s8  ;;  %v3631_v0 = vld [vmem:[#allocation4 + $0x3] sm:$0xff]  ;;  %v3637_v11 = vld [vmem:[#allocation5 + $0xb] sm:$0xff] }
 0x1f6   :  { %v3565_v20 = vadd.f32 %v931_v13, %v926_v14  ;;  %1184 = vrot.lane.b32.xlu0 %v1175_v60, %s2916_s8  ;;  %v1281_v23 = vmul.f32 %v1280_v29, %v3631_v0  ;;  %v1307_v14 = vmul.f32 %v1305_v7, %v3637_v11  ;;  %v1306_v60 = vmul.f32 %v1305_v7, %v3639_v28 }
 0x1f7   :  { %v3568_v25 = vpop.permute.xlu2 %949  ;;  %v895_v9 = vpop.permute.xlu1 %894 }
 0x1f8   :  { %v906_v15 = vadd.f32 %v895_v9, %v881_v18  ;;  %v876_v32 = vpop.permute.xlu0 %875  ;;  %v3649_v18 = vld [vmem:[#allocation4 + $0x23] sm:$0xff] }
 0x1f9   :  { %v884_v17 = vadd.f32 %v876_v32, %v857_v58 }
 0x1fa   :  { %v925_v12 = vadd.f32 %v921_v30, %v906_v15  ;;  %v1332_v30 = vstv %s2755_s25  ;;  %v1284_v15 = vmul.f32 %v1280_v29, %v3649_v18  ;;  %s2765_s25 = sld [smem:[#allocation7 + $0x1c]] }
 0x1fb   :  { %v1333_v32 = vmul.f32 %v1332_v30, %v3631_v0  ;;  %v1335_v58 = vmul.f32 %v1332_v30, %v3617_v37 }
 0x1fc   :  { %v3578_v10 = vadd.f32 %v930_v44, %v925_v12  ;;  %v3667_v12 = vld [vmem:[#allocation5 + $0x1b] sm:$0xff] }
 0x1fd   :  { %1182 = vrot.lane.b32.xlu2 %v1174_v4, %s2916_s8  ;;  %1211 = vrot.lane.b32.xlu1 %v1202_v41, %s2917_s10  ;;  %v1308_v22 = vmul.f32 %v1305_v7, %v3667_v12  ;;  %v1336_v41 = vmul.f32 %v1332_v30, %v3649_v18 }
 0x1fe   :  { %1209 = vrot.lane.b32.xlu0 %v1201_v16, %s2917_s10 }
 0x1ff   :  { %v3584_v47 = vpop.permute.xlu2 %955  ;;  %v901_v57 = vpop.permute.xlu1 %900 }
 0x200   :  { %v909_v61 = vadd.f32 %v901_v57, %v884_v17  ;;  %v899_v38 = vpop.permute.xlu0 %898  ;;  %v1357_v57 = vstv %s2756_s26  ;;  %s2776_s26 = sld [smem:[#allocation7 + $0x52]] }
 0x201   :  { %v908_v62 = vadd.f32 %v899_v38, %v883_v2  ;;  %v1359_v38 = vmul.f32 %v1357_v57, %v3637_v11 }
 0x202   :  { %v928_v35 = vadd.f32 %v924_v63, %v909_v61  ;;  %v1334_v63 = vmul.f32 %v1332_v30, %v3621_v54  ;;  %v1360_v61 = vmul.f32 %v1357_v57, %v3667_v12 }
 0x203   :  { %v927_v8 = vadd.f32 %v923_v46, %v908_v62 }
 0x204   :  { %v3593_v59 = vadd.f32 %v933_v53, %v928_v35  ;;  %v1384_v53 = vstv %s2757_s27  ;;  %v1358_v35 = vmul.f32 %v1357_v57, %v3639_v28  ;;  %s2777_s27 = sld [smem:[#allocation7 + $0x22]] }
 0x205   :  { %1188 = vrot.lane.b32.xlu2 %v1177_v52, %s2916_s8  ;;  %v3597_v43 = vadd.f32 %v932_v24, %v927_v8  ;;  %1234 = vrot.lane.b32.xlu1 %v1226_v50, %s2917_s10  ;;  %v1386_v52 = vmul.f32 %v1384_v53, %v3621_v54  ;;  %v1385_v24 = vmul.f32 %v1384_v53, %v3631_v0 }
 0x206   :  { %1215 = vrot.lane.b32.xlu0 %v1204_v55, %s2917_s10  ;;  %v1388_v29 = vmul.f32 %v1384_v53, %v3649_v18  ;;  %v1387_v7 = vmul.f32 %v1384_v53, %v3617_v37  ;;  %v1461_v53 = vstv %s2760_s4  ;;  %s2782_s4 = sld [smem:[#allocation7 + $0x55]] }
 0x207   :  { %v3601_v26 = vpop.permute.xlu2 %978  ;;  %v3603_v19 = vpop.permute.xlu1 %953 }
 0x208   :  { %v3605_v36 = vpop.permute.xlu0 %951 }
 0x20d   :  { %1213 = vrot.lane.b32.xlu2 %v1203_v27, %s2917_s10  ;;  %1240 = vrot.lane.b32.xlu1 %v1229_v56, %s2917_s10  ;;  %v1409_v27 = vstv %s2758_s28  ;;  %v1361_v56 = vmul.f32 %v1357_v57, %v3655_v49  ;;  %s2778_s28 = sld [smem:[#allocation7 + $0x53]] }
 0x20e   :  { %1238 = vrot.lane.b32.xlu0 %v1228_v39, %s2917_s10  ;;  %v1410_v39 = vmul.f32 %v1409_v27, %v3639_v28 }
 0x20f   :  { %v3613_v40 = vpop.permute.xlu2 %1003  ;;  %v3615_v1 = vpop.permute.xlu1 %976 }
 0x210   :  { %v3619_v34 = vpop.permute.xlu0 %974 }
 0x215   :  { %1236 = vrot.lane.b32.xlu2 %v1227_v48, %s2917_s10  ;;  %1293 = vrot.lane.b32.xlu1 %v1283_v42, %s2912_s23 }
 0x216   :  { %1291 = vrot.lane.b32.xlu0 %v1282_v21, %s2912_s23 }
 0x217   :  { %v3629_v5 = vpop.permute.xlu2 %1026  ;;  %v3633_v13 = vpop.permute.xlu1 %1001 }
 0x218   :  { %v3635_v33 = vpop.permute.xlu0 %980 }
 0x21d   :  { %1289 = vrot.lane.b32.xlu2 %v1281_v23, %s2912_s23  ;;  %1316 = vrot.lane.b32.xlu1 %v1307_v14, %s2912_s23  ;;  %v1413_v23 = vmul.f32 %v1409_v27, %v3655_v49  ;;  %v1412_v14 = vmul.f32 %v1409_v27, %v3667_v12 }
 0x21e   :  { %1314 = vrot.lane.b32.xlu0 %v1306_v60, %s2912_s23 }
 0x21f   :  { %v3647_v51 = vpop.permute.xlu2 %1032  ;;  %v3651_v45 = vpop.permute.xlu1 %1007 }
 0x220   :  { %v3653_v9 = vpop.permute.xlu0 %1005 }
 0x225   :  { %1295 = vrot.lane.b32.xlu2 %v1284_v15, %s2912_s23  ;;  %1341 = vrot.lane.b32.xlu1 %v1333_v32, %s2913_s29  ;;  %v1436_v32 = vstv %s2759_s30  ;;  %s2781_s30 = sld [smem:[#allocation7 + $0x24]] }
 0x226   :  { %1320 = vrot.lane.b32.xlu0 %v1309_v6, %s2912_s23  ;;  %v1411_v6 = vmul.f32 %v1409_v27, %v3637_v11 }
 0x227   :  { %v3663_v31 = vpop.permute.xlu2 %1057  ;;  %v3665_v44 = vpop.permute.xlu1 %1030 }
 0x228   :  { %v3669_v4 = vpop.permute.xlu0 %1028 }
 0x22d   :  { %1318 = vrot.lane.b32.xlu2 %v1308_v22, %s2912_s23  ;;  %1347 = vrot.lane.b32.xlu1 %v1336_v41, %s2913_s29  ;;  %v1439_v22 = vmul.f32 %v1436_v32, %v3617_v37  ;;  %v1438_v41 = vmul.f32 %v1436_v32, %v3621_v54 }
 0x22e   :  { %1345 = vrot.lane.b32.xlu0 %v1335_v58, %s2913_s29  ;;  %v962_v58 = vadd.f32 %v3605_v36, %v3565_v20  ;;  %v1462_v36 = vmul.f32 %v1461_v53, %v3639_v28 }
 0x22f   :  { %v3677_v16 = vpop.permute.xlu2 %1080  ;;  %v3679_v17 = vpop.permute.xlu1 %1055 }
 0x230   :  { %v3681_v2 = vpop.permute.xlu0 %1053 }
 0x235   :  { %1343 = vrot.lane.b32.xlu2 %v1334_v63, %s2913_s29  ;;  %1370 = vrot.lane.b32.xlu1 %v1360_v61, %s2913_s29  ;;  %v987_v61 = vadd.f32 %v3615_v1, %v962_v58 }
 0x236   :  { %1368 = vrot.lane.b32.xlu0 %v1359_v38, %s2913_s29 }
 0x237   :  { %v3689_v3 = vpop.permute.xlu2 %1105  ;;  %v3691_v46 = vpop.permute.xlu1 %1078  ;;  %v1014_v20 = vadd.f32 %v3613_v40, %v987_v61 }
 0x238   :  { %v3693_v62 = vpop.permute.xlu0 %1059 }
 0x239   :  { %v1039_v27 = vadd.f32 %v3669_v4, %v1014_v20  ;;  %v1260_v20 = vstv %s2751_s6  ;;  %s2784_s6 = sld [smem:[#allocation7 + $0x56]] }
 0x23d   :  { %1366 = vrot.lane.b32.xlu2 %v1358_v35, %s2913_s29  ;;  %1395 = vrot.lane.b32.xlu1 %v1386_v52, %s2914_s1  ;;  %v1437_v35 = vmul.f32 %v1436_v32, %v3631_v0  ;;  %v1463_v52 = vmul.f32 %v1461_v53, %v3637_v11 }
 0x23e   :  { %1393 = vrot.lane.b32.xlu0 %v1385_v24, %s2914_s1  ;;  %v961_v24 = vadd.f32 %v3568_v25, %v3578_v10  ;;  %v1066_v10 = vadd.f32 %v3679_v17, %v1039_v27  ;;  %v1513_v27 = vstv %s2762_s11  ;;  %s2786_s11 = sld [smem:[#allocation7 + $0x57]] }
 0x23f   :  { %v3701_v8 = vpop.permute.xlu2 %1111  ;;  %v3703_v50 = vpop.permute.xlu1 %1084 }
 0x240   :  { %v3705_v55 = vpop.permute.xlu0 %1082  ;;  %v986_v1 = vadd.f32 %v3619_v34, %v961_v24  ;;  %v963_v34 = vadd.f32 %v3603_v19, %v3597_v43 }
 0x242   :  { %v1013_v25 = vadd.f32 %v3633_v13, %v986_v1  ;;  %v1465_v13 = vmul.f32 %v1461_v53, %v3655_v49  ;;  %v1269_v1 = vstv %s2752_s9  ;;  %s2785_s9 = sld [smem:[#allocation7 + $0x26]] }
 0x245   :  { %1372 = vrot.lane.b32.xlu2 %v1361_v56, %s2913_s29  ;;  %1418 = vrot.lane.b32.xlu1 %v1410_v39, %s2914_s1 }
 0x246   :  { %1399 = vrot.lane.b32.xlu0 %v1388_v29, %s2914_s1  ;;  %v1488_v29 = vstv %s2761_s5  ;;  %s2783_s5 = sld [smem:[#allocation7 + $0x25]] }
 0x247   :  { %v3713_v48 = vpop.permute.xlu2 %1134  ;;  %v3715_v42 = vpop.permute.xlu1 %1109  ;;  %v1489_v4 = vmul.f32 %v1488_v29, %v3631_v0  ;;  %v1492_v58 = vmul.f32 %v1488_v29, %v3649_v18 }
 0x248   :  { %v1108_v21 = vpop.permute.xlu0 %1107 }
 0x24d   :  { %1397 = vrot.lane.b32.xlu2 %v1387_v7, %s2914_s1  ;;  %1424 = vrot.lane.b32.xlu1 %v1413_v23, %s2914_s1  ;;  %v1440_v7 = vmul.f32 %v1436_v32, %v3649_v18  ;;  %v964_v23 = vadd.f32 %v3584_v47, %v3593_v59  ;;  %v988_v47 = vadd.f32 %v3601_v26, %v963_v34 }
 0x24e   :  { %1422 = vrot.lane.b32.xlu0 %v1412_v14, %s2914_s1  ;;  %v1038_v14 = vadd.f32 %v3629_v5, %v1013_v25  ;;  %v1490_v25 = vmul.f32 %v1488_v29, %v3621_v54 }
 0x24f   :  { %v3723_v60 = vpop.permute.xlu2 %1159  ;;  %v1133_v30 = vpop.permute.xlu1 %1132  ;;  %v989_v17 = vadd.f32 %v3635_v33, %v964_v23  ;;  %v1015_v33 = vadd.f32 %v3653_v9, %v988_v47 }
 0x250   :  { %v3725_v15 = vpop.permute.xlu0 %1130  ;;  %v1065_v32 = vadd.f32 %v3681_v2, %v1038_v14  ;;  %v1464_v2 = vmul.f32 %v1461_v53, %v3667_v12 }
 0x251   :  { %v1016_v5 = vadd.f32 %v3651_v45, %v989_v17 }
 0x253   :  { %v1041_v26 = vadd.f32 %v3647_v51, %v1016_v5  ;;  %v1514_v5 = vmul.f32 %v1513_v27, %v3639_v28 }
 0x255   :  { %1420 = vrot.lane.b32.xlu2 %v1411_v6, %s2914_s1  ;;  %1449 = vrot.lane.b32.xlu1 %v1439_v22, %s2915_s7  ;;  %v1091_v6 = vadd.f32 %v3677_v16, %v1066_v10  ;;  %v1090_v16 = vadd.f32 %v3691_v46, %v1065_v32  ;;  %v1491_v46 = vmul.f32 %v1488_v29, %v3617_v37 }
 0x256   :  { %1447 = vrot.lane.b32.xlu0 %v1438_v41, %s2915_s7  ;;  %v1068_v9 = vadd.f32 %v3693_v62, %v1041_v26  ;;  %v1262_v62 = vmul.f32 %v1260_v20, %v3621_v54  ;;  %v1263_v26 = vmul.f32 %v1260_v20, %v3617_v37 }
 0x257   :  { %v3735_v57 = vpop.permute.xlu2 %1182  ;;  %v1158_v63 = vpop.permute.xlu1 %1157  ;;  %v1118_v43 = vadd.f32 %v1108_v21, %v1091_v6  ;;  %v1040_v21 = vadd.f32 %v3665_v44, %v1015_v33  ;;  %v1117_v61 = vadd.f32 %v3689_v3, %v1090_v16 }
 0x258   :  { %v3738_v38 = vpop.permute.xlu0 %1136  ;;  %v1093_v3 = vadd.f32 %v3703_v50, %v1068_v9  ;;  %v1516_v50 = vmul.f32 %v1513_v27, %v3667_v12  ;;  %v1272_v9 = vmul.f32 %v1269_v1, %v3667_v12 }
 0x259   :  { %v1143_v22 = vadd.f32 %v1133_v30, %v1118_v43  ;;  %v1142_v30 = vadd.f32 %v3725_v15, %v1117_v61  ;;  %v1067_v51 = vadd.f32 %v3663_v31, %v1040_v21  ;;  %v1271_v31 = vmul.f32 %v1269_v1, %v3637_v11 }
 0x25a   :  { %v1270_v43 = vmul.f32 %v1269_v1, %v3639_v28 }
 0x25b   :  { %v1170_v45 = vadd.f32 %v3723_v60, %v1143_v22  ;;  %v1169_v60 = vadd.f32 %v1158_v63, %v1142_v30  ;;  %v1120_v63 = vadd.f32 %v3701_v8, %v1093_v3 }
 0x25d   :  { %1445 = vrot.lane.b32.xlu2 %v1437_v35, %s2915_s7  ;;  %1472 = vrot.lane.b32.xlu1 %v1463_v52, %s2915_s7 }
 0x25e   :  { %1470 = vrot.lane.b32.xlu0 %v1462_v36, %s2915_s7  ;;  %v1092_v36 = vadd.f32 %v3705_v55, %v1067_v51  ;;  %v1515_v55 = vmul.f32 %v1513_v27, %v3637_v11 }
 0x25f   :  { %v3751_v56 = vpop.permute.xlu2 %1188  ;;  %v3753_v39 = vpop.permute.xlu1 %1163 }
 0x260   :  { %v3757_v40 = vpop.permute.xlu0 %1161  ;;  %v1119_v10 = vadd.f32 %v3715_v42, %v1092_v36 }
 0x262   :  { %v1144_v8 = vadd.f32 %v3713_v48, %v1119_v10  ;;  %v3876_v10 = vld [vmem:[#allocation4 + $0x4] sm:$0xff] }
 0x264   :  { %v1171_v32 = vadd.f32 %v3757_v40, %v1144_v8  ;;  %v3894_v8 = vld [vmem:[#allocation4 + $0x24] sm:$0xff] }
 0x265   :  { %1451 = vrot.lane.b32.xlu2 %v1440_v7, %s2915_s7  ;;  %1497 = vrot.lane.b32.xlu1 %v1489_v4, %s2916_s8  ;;  %v1194_v7 = vadd.f32 %v3735_v57, %v1169_v60  ;;  %v1145_v4 = vadd.f32 %v3738_v38, %v1120_v63  ;;  %v1261_v57 = vmul.f32 %v1260_v20, %v3631_v0  ;;  %v1540_v38 = vstv %s2763_s12  ;;  %v3882_v63 = vld [vmem:[#allocation5 + $0x4] sm:$0xff]  ;;  %s2787_s12 = sld [smem:[#allocation7 + $0x27]] }
 0x266   :  { %1476 = vrot.lane.b32.xlu0 %v1465_v13, %s2915_s7  ;;  %v1542_v48 = vmul.f32 %v1540_v38, %v3621_v54  ;;  %v1264_v54 = vmul.f32 %v1260_v20, %v3649_v18 }
 0x267   :  { %v3773_v19 = vpop.permute.xlu2 %1213  ;;  %v3776_v59 = vpop.permute.xlu1 %1186  ;;  %v1172_v6 = vadd.f32 %v3753_v39, %v1145_v4  ;;  %v1541_v39 = vmul.f32 %v1540_v38, %v3631_v0  ;;  %v1273_v0 = vmul.f32 %v1269_v1, %v3655_v49  ;;  %v3862_v1 = vld [vmem:[#allocation4 + $0x1c] sm:$0xff] }
 0x268   :  { %v1185_v41 = vpop.permute.xlu0 %1184  ;;  %v1196_v16 = vadd.f32 %v3776_v59, %v1171_v32 }
 0x269   :  { %v1195_v53 = vadd.f32 %v1185_v41, %v1170_v45  ;;  %v1197_v22 = vadd.f32 %v3751_v56, %v1172_v6  ;;  %v3898_v6 = vld [vmem:[#allocation5 + $0x24] sm:$0xff] }
 0x26d   :  { %1474 = vrot.lane.b32.xlu2 %v1464_v2, %s2915_s7  ;;  %1503 = vrot.lane.b32.xlu1 %v1492_v58, %s2916_s8  ;;  %v1223_v2 = vadd.f32 %v3773_v19, %v1196_v16  ;;  %v1565_v58 = vstv %s2764_s13  ;;  %s2788_s13 = sld [smem:[#allocation7 + $0x58]] }
 0x26e   :  { %1501 = vrot.lane.b32.xlu0 %v1491_v46, %s2916_s8  ;;  %v1517_v46 = vmul.f32 %v1513_v27, %v3655_v49 }
 0x26f   :  { %v1237_v44 = vpop.permute.xlu2 %1236  ;;  %v1212_v35 = vpop.permute.xlu1 %1211 }
 0x270   :  { %v1222_v52 = vadd.f32 %v1212_v35, %v1195_v53  ;;  %v1210_v24 = vpop.permute.xlu0 %1209  ;;  %v1566_v53 = vmul.f32 %v1565_v58, %v3639_v28  ;;  %v1543_v28 = vmul.f32 %v1540_v38, %v3617_v37  ;;  %v3864_v37 = vld [vmem:[#allocation4 + $0xc] sm:$0xff] }
 0x271   :  { %v1221_v42 = vadd.f32 %v1210_v24, %v1194_v7 }
 0x272   :  { %v1247_v15 = vadd.f32 %v1237_v44, %v1222_v52  ;;  %v1544_v44 = vmul.f32 %v1540_v38, %v3649_v18  ;;  %v1569_v52 = vmul.f32 %v1565_v58, %v3655_v49  ;;  %v1568_v18 = vmul.f32 %v1565_v58, %v3667_v12 }
 0x273   :  { %v1620_v49 = vstv %s2767_s14  ;;  %s2789_s14 = sld [smem:[#allocation7 + $0x28]] }
 0x274   :  { %v1266_v34 = vadd.f32 %v1262_v62, %v1247_v15  ;;  %v1567_v62 = vmul.f32 %v1565_v58, %v3637_v11  ;;  %v1623_v12 = vmul.f32 %v1620_v49, %v3862_v1  ;;  %v1622_v15 = vmul.f32 %v1620_v49, %v3864_v37 }
 0x275   :  { %1499 = vrot.lane.b32.xlu2 %v1490_v25, %s2916_s8  ;;  %1526 = vrot.lane.b32.xlu1 %v1516_v50, %s2916_s8  ;;  %v3880_v50 = vld [vmem:[#allocation5 + $0xc] sm:$0xff]  ;;  %v1645_v11 = vstv %s2768_s15  ;;  %v1621_v7 = vmul.f32 %v1620_v49, %v3876_v10  ;;  %s2779_s15 = sld [smem:[#allocation7 + $0x23]] }
 0x276   :  { %v3807_v29 = vadd.f32 %v1271_v31, %v1266_v34  ;;  %1524 = vrot.lane.b32.xlu0 %v1515_v55, %s2916_s8  ;;  %v1647_v34 = vmul.f32 %v1645_v11, %v3880_v50  ;;  %v1646_v55 = vmul.f32 %v1645_v11, %v3882_v63  ;;  %v1649_v32 = vmul.f32 %v1645_v11, %v3898_v6 }
 0x277   :  { %v3810_v23 = vpop.permute.xlu2 %1289  ;;  %v1235_v14 = vpop.permute.xlu1 %1234 }
 0x278   :  { %v1246_v13 = vadd.f32 %v1235_v14, %v1221_v42  ;;  %v1216_v17 = vpop.permute.xlu0 %1215 }
 0x279   :  { %v1224_v40 = vadd.f32 %v1216_v17, %v1197_v22 }
 0x27a   :  { %v1265_v47 = vadd.f32 %v1261_v57, %v1246_v13  ;;  %v1672_v57 = vstv %s2769_s16  ;;  %v1624_v13 = vmul.f32 %v1620_v49, %v3894_v8  ;;  %s2790_s16 = sld [smem:[#allocation7 + $0x59]] }
 0x27b   :  { %v1673_v17 = vmul.f32 %v1672_v57, %v3876_v10  ;;  %v1675_v22 = vmul.f32 %v1672_v57, %v3862_v1 }
 0x27c   :  { %v3821_v41 = vadd.f32 %v1270_v43, %v1265_v47  ;;  %v3910_v47 = vld [vmem:[#allocation5 + $0x1c] sm:$0xff] }
 0x27d   :  { %1522 = vrot.lane.b32.xlu2 %v1514_v5, %s2916_s8  ;;  %1551 = vrot.lane.b32.xlu1 %v1542_v48, %s2917_s10  ;;  %v1648_v16 = vmul.f32 %v1645_v11, %v3910_v47  ;;  %v1676_v48 = vmul.f32 %v1672_v57, %v3894_v8 }
 0x27e   :  { %1549 = vrot.lane.b32.xlu0 %v1541_v39, %s2917_s10 }
 0x27f   :  { %v3827_v33 = vpop.permute.xlu2 %1295  ;;  %v1241_v59 = vpop.permute.xlu1 %1240 }
 0x280   :  { %v1249_v21 = vadd.f32 %v1241_v59, %v1224_v40  ;;  %v1239_v56 = vpop.permute.xlu0 %1238  ;;  %v1697_v59 = vstv %s2770_s17  ;;  %s2780_s17 = sld [smem:[#allocation7 + $0x54]] }
 0x281   :  { %v1248_v61 = vadd.f32 %v1239_v56, %v1223_v2  ;;  %v1699_v56 = vmul.f32 %v1697_v59, %v3880_v50 }
 0x282   :  { %v1268_v45 = vadd.f32 %v1264_v54, %v1249_v21  ;;  %v1674_v54 = vmul.f32 %v1672_v57, %v3864_v37  ;;  %v1700_v21 = vmul.f32 %v1697_v59, %v3910_v47 }
 0x283   :  { %v1267_v30 = vadd.f32 %v1263_v26, %v1248_v61 }
 0x284   :  { %v3836_v19 = vadd.f32 %v1273_v0, %v1268_v45  ;;  %v1724_v0 = vstv %s2771_s18  ;;  %v1698_v45 = vmul.f32 %v1697_v59, %v3882_v63  ;;  %s2791_s18 = sld [smem:[#allocation7 + $0x29]] }
 0x285   :  { %1528 = vrot.lane.b32.xlu2 %v1517_v46, %s2916_s8  ;;  %v3840_v51 = vadd.f32 %v1272_v9, %v1267_v30  ;;  %1574 = vrot.lane.b32.xlu1 %v1566_v53, %s2917_s10  ;;  %v1726_v46 = vmul.f32 %v1724_v0, %v3864_v37  ;;  %v1725_v9 = vmul.f32 %v1724_v0, %v3876_v10 }
 0x286   :  { %1555 = vrot.lane.b32.xlu0 %v1544_v44, %s2917_s10  ;;  %v1728_v49 = vmul.f32 %v1724_v0, %v3894_v8  ;;  %v1727_v11 = vmul.f32 %v1724_v0, %v3862_v1  ;;  %v1801_v0 = vstv %s2774_s0  ;;  %s2796_s0 = sld [smem:[#allocation7 + $0x5c]] }
 0x287   :  { %v3844_v35 = vpop.permute.xlu2 %1318  ;;  %v3846_v3 = vpop.permute.xlu1 %1293 }
 0x288   :  { %v3848_v60 = vpop.permute.xlu0 %1291 }
 0x28d   :  { %1553 = vrot.lane.b32.xlu2 %v1543_v28, %s2917_s10  ;;  %1580 = vrot.lane.b32.xlu1 %v1569_v52, %s2917_s10  ;;  %v1749_v28 = vstv %s2772_s19  ;;  %v1701_v52 = vmul.f32 %v1697_v59, %v3898_v6  ;;  %s2792_s19 = sld [smem:[#allocation7 + $0x5a]] }
 0x28e   :  { %1578 = vrot.lane.b32.xlu0 %v1568_v18, %s2917_s10  ;;  %v1750_v18 = vmul.f32 %v1749_v28, %v3882_v63 }
 0x28f   :  { %v3856_v24 = vpop.permute.xlu2 %1343  ;;  %v3858_v20 = vpop.permute.xlu1 %1316 }
 0x290   :  { %v3860_v36 = vpop.permute.xlu0 %1314 }
 0x295   :  { %1576 = vrot.lane.b32.xlu2 %v1567_v62, %s2917_s10  ;;  %1633 = vrot.lane.b32.xlu1 %v1623_v12, %s2912_s23 }
 0x296   :  { %1631 = vrot.lane.b32.xlu0 %v1622_v15, %s2912_s23 }
 0x297   :  { %v3872_v27 = vpop.permute.xlu2 %1366  ;;  %v3874_v25 = vpop.permute.xlu1 %1341 }
 0x298   :  { %v3878_v31 = vpop.permute.xlu0 %1320 }
 0x29d   :  { %1629 = vrot.lane.b32.xlu2 %v1621_v7, %s2912_s23  ;;  %1656 = vrot.lane.b32.xlu1 %v1647_v34, %s2912_s23  ;;  %v1753_v7 = vmul.f32 %v1749_v28, %v3898_v6  ;;  %v1752_v34 = vmul.f32 %v1749_v28, %v3910_v47 }
 0x29e   :  { %1654 = vrot.lane.b32.xlu0 %v1646_v55, %s2912_s23 }
 0x29f   :  { %v3890_v4 = vpop.permute.xlu2 %1372  ;;  %v3892_v42 = vpop.permute.xlu1 %1347 }
 0x2a0   :  { %v3896_v14 = vpop.permute.xlu0 %1345 }
 0x2a5   :  { %1635 = vrot.lane.b32.xlu2 %v1624_v13, %s2912_s23  ;;  %1681 = vrot.lane.b32.xlu1 %v1673_v17, %s2913_s29  ;;  %v1776_v17 = vstv %s2773_s20  ;;  %s2795_s20 = sld [smem:[#allocation7 + $0x2b]] }
 0x2a6   :  { %1660 = vrot.lane.b32.xlu0 %v1649_v32, %s2912_s23  ;;  %v1751_v32 = vmul.f32 %v1749_v28, %v3880_v50 }
 0x2a7   :  { %v3906_v38 = vpop.permute.xlu2 %1397  ;;  %v3908_v43 = vpop.permute.xlu1 %1370 }
 0x2a8   :  { %v3912_v5 = vpop.permute.xlu0 %1368 }
 0x2ad   :  { %1658 = vrot.lane.b32.xlu2 %v1648_v16, %s2912_s23  ;;  %1687 = vrot.lane.b32.xlu1 %v1676_v48, %s2913_s29  ;;  %v1779_v16 = vmul.f32 %v1776_v17, %v3862_v1  ;;  %v1778_v48 = vmul.f32 %v1776_v17, %v3864_v37 }
 0x2ae   :  { %1685 = vrot.lane.b32.xlu0 %v1675_v22, %s2913_s29  ;;  %v1302_v22 = vadd.f32 %v3848_v60, %v3807_v29  ;;  %v1802_v60 = vmul.f32 %v1801_v0, %v3882_v63 }
 0x2af   :  { %v3920_v39 = vpop.permute.xlu2 %1420  ;;  %v3922_v40 = vpop.permute.xlu1 %1395 }
 0x2b0   :  { %v3924_v2 = vpop.permute.xlu0 %1393 }
 0x2b5   :  { %1683 = vrot.lane.b32.xlu2 %v1674_v54, %s2913_s29  ;;  %1710 = vrot.lane.b32.xlu1 %v1700_v21, %s2913_s29  ;;  %v1327_v21 = vadd.f32 %v3858_v20, %v1302_v22 }
 0x2b6   :  { %1708 = vrot.lane.b32.xlu0 %v1699_v56, %s2913_s29 }
 0x2b7   :  { %v3932_v58 = vpop.permute.xlu2 %1445  ;;  %v3934_v26 = vpop.permute.xlu1 %1418  ;;  %v1354_v29 = vadd.f32 %v3856_v24, %v1327_v21 }
 0x2b8   :  { %v3936_v61 = vpop.permute.xlu0 %1399 }
 0x2b9   :  { %v1379_v28 = vadd.f32 %v3912_v5, %v1354_v29 }
 0x2bd   :  { %1706 = vrot.lane.b32.xlu2 %v1698_v45, %s2913_s29  ;;  %1735 = vrot.lane.b32.xlu1 %v1726_v46, %s2914_s1  ;;  %v1777_v45 = vmul.f32 %v1776_v17, %v3876_v10  ;;  %v1803_v46 = vmul.f32 %v1801_v0, %v3880_v50 }
 0x2be   :  { %1733 = vrot.lane.b32.xlu0 %v1725_v9, %s2914_s1  ;;  %v1301_v9 = vadd.f32 %v3810_v23, %v3821_v41  ;;  %v1406_v41 = vadd.f32 %v3922_v40, %v1379_v28  ;;  %v1853_v28 = vstv %s2776_s26  ;;  %s2801_s26 = sld [smem:[#allocation7 + $0x2e]] }
 0x2bf   :  { %v3944_v30 = vpop.permute.xlu2 %1451  ;;  %v3946_v53 = vpop.permute.xlu1 %1424 }
 0x2c0   :  { %v3948_v44 = vpop.permute.xlu0 %1422  ;;  %v1326_v20 = vadd.f32 %v3860_v36, %v1301_v9  ;;  %v1303_v36 = vadd.f32 %v3846_v3, %v3840_v51 }
 0x2c2   :  { %v1353_v23 = vadd.f32 %v3874_v25, %v1326_v20  ;;  %v1805_v25 = vmul.f32 %v1801_v0, %v3898_v6  ;;  %v1609_v20 = vstv %s2766_s24  ;;  %s2798_s24 = sld [smem:[#allocation7 + $0x5d]] }
 0x2c5   :  { %1712 = vrot.lane.b32.xlu2 %v1701_v52, %s2913_s29  ;;  %1758 = vrot.lane.b32.xlu1 %v1750_v18, %s2914_s1 }
 0x2c6   :  { %1739 = vrot.lane.b32.xlu0 %v1728_v49, %s2914_s1  ;;  %v1828_v49 = vstv %s2775_s2  ;;  %s2797_s2 = sld [smem:[#allocation7 + $0x2c]] }
 0x2c7   :  { %v3956_v62 = vpop.permute.xlu2 %1474  ;;  %v3958_v12 = vpop.permute.xlu1 %1449  ;;  %v1829_v5 = vmul.f32 %v1828_v49, %v3876_v10  ;;  %v1832_v22 = vmul.f32 %v1828_v49, %v3894_v8 }
 0x2c8   :  { %v1448_v15 = vpop.permute.xlu0 %1447 }
 0x2cd   :  { %1737 = vrot.lane.b32.xlu2 %v1727_v11, %s2914_s1  ;;  %1764 = vrot.lane.b32.xlu1 %v1753_v7, %s2914_s1  ;;  %v1780_v11 = vmul.f32 %v1776_v17, %v3894_v8  ;;  %v1304_v7 = vadd.f32 %v3827_v33, %v3836_v19  ;;  %v1328_v33 = vadd.f32 %v3844_v35, %v1303_v36 }
 0x2ce   :  { %1762 = vrot.lane.b32.xlu0 %v1752_v34, %s2914_s1  ;;  %v1378_v34 = vadd.f32 %v3872_v27, %v1353_v23  ;;  %v1830_v23 = vmul.f32 %v1828_v49, %v3864_v37  ;;  %v1855_v36 = vmul.f32 %v1853_v28, %v3880_v50 }
 0x2cf   :  { %v3966_v55 = vpop.permute.xlu2 %1499  ;;  %v1473_v57 = vpop.permute.xlu1 %1472  ;;  %v1329_v40 = vadd.f32 %v3878_v31, %v1304_v7  ;;  %v1355_v31 = vadd.f32 %v3896_v14, %v1328_v33 }
 0x2d0   :  { %v3968_v13 = vpop.permute.xlu0 %1470  ;;  %v1405_v17 = vadd.f32 %v3924_v2, %v1378_v34  ;;  %v1804_v2 = vmul.f32 %v1801_v0, %v3910_v47 }
 0x2d1   :  { %v1356_v27 = vadd.f32 %v3892_v42, %v1329_v40 }
 0x2d3   :  { %v1381_v35 = vadd.f32 %v3890_v4, %v1356_v27  ;;  %v1854_v27 = vmul.f32 %v1853_v28, %v3882_v63 }
 0x2d5   :  { %1760 = vrot.lane.b32.xlu2 %v1751_v32, %s2914_s1  ;;  %1789 = vrot.lane.b32.xlu1 %v1779_v16, %s2915_s7  ;;  %v1431_v32 = vadd.f32 %v3920_v39, %v1406_v41  ;;  %v1430_v39 = vadd.f32 %v3934_v26, %v1405_v17  ;;  %v1831_v26 = vmul.f32 %v1828_v49, %v3862_v1 }
 0x2d6   :  { %1787 = vrot.lane.b32.xlu0 %v1778_v48, %s2915_s7  ;;  %v1408_v14 = vadd.f32 %v3936_v61, %v1381_v35 }
 0x2d7   :  { %v3978_v59 = vpop.permute.xlu2 %1522  ;;  %v1498_v54 = vpop.permute.xlu1 %1497  ;;  %v1458_v51 = vadd.f32 %v1448_v15, %v1431_v32  ;;  %v1380_v15 = vadd.f32 %v3908_v43, %v1355_v31  ;;  %v1457_v21 = vadd.f32 %v3932_v58, %v1430_v39 }
 0x2d8   :  { %v3981_v56 = vpop.permute.xlu0 %1476  ;;  %v1433_v58 = vadd.f32 %v3946_v53, %v1408_v14  ;;  %v1856_v53 = vmul.f32 %v1853_v28, %v3910_v47  ;;  %v1857_v14 = vmul.f32 %v1853_v28, %v3898_v6 }
 0x2d9   :  { %v1483_v16 = vadd.f32 %v1473_v57, %v1458_v51  ;;  %v1482_v57 = vadd.f32 %v3968_v13, %v1457_v21  ;;  %v1407_v4 = vadd.f32 %v3906_v38, %v1380_v15  ;;  %v1611_v38 = vmul.f32 %v1609_v20, %v3880_v50 }
 0x2da   :  { %v1880_v51 = vstv %s2777_s27  ;;  %s2803_s27 = sld [smem:[#allocation7 + $0x2f]] }
 0x2db   :  { %v1510_v42 = vadd.f32 %v3966_v55, %v1483_v16  ;;  %v1509_v55 = vadd.f32 %v1498_v54, %v1482_v57  ;;  %v1432_v29 = vadd.f32 %v3948_v44, %v1407_v4  ;;  %v1460_v54 = vadd.f32 %v3944_v30, %v1433_v58 }
 0x2dc   :  { %v1612_v57 = vmul.f32 %v1609_v20, %v3910_v47  ;;  %v1884_v4 = vmul.f32 %v1880_v51, %v3894_v8 }
 0x2dd   :  { %1785 = vrot.lane.b32.xlu2 %v1777_v45, %s2915_s7  ;;  %1812 = vrot.lane.b32.xlu1 %v1803_v46, %s2915_s7  ;;  %v1459_v41 = vadd.f32 %v3958_v12, %v1432_v29 }
 0x2de   :  { %1810 = vrot.lane.b32.xlu0 %v1802_v60, %s2915_s7  ;;  %v1600_v60 = vstv %s2765_s25  ;;  %s2799_s25 = sld [smem:[#allocation7 + $0x2d]] }
 0x2df   :  { %v3994_v52 = vpop.permute.xlu2 %1528  ;;  %v3996_v18 = vpop.permute.xlu1 %1503  ;;  %v1602_v61 = vmul.f32 %v1600_v60, %v3864_v37  ;;  %v1484_v34 = vadd.f32 %v3956_v62, %v1459_v41  ;;  %v1882_v62 = vmul.f32 %v1880_v51, %v3864_v37  ;;  %v1603_v21 = vmul.f32 %v1600_v60, %v3862_v1 }
 0x2e0   :  { %v4000_v24 = vpop.permute.xlu0 %1501 }
 0x2e1   :  { %v1511_v17 = vadd.f32 %v4000_v24, %v1484_v34  ;;  %v4093_v34 = vld [vmem:[#allocation5 + $0xd] sm:$0xff] }
 0x2e5   :  { %1791 = vrot.lane.b32.xlu2 %v1780_v11, %s2915_s7  ;;  %1837 = vrot.lane.b32.xlu1 %v1829_v5, %s2916_s8  ;;  %v1534_v11 = vadd.f32 %v3978_v59, %v1509_v55  ;;  %v1485_v5 = vadd.f32 %v3981_v56, %v1460_v54  ;;  %v1601_v59 = vmul.f32 %v1600_v60, %v3876_v10  ;;  %v4083_v54 = vld [vmem:[#allocation4 + $0xd] sm:$0xff] }
 0x2e6   :  { %1816 = vrot.lane.b32.xlu0 %v1805_v25, %s2915_s7  ;;  %v1610_v56 = vmul.f32 %v1609_v20, %v3882_v63 }
 0x2e7   :  { %v4016_v3 = vpop.permute.xlu2 %1553  ;;  %v4019_v19 = vpop.permute.xlu1 %1526  ;;  %v1512_v30 = vadd.f32 %v3996_v18, %v1485_v5 }
 0x2e8   :  { %v1525_v48 = vpop.permute.xlu0 %1524  ;;  %v1536_v39 = vadd.f32 %v4019_v19, %v1511_v17  ;;  %v1604_v19 = vmul.f32 %v1600_v60, %v3894_v8 }
 0x2e9   :  { %v1535_v0 = vadd.f32 %v1525_v48, %v1510_v42  ;;  %v1537_v16 = vadd.f32 %v3994_v52, %v1512_v30  ;;  %v1881_v48 = vmul.f32 %v1880_v51, %v3876_v10  ;;  %v1905_v52 = vstv %s2778_s28  ;;  %v4095_v30 = vld [vmem:[#allocation5 + $0x5] sm:$0xff]  ;;  %s2804_s28 = sld [smem:[#allocation7 + $0x60]] }
 0x2ea   :  { %v1563_v15 = vadd.f32 %v4016_v3, %v1536_v39  ;;  %v1613_v10 = vmul.f32 %v1609_v20, %v3898_v6  ;;  %v1908_v8 = vmul.f32 %v1905_v52, %v3910_v47 }
 0x2ed   :  { %1814 = vrot.lane.b32.xlu2 %v1804_v2, %s2915_s7  ;;  %1843 = vrot.lane.b32.xlu1 %v1832_v22, %s2916_s8 }
 0x2ee   :  { %1841 = vrot.lane.b32.xlu0 %v1831_v26, %s2916_s8 }
 0x2ef   :  { %v1577_v43 = vpop.permute.xlu2 %1576  ;;  %v1552_v45 = vpop.permute.xlu1 %1551 }
 0x2f0   :  { %v1562_v46 = vadd.f32 %v1552_v45, %v1535_v0  ;;  %v1550_v9 = vpop.permute.xlu0 %1549 }
 0x2f1   :  { %v1561_v7 = vadd.f32 %v1550_v9, %v1534_v11  ;;  %v1907_v11 = vmul.f32 %v1905_v52, %v3880_v50 }
 0x2f2   :  { %v1587_v13 = vadd.f32 %v1577_v43, %v1562_v46  ;;  %v1906_v43 = vmul.f32 %v1905_v52, %v3882_v63  ;;  %v1909_v63 = vmul.f32 %v1905_v52, %v3898_v6  ;;  %v1960_v6 = vstv %s2781_s30  ;;  %s2794_s30 = sld [smem:[#allocation7 + $0x5b]] }
 0x2f4   :  { %v1606_v44 = vadd.f32 %v1602_v61, %v1587_v13  ;;  %v1883_v61 = vmul.f32 %v1880_v51, %v3862_v1 }
 0x2f5   :  { %1839 = vrot.lane.b32.xlu2 %v1830_v23, %s2916_s8  ;;  %1866 = vrot.lane.b32.xlu1 %v1856_v53, %s2916_s8 }
 0x2f6   :  { %v1615_v49 = vadd.f32 %v1611_v38, %v1606_v44  ;;  %1864 = vrot.lane.b32.xlu0 %v1855_v36, %s2916_s8  ;;  %v4081_v38 = vld [vmem:[#allocation4 + $0x1d] sm:$0xff]  ;;  %v1962_v44 = vmul.f32 %v1960_v6, %v4083_v54 }
 0x2f7   :  { %v1630_v12 = vpop.permute.xlu2 %1629  ;;  %v1575_v32 = vpop.permute.xlu1 %1574  ;;  %v1963_v47 = vmul.f32 %v1960_v6, %v4081_v38 }
 0x2f8   :  { %v1586_v25 = vadd.f32 %v1575_v32, %v1561_v7  ;;  %v1556_v40 = vpop.permute.xlu0 %1555  ;;  %v1985_v32 = vstv %s2782_s4  ;;  %s2805_s4 = sld [smem:[#allocation7 + $0x30]] }
 0x2f9   :  { %v1564_v31 = vadd.f32 %v1556_v40, %v1537_v16  ;;  %v1987_v40 = vmul.f32 %v1985_v32, %v4093_v34  ;;  %v1986_v17 = vmul.f32 %v1985_v32, %v4095_v30 }
 0x2fa   :  { %v1605_v33 = vadd.f32 %v1601_v59, %v1586_v25 }
 0x2fc   :  { %v1614_v18 = vadd.f32 %v1610_v56, %v1605_v33  ;;  %v4103_v33 = vld [vmem:[#allocation4 + $0x25] sm:$0xff] }
 0x2fd   :  { %1862 = vrot.lane.b32.xlu2 %v1854_v27, %s2916_s8  ;;  %1891 = vrot.lane.b32.xlu1 %v1882_v62, %s2917_s10  ;;  %v2012_v62 = vstv %s2783_s5 }
 0x2fe   :  { %v1641_v24 = vadd.f32 %v1630_v12, %v1614_v18  ;;  %1889 = vrot.lane.b32.xlu0 %v1881_v48, %s2917_s10  ;;  %v4105_v18 = vld [vmem:[#allocation5 + $0x25] sm:$0xff] }
 0x2ff   :  { %v1636_v2 = vpop.permute.xlu2 %1635  ;;  %v1581_v22 = vpop.permute.xlu1 %1580 }
 0x300   :  { %v1589_v37 = vadd.f32 %v1581_v22, %v1564_v31  ;;  %v1579_v35 = vpop.permute.xlu0 %1578 }
 0x301   :  { %v1588_v42 = vadd.f32 %v1579_v35, %v1563_v15 }
 0x302   :  { %v1608_v26 = vadd.f32 %v1604_v19, %v1589_v37  ;;  %v4113_v19 = vld [vmem:[#allocation5 + $0x1d] sm:$0xff] }
 0x303   :  { %v1607_v0 = vadd.f32 %v1603_v21, %v1588_v42  ;;  %v1988_v42 = vmul.f32 %v1985_v32, %v4113_v19 }
 0x304   :  { %v1617_v3 = vadd.f32 %v1613_v10, %v1608_v26  ;;  %v2016_v10 = vmul.f32 %v2012_v62, %v4103_v33  ;;  %v2015_v26 = vmul.f32 %v2012_v62, %v4081_v38 }
 0x305   :  { %1868 = vrot.lane.b32.xlu2 %v1857_v14, %s2916_s8  ;;  %v1616_v45 = vadd.f32 %v1612_v57, %v1607_v0  ;;  %1914 = vrot.lane.b32.xlu1 %v1906_v43, %s2917_s10 }
 0x306   :  { %v1644_v58 = vadd.f32 %v1636_v2, %v1617_v3  ;;  %1895 = vrot.lane.b32.xlu0 %v1884_v4, %s2917_s10  ;;  %v1989_v2 = vmul.f32 %v1985_v32, %v4105_v18 }
 0x307   :  { %v1659_v55 = vpop.permute.xlu2 %1658  ;;  %v1634_v46 = vpop.permute.xlu1 %1633 }
 0x308   :  { %v1643_v9 = vadd.f32 %v1634_v46, %v1616_v45  ;;  %v1632_v29 = vpop.permute.xlu0 %1631  ;;  %v2037_v45 = vstv %s2784_s6 }
 0x309   :  { %v1642_v60 = vadd.f32 %v1632_v29, %v1615_v49  ;;  %v4091_v49 = vld [vmem:[#allocation4 + $0x5] sm:$0xff]  ;;  %v2039_v46 = vmul.f32 %v2037_v45, %v4093_v34 }
 0x30a   :  { %v1668_v20 = vadd.f32 %v1659_v55, %v1643_v9  ;;  %v1961_v25 = vmul.f32 %v1960_v6, %v4091_v49  ;;  %v2013_v31 = vmul.f32 %v2012_v62, %v4091_v49  ;;  %v2040_v55 = vmul.f32 %v2037_v45, %v4113_v19 }
 0x30d   :  { %1893 = vrot.lane.b32.xlu2 %v1883_v61, %s2917_s10  ;;  %1920 = vrot.lane.b32.xlu1 %v1909_v63, %s2917_s10  ;;  %v2064_v63 = vstv %s2785_s9  ;;  %s2696_s9 = sshll.u32 %s4336_s3, 4  ;;  %s2697_s9 = int_to_ptr.hbm [resolvable:$true] %s2696_s9 }
 0x30e   :  { %1918 = vrot.lane.b32.xlu0 %v1908_v8, %s2917_s10 }
 0x30f   :  { %v1684_v13 = vpop.permute.xlu2 %1683  ;;  %v1657_v28 = vpop.permute.xlu1 %1656 }
 0x310   :  { %v1667_v23 = vadd.f32 %v1657_v28, %v1642_v60  ;;  %v1655_v41 = vpop.permute.xlu0 %1654  ;;  %v2066_v28 = vmul.f32 %v2064_v63, %v4083_v54 }
 0x311   :  { %v1666_v53 = vadd.f32 %v1655_v41, %v1641_v24  ;;  %v1964_v24 = vmul.f32 %v1960_v6, %v4103_v33 }
 0x312   :  { %v1694_v1 = vadd.f32 %v1684_v13, %v1667_v23  ;;  %v2038_v13 = vmul.f32 %v2037_v45, %v4095_v30  ;;  %v2065_v23 = vmul.f32 %v2064_v63, %v4091_v49 }
 0x315   :  { %1916 = vrot.lane.b32.xlu2 %v1907_v11, %s2917_s10  ;;  %1973 = vrot.lane.b32.xlu1 %v1963_v47, %s2912_s23  ;;  %v2089_v11 = vstv %s2786_s11 }
 0x316   :  { %1971 = vrot.lane.b32.xlu0 %v1962_v44, %s2912_s23 }
 0x317   :  { %v1707_v36 = vpop.permute.xlu2 %1706  ;;  %v1682_v5 = vpop.permute.xlu1 %1681 }
 0x318   :  { %v1693_v7 = vadd.f32 %v1682_v5, %v1666_v53  ;;  %v1661_v12 = vpop.permute.xlu0 %1660  ;;  %v2090_v5 = vmul.f32 %v2089_v11, %v4095_v30 }
 0x319   :  { %v1669_v50 = vadd.f32 %v1661_v12, %v1644_v58  ;;  %v2014_v58 = vmul.f32 %v2012_v62, %v4083_v54 }
 0x31a   :  { %v1718_v59 = vadd.f32 %v1707_v36, %v1693_v7  ;;  %v2041_v36 = vmul.f32 %v2037_v45, %v4105_v18  ;;  %v2068_v7 = vmul.f32 %v2064_v63, %v4103_v33 }
 0x31d   :  { %1969 = vrot.lane.b32.xlu2 %v1961_v25, %s2912_s23  ;;  %1996 = vrot.lane.b32.xlu1 %v1987_v40, %s2912_s23 }
 0x31e   :  { %1994 = vrot.lane.b32.xlu0 %v1986_v17, %s2912_s23  ;;  %v2067_v17 = vmul.f32 %v2064_v63, %v4081_v38 }
 0x31f   :  { %v1713_v51 = vpop.permute.xlu2 %1712  ;;  %v1688_v56 = vpop.permute.xlu1 %1687 }
 0x320   :  { %v1696_v27 = vadd.f32 %v1688_v56, %v1669_v50  ;;  %v1686_v39 = vpop.permute.xlu0 %1685  ;;  %v2092_v56 = vmul.f32 %v2089_v11, %v4113_v19 }
 0x321   :  { %v1695_v16 = vadd.f32 %v1686_v39, %v1668_v20 }
 0x322   :  { %v1721_v48 = vadd.f32 %v1713_v51, %v1696_v27  ;;  %v2093_v51 = vmul.f32 %v2089_v11, %v4105_v18 }
 0x325   :  { %1975 = vrot.lane.b32.xlu2 %v1964_v24, %s2912_s23  ;;  %2021 = vrot.lane.b32.xlu1 %v2013_v31, %s2913_s29  ;;  %v2116_v31 = vstv %s2787_s12 }
 0x326   :  { %2000 = vrot.lane.b32.xlu0 %v1989_v2, %s2912_s23  ;;  %v2091_v2 = vmul.f32 %v2089_v11, %v4093_v34 }
 0x327   :  { %v1738_v15 = vpop.permute.xlu2 %1737  ;;  %v1711_v22 = vpop.permute.xlu1 %1710 }
 0x328   :  { %v1720_v37 = vadd.f32 %v1711_v22, %v1695_v16  ;;  %v1709_v35 = vpop.permute.xlu0 %1708  ;;  %v2118_v22 = vmul.f32 %v2116_v31, %v4083_v54 }
 0x329   :  { %v1719_v52 = vadd.f32 %v1709_v35, %v1694_v1 }
 0x32a   :  { %v1747_v21 = vadd.f32 %v1738_v15, %v1720_v37  ;;  %v2119_v15 = vmul.f32 %v2116_v31, %v4081_v38 }
 0x32d   :  { %1998 = vrot.lane.b32.xlu2 %v1988_v42, %s2912_s23  ;;  %2027 = vrot.lane.b32.xlu1 %v2016_v10, %s2913_s29  ;;  %v2141_v10 = vstv %s2788_s13 }
 0x32e   :  { %2025 = vrot.lane.b32.xlu0 %v2015_v26, %s2913_s29 }
 0x32f   :  { %v1761_v14 = vpop.permute.xlu2 %1760  ;;  %v1736_v57 = vpop.permute.xlu1 %1735 }
 0x330   :  { %v1746_v0 = vadd.f32 %v1736_v57, %v1719_v52  ;;  %v1734_v43 = vpop.permute.xlu0 %1733  ;;  %v2143_v57 = vmul.f32 %v2141_v10, %v4093_v34 }
 0x331   :  { %v1745_v3 = vadd.f32 %v1734_v43, %v1718_v59 }
 0x332   :  { %v1771_v4 = vadd.f32 %v1761_v14, %v1746_v0  ;;  %v2117_v14 = vmul.f32 %v2116_v31, %v4091_v49  ;;  %v2142_v0 = vmul.f32 %v2141_v10, %v4095_v30 }
 0x335   :  { %2023 = vrot.lane.b32.xlu2 %v2014_v58, %s2913_s29  ;;  %2050 = vrot.lane.b32.xlu1 %v2040_v55, %s2913_s29  ;;  %v2168_v58 = vstv %s2789_s14 }
 0x336   :  { %2048 = vrot.lane.b32.xlu0 %v2039_v46, %s2913_s29 }
 0x337   :  { %v1786_v9 = vpop.permute.xlu2 %1785  ;;  %v1759_v29 = vpop.permute.xlu1 %1758 }
 0x338   :  { %v1770_v60 = vadd.f32 %v1759_v29, %v1745_v3  ;;  %v1740_v20 = vpop.permute.xlu0 %1739  ;;  %v2169_v29 = vmul.f32 %v2168_v58, %v4091_v49 }
 0x339   :  { %v1748_v61 = vadd.f32 %v1740_v20, %v1721_v48 }
 0x33a   :  { %v1797_v8 = vadd.f32 %v1786_v9, %v1770_v60  ;;  %v2120_v9 = vmul.f32 %v2116_v31, %v4103_v33  ;;  %v2145_v60 = vmul.f32 %v2141_v10, %v4105_v18 }
 0x33d   :  { %2046 = vrot.lane.b32.xlu2 %v2038_v13, %s2913_s29  ;;  %2075 = vrot.lane.b32.xlu1 %v2066_v28, %s2914_s1 }
 0x33e   :  { %2073 = vrot.lane.b32.xlu0 %v2065_v23, %s2914_s1  ;;  %v2144_v23 = vmul.f32 %v2141_v10, %v4113_v19 }
 0x33f   :  { %v1792_v41 = vpop.permute.xlu2 %1791  ;;  %v1765_v53 = vpop.permute.xlu1 %1764 }
 0x340   :  { %v1773_v1 = vadd.f32 %v1765_v53, %v1748_v61  ;;  %v1763_v6 = vpop.permute.xlu0 %1762  ;;  %v2171_v53 = vmul.f32 %v2168_v58, %v4081_v38 }
 0x341   :  { %v1772_v47 = vadd.f32 %v1763_v6, %v1747_v21 }
 0x342   :  { %v1800_v44 = vadd.f32 %v1792_v41, %v1773_v1  ;;  %v2172_v41 = vmul.f32 %v2168_v58, %v4103_v33 }
 0x345   :  { %2052 = vrot.lane.b32.xlu2 %v2041_v36, %s2913_s29  ;;  %2098 = vrot.lane.b32.xlu1 %v2090_v5, %s2914_s1 }
 0x346   :  { %2079 = vrot.lane.b32.xlu0 %v2068_v7, %s2914_s1 }
 0x347   :  { %v1815_v12 = vpop.permute.xlu2 %1814  ;;  %v1790_v50 = vpop.permute.xlu1 %1789 }
 0x348   :  { %v1799_v32 = vadd.f32 %v1790_v50, %v1772_v47  ;;  %v1788_v59 = vpop.permute.xlu0 %1787  ;;  %v2170_v50 = vmul.f32 %v2168_v58, %v4083_v54 }
 0x349   :  { %v1798_v25 = vadd.f32 %v1788_v59, %v1771_v4  ;;  %v1949_v59 = vstv %s2780_s17 }
 0x34a   :  { %v1824_v40 = vadd.f32 %v1815_v12, %v1799_v32  ;;  %v2193_v12 = vstv %s2790_s16  ;;  %v1952_v58 = vmul.f32 %v1949_v59, %v4113_v19 }
 0x34b   :  { %v2196_v32 = vmul.f32 %v2193_v12, %v4113_v19 }
 0x34d   :  { %2077 = vrot.lane.b32.xlu2 %v2067_v17, %s2914_s1  ;;  %2104 = vrot.lane.b32.xlu1 %v2093_v51, %s2914_s1  ;;  %v1951_v17 = vmul.f32 %v1949_v59, %v4093_v34 }
 0x34e   :  { %2102 = vrot.lane.b32.xlu0 %v2092_v56, %s2914_s1 }
 0x34f   :  { %v1840_v27 = vpop.permute.xlu2 %1839  ;;  %v1813_v39 = vpop.permute.xlu1 %1812 }
 0x350   :  { %v1823_v62 = vadd.f32 %v1813_v39, %v1798_v25  ;;  %v1811_v16 = vpop.permute.xlu0 %1810 }
 0x351   :  { %v1822_v48 = vadd.f32 %v1811_v16, %v1797_v8 }
 0x352   :  { %v1850_v24 = vadd.f32 %v1840_v27, %v1823_v62 }
 0x355   :  { %2100 = vrot.lane.b32.xlu2 %v2091_v2, %s2914_s1  ;;  %2129 = vrot.lane.b32.xlu1 %v2119_v15, %s2915_s7  ;;  %v1950_v2 = vmul.f32 %v1949_v59, %v4095_v30  ;;  %v2194_v15 = vmul.f32 %v2193_v12, %v4095_v30 }
 0x356   :  { %2127 = vrot.lane.b32.xlu0 %v2118_v22, %s2915_s7 }
 0x357   :  { %v1863_v37 = vpop.permute.xlu2 %1862  ;;  %v1838_v35 = vpop.permute.xlu1 %1837 }
 0x358   :  { %v1849_v52 = vadd.f32 %v1838_v35, %v1822_v48  ;;  %v1817_v21 = vpop.permute.xlu0 %1816 }
 0x359   :  { %v1825_v42 = vadd.f32 %v1817_v21, %v1800_v44  ;;  %v1940_v44 = vstv %s2779_s15 }
 0x35a   :  { %v1874_v26 = vadd.f32 %v1863_v37, %v1849_v52  ;;  %v1942_v5 = vmul.f32 %v1940_v44, %v4083_v54  ;;  %v1941_v39 = vmul.f32 %v1940_v44, %v4091_v49  ;;  %v1944_v10 = vmul.f32 %v1940_v44, %v4103_v33 }
 0x35d   :  { %2125 = vrot.lane.b32.xlu2 %v2117_v14, %s2915_s7  ;;  %2152 = vrot.lane.b32.xlu1 %v2143_v57, %s2915_s7  ;;  %v2245_v57 = vstv %s2792_s19 }
 0x35e   :  { %2150 = vrot.lane.b32.xlu0 %v2142_v0, %s2915_s7  ;;  %v1943_v0 = vmul.f32 %v1940_v44, %v4081_v38  ;;  %v2247_v44 = vmul.f32 %v2245_v57, %v4093_v34 }
 0x35f   :  { %v1869_v43 = vpop.permute.xlu2 %1868  ;;  %v1844_v3 = vpop.permute.xlu1 %1843 }
 0x360   :  { %v1852_v4 = vadd.f32 %v1844_v3, %v1825_v42  ;;  %v1842_v45 = vpop.permute.xlu0 %1841  ;;  %v1953_v3 = vmul.f32 %v1949_v59, %v4105_v18  ;;  %v4213_v59 = vld [vmem:[#allocation5 + $0xe] sm:$0xff] }
 0x361   :  { %v1851_v55 = vadd.f32 %v1842_v45, %v1824_v40  ;;  %v2195_v40 = vmul.f32 %v2193_v12, %v4093_v34  ;;  %v2246_v45 = vmul.f32 %v2245_v57, %v4095_v30 }
 0x362   :  { %v1877_v46 = vadd.f32 %v1869_v43, %v1852_v4 }
 0x365   :  { %2131 = vrot.lane.b32.xlu2 %v2120_v9, %s2915_s7  ;;  %2177 = vrot.lane.b32.xlu1 %v2169_v29, %s2916_s8 }
 0x366   :  { %2156 = vrot.lane.b32.xlu0 %v2145_v60, %s2915_s7 }
 0x367   :  { %v1894_v20 = vpop.permute.xlu2 %1893  ;;  %v1867_v61 = vpop.permute.xlu1 %1866 }
 0x368   :  { %v1876_v63 = vadd.f32 %v1867_v61, %v1851_v55  ;;  %v1865_v8 = vpop.permute.xlu0 %1864 }
 0x369   :  { %v1875_v13 = vadd.f32 %v1865_v8, %v1850_v24  ;;  %v2220_v24 = vstv %s2791_s18 }
 0x36a   :  { %v1903_v28 = vadd.f32 %v1894_v20, %v1876_v63  ;;  %v2222_v22 = vmul.f32 %v2220_v24, %v4083_v54  ;;  %v2221_v35 = vmul.f32 %v2220_v24, %v4091_v49  ;;  %v2197_v49 = vmul.f32 %v2193_v12, %v4105_v18  ;;  %v4211_v12 = vld [vmem:[#allocation4 + $0x6] sm:$0xff] }
 0x36b   :  { %v2223_v30 = vmul.f32 %v2220_v24, %v4081_v38 }
 0x36d   :  { %2154 = vrot.lane.b32.xlu2 %v2144_v23, %s2915_s7  ;;  %2183 = vrot.lane.b32.xlu1 %v2172_v41, %s2916_s8 }
 0x36e   :  { %2181 = vrot.lane.b32.xlu0 %v2171_v53, %s2916_s8 }
 0x36f   :  { %v1917_v1 = vpop.permute.xlu2 %1916  ;;  %v1892_v6 = vpop.permute.xlu1 %1891 }
 0x370   :  { %v1902_v11 = vadd.f32 %v1892_v6, %v1875_v13  ;;  %v1890_v47 = vpop.permute.xlu0 %1889  ;;  %v4201_v6 = vld [vmem:[#allocation4 + $0x1e] sm:$0xff] }
 0x371   :  { %v1901_v36 = vadd.f32 %v1890_v47, %v1874_v26  ;;  %v4203_v47 = vld [vmem:[#allocation4 + $0xe] sm:$0xff] }
 0x372   :  { %v1927_v7 = vadd.f32 %v1917_v1, %v1902_v11 }
 0x374   :  { %v1946_v25 = vadd.f32 %v1942_v5, %v1927_v7 }
 0x375   :  { %2179 = vrot.lane.b32.xlu2 %v2170_v50, %s2916_s8  ;;  %2206 = vrot.lane.b32.xlu1 %v2196_v32, %s2916_s8 }
 0x376   :  { %2204 = vrot.lane.b32.xlu0 %v2195_v40, %s2916_s8  ;;  %v1955_v56 = vadd.f32 %v1951_v17, %v1946_v25  ;;  %v2325_v25 = vstv %s2796_s0  ;;  %v4215_v40 = vld [vmem:[#allocation5 + $0x6] sm:$0xff] }
 0x377   :  { %v1970_v51 = vpop.permute.xlu2 %1969  ;;  %v1915_v27 = vpop.permute.xlu1 %1914 }
 0x378   :  { %v1926_v62 = vadd.f32 %v1915_v27, %v1901_v36  ;;  %v1896_v16 = vpop.permute.xlu0 %1895  ;;  %v2326_v27 = vmul.f32 %v2325_v25, %v4215_v40 }
 0x379   :  { %v1904_v48 = vadd.f32 %v1896_v16, %v1877_v46  ;;  %v2224_v46 = vmul.f32 %v2220_v24, %v4103_v33  ;;  %v2248_v33 = vmul.f32 %v2245_v57, %v4113_v19  ;;  %v4223_v16 = vld [vmem:[#allocation4 + $0x26] sm:$0xff] }
 0x37a   :  { %v1945_v31 = vadd.f32 %v1941_v39, %v1926_v62 }
 0x37c   :  { %v1954_v37 = vadd.f32 %v1950_v2, %v1945_v31  ;;  %v2352_v31 = vstv %s2797_s2 }
 0x37d   :  { %2202 = vrot.lane.b32.xlu2 %v2194_v15, %s2916_s8  ;;  %2231 = vrot.lane.b32.xlu1 %v2222_v22, %s2917_s10  ;;  %v4225_v15 = vld [vmem:[#allocation5 + $0x26] sm:$0xff] }
 0x37e   :  { %v1981_v52 = vadd.f32 %v1970_v51, %v1954_v37  ;;  %2229 = vrot.lane.b32.xlu0 %v2221_v35, %s2917_s10  ;;  %v2353_v35 = vmul.f32 %v2352_v31, %v4211_v12 }
 0x37f   :  { %v1976_v21 = vpop.permute.xlu2 %1975  ;;  %v1921_v42 = vpop.permute.xlu1 %1920 }
 0x380   :  { %v1929_v26 = vadd.f32 %v1921_v42, %v1904_v48  ;;  %v1919_v14 = vpop.permute.xlu0 %1918 }
 0x381   :  { %v1928_v54 = vadd.f32 %v1919_v14, %v1903_v28  ;;  %v2249_v28 = vmul.f32 %v2245_v57, %v4105_v18  ;;  %v2300_v18 = vstv %s2795_s20 }
 0x382   :  { %v1948_v43 = vadd.f32 %v1944_v10, %v1929_v26  ;;  %v2303_v19 = vmul.f32 %v2300_v18, %v4201_v6  ;;  %v2302_v36 = vmul.f32 %v2300_v18, %v4203_v47  ;;  %v2301_v51 = vmul.f32 %v2300_v18, %v4211_v12  ;;  %v4233_v10 = vld [vmem:[#allocation5 + $0x1e] sm:$0xff] }
 0x383   :  { %v1947_v4 = vadd.f32 %v1943_v0, %v1928_v54  ;;  %v2304_v37 = vmul.f32 %v2300_v18, %v4223_v16  ;;  %v2328_v54 = vmul.f32 %v2325_v25, %v4233_v10 }
 0x384   :  { %v1957_v55 = vadd.f32 %v1953_v3, %v1948_v43  ;;  %v2356_v43 = vmul.f32 %v2352_v31, %v4223_v16  ;;  %v2355_v3 = vmul.f32 %v2352_v31, %v4201_v6 }
 0x385   :  { %2208 = vrot.lane.b32.xlu2 %v2197_v49, %s2916_s8  ;;  %2254 = vrot.lane.b32.xlu1 %v2246_v45, %s2917_s10  ;;  %v1956_v9 = vadd.f32 %v1952_v58, %v1947_v4 }
 0x386   :  { %v1984_v29 = vadd.f32 %v1976_v21, %v1957_v55  ;;  %2235 = vrot.lane.b32.xlu0 %v2224_v46, %s2917_s10 }
 0x387   :  { %v1999_v60 = vpop.permute.xlu2 %1998  ;;  %v1974_v20 = vpop.permute.xlu1 %1973 }
 0x388   :  { %v1983_v61 = vadd.f32 %v1974_v20, %v1956_v9  ;;  %v1972_v63 = vpop.permute.xlu0 %1971  ;;  %v2377_v9 = vstv %s2798_s24 }
 0x389   :  { %v1982_v8 = vadd.f32 %v1972_v63, %v1955_v56  ;;  %v2327_v56 = vmul.f32 %v2325_v25, %v4213_v59  ;;  %v2379_v20 = vmul.f32 %v2377_v9, %v4213_v59 }
 0x38a   :  { %v2008_v13 = vadd.f32 %v1999_v60, %v1983_v61  ;;  %v2380_v60 = vmul.f32 %v2377_v9, %v4233_v10 }
 0x38d   :  { %2233 = vrot.lane.b32.xlu2 %v2223_v30, %s2917_s10  ;;  %2260 = vrot.lane.b32.xlu1 %v2249_v28, %s2917_s10  ;;  %v2404_v28 = vstv %s2799_s25 }
 0x38e   :  { %2258 = vrot.lane.b32.xlu0 %v2248_v33, %s2917_s10 }
 0x38f   :  { %v2024_v23 = vpop.permute.xlu2 %2023  ;;  %v1997_v41 = vpop.permute.xlu1 %1996 }
 0x390   :  { %v2007_v53 = vadd.f32 %v1997_v41, %v1982_v8  ;;  %v1995_v1 = vpop.permute.xlu0 %1994  ;;  %v2406_v41 = vmul.f32 %v2404_v28, %v4203_v47 }
 0x391   :  { %v2006_v11 = vadd.f32 %v1995_v1, %v1981_v52  ;;  %v2329_v52 = vmul.f32 %v2325_v25, %v4225_v15 }
 0x392   :  { %v2034_v38 = vadd.f32 %v2024_v23, %v2007_v53  ;;  %v2378_v23 = vmul.f32 %v2377_v9, %v4215_v40  ;;  %v2405_v53 = vmul.f32 %v2404_v28, %v4211_v12 }
 0x395   :  { %2256 = vrot.lane.b32.xlu2 %v2247_v44, %s2917_s10  ;;  %2313 = vrot.lane.b32.xlu1 %v2303_v19, %s2912_s23 }
 0x396   :  { %2311 = vrot.lane.b32.xlu0 %v2302_v36, %s2912_s23 }
 0x397   :  { %v2047_v5 = vpop.permute.xlu2 %2046  ;;  %v2022_v7 = vpop.permute.xlu1 %2021 }
 0x398   :  { %v2033_v50 = vadd.f32 %v2022_v7, %v2006_v11  ;;  %v2001_v32 = vpop.permute.xlu0 %2000 }
 0x399   :  { %v2009_v34 = vadd.f32 %v2001_v32, %v1984_v29  ;;  %v2354_v29 = vmul.f32 %v2352_v31, %v4203_v47 }
 0x39a   :  { %v2058_v17 = vadd.f32 %v2047_v5, %v2033_v50  ;;  %v2381_v5 = vmul.f32 %v2377_v9, %v4225_v15  ;;  %v2408_v50 = vmul.f32 %v2404_v28, %v4223_v16 }
 0x39d   :  { %2309 = vrot.lane.b32.xlu2 %v2301_v51, %s2912_s23  ;;  %2336 = vrot.lane.b32.xlu1 %v2327_v56, %s2912_s23 }
 0x39e   :  { %2334 = vrot.lane.b32.xlu0 %v2326_v27, %s2912_s23  ;;  %v2407_v27 = vmul.f32 %v2404_v28, %v4201_v6 }
 0x39f   :  { %v2053_v39 = vpop.permute.xlu2 %2052  ;;  %v2028_v62 = vpop.permute.xlu1 %2027 }
 0x3a0   :  { %v2036_v48 = vadd.f32 %v2028_v62, %v2009_v34  ;;  %v2026_v24 = vpop.permute.xlu0 %2025 }
 0x3a1   :  { %v2035_v2 = vadd.f32 %v2026_v24, %v2008_v13 }
 0x3a2   :  { %v2061_v22 = vadd.f32 %v2053_v39, %v2036_v48 }
 0x3a5   :  { %2315 = vrot.lane.b32.xlu2 %v2304_v37, %s2912_s23  ;;  %2361 = vrot.lane.b32.xlu1 %v2353_v35, %s2913_s29  ;;  %v2456_v35 = vstv %s2801_s26 }
 0x3a6   :  { %2340 = vrot.lane.b32.xlu0 %v2329_v52, %s2912_s23 }
 0x3a7   :  { %v2078_v21 = vpop.permute.xlu2 %2077  ;;  %v2051_v42 = vpop.permute.xlu1 %2050 }
 0x3a8   :  { %v2060_v26 = vadd.f32 %v2051_v42, %v2035_v2  ;;  %v2049_v14 = vpop.permute.xlu0 %2048  ;;  %v2458_v42 = vmul.f32 %v2456_v35, %v4203_v47 }
 0x3a9   :  { %v2059_v57 = vadd.f32 %v2049_v14, %v2034_v38 }
 0x3aa   :  { %v2087_v0 = vadd.f32 %v2078_v21, %v2060_v26  ;;  %v2459_v21 = vmul.f32 %v2456_v35, %v4201_v6 }
 0x3ad   :  { %2338 = vrot.lane.b32.xlu2 %v2328_v54, %s2912_s23  ;;  %2367 = vrot.lane.b32.xlu1 %v2356_v43, %s2913_s29  ;;  %s2800_s23 = sld [smem:[#allocation7 + $0x5e]] }
 0x3ae   :  { %2365 = vrot.lane.b32.xlu0 %v2355_v3, %s2913_s29 }
 0x3af   :  { %v2101_v49 = vpop.permute.xlu2 %2100  ;;  %v2076_v4 = vpop.permute.xlu1 %2075 }
 0x3b0   :  { %v2086_v45 = vadd.f32 %v2076_v4, %v2059_v57  ;;  %v2074_v58 = vpop.permute.xlu0 %2073 }
 0x3b1   :  { %v2085_v55 = vadd.f32 %v2074_v58, %v2058_v17 }
 0x3b2   :  { %v2111_v46 = vadd.f32 %v2101_v49, %v2086_v45  ;;  %v2457_v49 = vmul.f32 %v2456_v35, %v4211_v12 }
 0x3b3   :  { %v2429_v44 = vstv %s2800_s23 }
 0x3b4   :  { %v2430_v7 = vmul.f32 %v2429_v44, %v4215_v40  ;;  %v2433_v39 = vmul.f32 %v2429_v44, %v4225_v15  ;;  %v2432_v62 = vmul.f32 %v2429_v44, %v4233_v10  ;;  %v2431_v52 = vmul.f32 %v2429_v44, %v4213_v59 }
 0x3b5   :  { %2363 = vrot.lane.b32.xlu2 %v2354_v29, %s2913_s29  ;;  %2390 = vrot.lane.b32.xlu1 %v2380_v60, %s2913_s29  ;;  %v2508_v29 = vstv %s2803_s27 }
 0x3b6   :  { %2388 = vrot.lane.b32.xlu0 %v2379_v20, %s2913_s29 }
 0x3b7   :  { %v2126_v61 = vpop.permute.xlu2 %2125  ;;  %v2099_v63 = vpop.permute.xlu1 %2098 }
 0x3b8   :  { %v2110_v8 = vadd.f32 %v2099_v63, %v2085_v55  ;;  %v2080_v13 = vpop.permute.xlu0 %2079  ;;  %v2509_v63 = vmul.f32 %v2508_v29, %v4211_v12 }
 0x3b9   :  { %v2088_v30 = vadd.f32 %v2080_v13, %v2061_v22 }
 0x3ba   :  { %v2137_v33 = vadd.f32 %v2126_v61, %v2110_v8  ;;  %v2460_v61 = vmul.f32 %v2456_v35, %v4223_v16 }
 0x3bd   :  { %2386 = vrot.lane.b32.xlu2 %v2378_v23, %s2913_s29  ;;  %2415 = vrot.lane.b32.xlu1 %v2406_v41, %s2914_s1 }
 0x3be   :  { %2413 = vrot.lane.b32.xlu0 %v2405_v53, %s2914_s1 }
 0x3bf   :  { %v2132_v1 = vpop.permute.xlu2 %2131  ;;  %v2105_v11 = vpop.permute.xlu1 %2104 }
 0x3c0   :  { %v2113_v38 = vadd.f32 %v2105_v11, %v2088_v30  ;;  %v2103_v18 = vpop.permute.xlu0 %2102  ;;  %v2511_v11 = vmul.f32 %v2508_v29, %v4201_v6 }
 0x3c1   :  { %v2112_v19 = vadd.f32 %v2103_v18, %v2087_v0 }
 0x3c2   :  { %v2140_v36 = vadd.f32 %v2132_v1, %v2113_v38  ;;  %v2512_v1 = vmul.f32 %v2508_v29, %v4223_v16 }
 0x3c5   :  { %2392 = vrot.lane.b32.xlu2 %v2381_v5, %s2913_s29  ;;  %2438 = vrot.lane.b32.xlu1 %v2430_v7, %s2914_s1  ;;  %s2802_s29 = sld [smem:[#allocation7 + $0x5f]] }
 0x3c6   :  { %2419 = vrot.lane.b32.xlu0 %v2408_v50, %s2914_s1 }
 0x3c7   :  { %v2155_v32 = vpop.permute.xlu2 %2154  ;;  %v2130_v34 = vpop.permute.xlu1 %2129 }
 0x3c8   :  { %v2139_v25 = vadd.f32 %v2130_v34, %v2112_v19  ;;  %v2128_v17 = vpop.permute.xlu0 %2127  ;;  %v2510_v34 = vmul.f32 %v2508_v29, %v4203_v47 }
 0x3c9   :  { %v2138_v51 = vadd.f32 %v2128_v17, %v2111_v46  ;;  %v2289_v17 = vstv %s2794_s30 }
 0x3ca   :  { %v2164_v56 = vadd.f32 %v2155_v32, %v2139_v25  ;;  %v2533_v32 = vstv %s2804_s28  ;;  %v2292_v29 = vmul.f32 %v2289_v17, %v4233_v10 }
 0x3cb   :  { %v2481_v43 = vstv %s2802_s29  ;;  %v2536_v25 = vmul.f32 %v2533_v32, %v4233_v10 }
 0x3cc   :  { %v2483_v4 = vmul.f32 %v2481_v43, %v4213_v59  ;;  %v2482_v45 = vmul.f32 %v2481_v43, %v4215_v40  ;;  %v2485_v8 = vmul.f32 %v2481_v43, %v4225_v15  ;;  %v2484_v53 = vmul.f32 %v2481_v43, %v4233_v10 }
 0x3cd   :  { %2417 = vrot.lane.b32.xlu2 %v2407_v27, %s2914_s1  ;;  %2444 = vrot.lane.b32.xlu1 %v2433_v39, %s2914_s1  ;;  %v2291_v27 = vmul.f32 %v2289_v17, %v4213_v59 }
 0x3ce   :  { %2442 = vrot.lane.b32.xlu0 %v2432_v62, %s2914_s1 }
 0x3cf   :  { %v2180_v48 = vpop.permute.xlu2 %2179  ;;  %v2153_v24 = vpop.permute.xlu1 %2152 }
 0x3d0   :  { %v2163_v31 = vadd.f32 %v2153_v24, %v2138_v51  ;;  %v2151_v2 = vpop.permute.xlu0 %2150 }
 0x3d1   :  { %v2162_v22 = vadd.f32 %v2151_v2, %v2137_v33 }
 0x3d2   :  { %v2190_v37 = vadd.f32 %v2180_v48, %v2163_v31 }
 0x3d5   :  { %2440 = vrot.lane.b32.xlu2 %v2431_v52, %s2914_s1  ;;  %2469 = vrot.lane.b32.xlu1 %v2459_v21, %s2915_s7  ;;  %s2793_s1 = sld [smem:[#allocation7 + $0x2a]]  ;;  %v2290_v52 = vmul.f32 %v2289_v17, %v4215_v40  ;;  %v2534_v21 = vmul.f32 %v2533_v32, %v4215_v40 }
 0x3d6   :  { %2467 = vrot.lane.b32.xlu0 %v2458_v42, %s2915_s7 }
 0x3d7   :  { %v2203_v26 = vpop.permute.xlu2 %2202  ;;  %v2178_v14 = vpop.permute.xlu1 %2177 }
 0x3d8   :  { %v2189_v57 = vadd.f32 %v2178_v14, %v2162_v22  ;;  %v2157_v0 = vpop.permute.xlu0 %2156 }
 0x3d9   :  { %v2165_v54 = vadd.f32 %v2157_v0, %v2140_v36 }
 0x3da   :  { %v2214_v3 = vadd.f32 %v2203_v26, %v2189_v57 }
 0x3db   :  { %v2280_v36 = vstv %s2793_s1 }
 0x3dc   :  { %v2282_v7 = vmul.f32 %v2280_v36, %v4203_v47  ;;  %v2281_v24 = vmul.f32 %v2280_v36, %v4211_v12  ;;  %v2284_v43 = vmul.f32 %v2280_v36, %v4223_v16 }
 0x3dd   :  { %2465 = vrot.lane.b32.xlu2 %v2457_v49, %s2915_s7  ;;  %2492 = vrot.lane.b32.xlu1 %v2483_v4, %s2915_s7 }
 0x3de   :  { %2490 = vrot.lane.b32.xlu0 %v2482_v45, %s2915_s7  ;;  %v2283_v45 = vmul.f32 %v2280_v36, %v4201_v6 }
 0x3df   :  { %v2209_v58 = vpop.permute.xlu2 %2208  ;;  %v2184_v55 = vpop.permute.xlu1 %2183 }
 0x3e0   :  { %v2192_v46 = vadd.f32 %v2184_v55, %v2165_v54  ;;  %v2182_v9 = vpop.permute.xlu0 %2181  ;;  %v2293_v55 = vmul.f32 %v2289_v17, %v4225_v15 }
 0x3e1   :  { %v2191_v60 = vadd.f32 %v2182_v9, %v2164_v56  ;;  %v2535_v56 = vmul.f32 %v2533_v32, %v4213_v59 }
 0x3e2   :  { %v2217_v20 = vadd.f32 %v2209_v58, %v2192_v46 }
 0x3e5   :  { %2471 = vrot.lane.b32.xlu2 %v2460_v61, %s2915_s7  ;;  %2517 = vrot.lane.b32.xlu1 %v2509_v63, %s2916_s8 }
 0x3e6   :  { %2496 = vrot.lane.b32.xlu0 %v2485_v8, %s2915_s7 }
 0x3e7   :  { %v2234_v13 = vpop.permute.xlu2 %2233  ;;  %v2207_v30 = vpop.permute.xlu1 %2206 }
 0x3e8   :  { %v2216_v28 = vadd.f32 %v2207_v30, %v2191_v60  ;;  %v2205_v33 = vpop.permute.xlu0 %2204 }
 0x3e9   :  { %v2215_v23 = vadd.f32 %v2205_v33, %v2190_v37  ;;  %v2560_v37 = vstv %s2805_s4 }
 0x3ea   :  { %v2243_v41 = vadd.f32 %v2234_v13, %v2216_v28  ;;  %v2562_v42 = vmul.f32 %v2560_v37, %v4203_v47  ;;  %v2561_v14 = vmul.f32 %v2560_v37, %v4211_v12  ;;  %v2537_v12 = vmul.f32 %v2533_v32, %v4225_v15 }
 0x3ed   :  { %2494 = vrot.lane.b32.xlu2 %v2484_v53, %s2915_s7  ;;  %2523 = vrot.lane.b32.xlu1 %v2512_v1, %s2916_s8  ;;  %s2806_s7 = sld [smem:[#allocation7 + $0x61]] }
 0x3ee   :  { %2521 = vrot.lane.b32.xlu0 %v2511_v11, %s2916_s8 }
 0x3ef   :  { %v2257_v38 = vpop.permute.xlu2 %2256  ;;  %v2232_v18 = vpop.permute.xlu1 %2231 }
 0x3f0   :  { %v2242_v44 = vadd.f32 %v2232_v18, %v2215_v23  ;;  %v2230_v19 = vpop.permute.xlu0 %2229 }
 0x3f1   :  { %v2241_v5 = vadd.f32 %v2230_v19, %v2214_v3 }
 0x3f2   :  { %v2267_v50 = vadd.f32 %v2257_v38, %v2242_v44 }
 0x3f3   :  { %v2585_v4 = vstv %s2806_s7 }
 0x3f4   :  { %v2286_v51 = vadd.f32 %v2282_v7, %v2267_v50  ;;  %v2586_v9 = vmul.f32 %v2585_v4, %v4215_v40  ;;  %v2563_v40 = vmul.f32 %v2560_v37, %v4201_v6  ;;  %v2587_v19 = vmul.f32 %v2585_v4, %v4213_v59 }
 0x3f5   :  { %2519 = vrot.lane.b32.xlu2 %v2510_v34, %s2916_s8  ;;  %2546 = vrot.lane.b32.xlu1 %v2536_v25, %s2916_s8 }
 0x3f6   :  { %2544 = vrot.lane.b32.xlu0 %v2535_v56, %s2916_s8  ;;  %v2295_v62 = vadd.f32 %v2291_v27, %v2286_v51 }
 0x3f7   :  { %v2310_v39 = vpop.permute.xlu2 %2309  ;;  %v2255_v48 = vpop.permute.xlu1 %2254 }
 0x3f8   :  { %v2266_v31 = vadd.f32 %v2255_v48, %v2241_v5  ;;  %v2236_v2 = vpop.permute.xlu0 %2235 }
 0x3f9   :  { %v2244_v22 = vadd.f32 %v2236_v2, %v2217_v20  ;;  %v2564_v20 = vmul.f32 %v2560_v37, %v4223_v16  ;;  %v2588_v16 = vmul.f32 %v2585_v4, %v4233_v10 }
 0x3fa   :  { %v2285_v35 = vadd.f32 %v2281_v24, %v2266_v31 }
 0x3fc   :  { %v2294_v26 = vadd.f32 %v2290_v52, %v2285_v35 }
 0x3fd   :  { %2542 = vrot.lane.b32.xlu2 %v2534_v21, %s2916_s8  ;;  %2571 = vrot.lane.b32.xlu1 %v2562_v42, %s2917_s10 }
 0x3fe   :  { %v2321_v57 = vadd.f32 %v2310_v39, %v2294_v26  ;;  %2569 = vrot.lane.b32.xlu0 %v2561_v14, %s2917_s10 }
 0x3ff   :  { %v2316_v0 = vpop.permute.xlu2 %2315  ;;  %v2261_v54 = vpop.permute.xlu1 %2260 }
 0x400   :  { %v2269_v3 = vadd.f32 %v2261_v54, %v2244_v22  ;;  %v2259_v49 = vpop.permute.xlu0 %2258 }
 0x401   :  { %v2268_v47 = vadd.f32 %v2259_v49, %v2243_v41  ;;  %v2589_v41 = vmul.f32 %v2585_v4, %v4225_v15 }
 0x402   :  { %v2288_v58 = vadd.f32 %v2284_v43, %v2269_v3 }
 0x403   :  { %v2287_v46 = vadd.f32 %v2283_v45, %v2268_v47 }
 0x404   :  { %v2297_v60 = vadd.f32 %v2293_v55, %v2288_v58 }
 0x405   :  { %2548 = vrot.lane.b32.xlu2 %v2537_v12, %s2916_s8  ;;  %2594 = vrot.lane.b32.xlu1 %v2586_v9, %s2917_s10  ;;  %v2296_v61 = vadd.f32 %v2292_v29, %v2287_v46  ;;  %s2918_s8 = smov [#allocation12]  }
 0x406   :  { %v2324_v63 = vadd.f32 %v2316_v0, %v2297_v60  ;;  %2575 = vrot.lane.b32.xlu0 %v2564_v20, %s2917_s10 }
 0x407   :  { %v2339_v8 = vpop.permute.xlu2 %2338  ;;  %v2314_v13 = vpop.permute.xlu1 %2313 }
 0x408   :  { %v2323_v30 = vadd.f32 %v2314_v13, %v2296_v61  ;;  %v2312_v28 = vpop.permute.xlu0 %2311 }
 0x409   :  { %v2322_v33 = vadd.f32 %v2312_v28, %v2295_v62 }
 0x40a   :  { %v2348_v23 = vadd.f32 %v2339_v8, %v2323_v30 }
 0x40d   :  { %2573 = vrot.lane.b32.xlu2 %v2563_v40, %s2917_s10  ;;  %2600 = vrot.lane.b32.xlu1 %v2589_v41, %s2917_s10 }
 0x40e   :  { %2598 = vrot.lane.b32.xlu0 %v2588_v16, %s2917_s10 }
 0x40f   :  { %v2364_v53 = vpop.permute.xlu2 %2363  ;;  %v2337_v1 = vpop.permute.xlu1 %2336 }
 0x410   :  { %v2347_v11 = vadd.f32 %v2337_v1, %v2322_v33  ;;  %v2335_v38 = vpop.permute.xlu0 %2334 }
 0x411   :  { %v2346_v18 = vadd.f32 %v2335_v38, %v2321_v57 }
 0x412   :  { %v2374_v44 = vadd.f32 %v2364_v53, %v2347_v11 }
 0x415   :  { %2596 = vrot.lane.b32.xlu2 %v2587_v19, %s2917_s10  ;;  %s2694_s10 = sshll.u32 %s2918_s8, 4  ;;  %s2695_s10 = int_to_ptr.vmem [resolvable:$true] %s2694_s10 }
 0x417   :  { %v2387_v6 = vpop.permute.xlu2 %2386  ;;  %v2362_v15 = vpop.permute.xlu1 %2361 }
 0x418   :  { %v2373_v36 = vadd.f32 %v2362_v15, %v2346_v18  ;;  %v2341_v5 = vpop.permute.xlu0 %2340 }
 0x419   :  { %v2349_v7 = vadd.f32 %v2341_v5, %v2324_v63 }
 0x41a   :  { %v2398_v10 = vadd.f32 %v2387_v6, %v2373_v36 }
 0x41f   :  { %v2393_v50 = vpop.permute.xlu2 %2392  ;;  %v2368_v32 = vpop.permute.xlu1 %2367 }
 0x420   :  { %v2376_v34 = vadd.f32 %v2368_v32, %v2349_v7  ;;  %v2366_v25 = vpop.permute.xlu0 %2365 }
 0x421   :  { %v2375_v17 = vadd.f32 %v2366_v25, %v2348_v23 }
 0x422   :  { %v2401_v51 = vadd.f32 %v2393_v50, %v2376_v34 }
 0x427   :  { %v2418_v56 = vpop.permute.xlu2 %2417  ;;  %v2391_v27 = vpop.permute.xlu1 %2390 }
 0x428   :  { %v2400_v39 = vadd.f32 %v2391_v27, %v2375_v17  ;;  %v2389_v62 = vpop.permute.xlu0 %2388 }
 0x429   :  { %v2399_v4 = vadd.f32 %v2389_v62, %v2374_v44 }
 0x42a   :  { %v2427_v48 = vadd.f32 %v2418_v56, %v2400_v39 }
 0x42f   :  { %v2441_v59 = vpop.permute.xlu2 %2440  ;;  %v2416_v24 = vpop.permute.xlu1 %2415 }
 0x430   :  { %v2414_v31 = vpop.permute.xlu0 %2413  ;;  %v2426_v58 = vadd.f32 %v2416_v24, %v2399_v4 }
 0x431   :  { %v2425_v46 = vadd.f32 %v2414_v31, %v2398_v10 }
 0x432   :  { %v2451_v12 = vadd.f32 %v2441_v59, %v2426_v58 }
 0x437   :  { %v2466_v2 = vpop.permute.xlu2 %2465  ;;  %v2439_v22 = vpop.permute.xlu1 %2438 }
 0x438   :  { %v2420_v37 = vpop.permute.xlu0 %2419  ;;  %v2450_v20 = vadd.f32 %v2439_v22, %v2425_v46 }
 0x439   :  { %v2428_v30 = vadd.f32 %v2420_v37, %v2401_v51 }
 0x43a   :  { %v2477_v8 = vadd.f32 %v2466_v2, %v2450_v20 }
 0x43f   :  { %v2472_v35 = vpop.permute.xlu2 %2471  ;;  %v2445_v52 = vpop.permute.xlu1 %2444 }
 0x440   :  { %v2443_v21 = vpop.permute.xlu0 %2442  ;;  %v2453_v40 = vadd.f32 %v2445_v52, %v2428_v30 }
 0x441   :  { %v2452_v1 = vadd.f32 %v2443_v21, %v2427_v48 }
 0x442   :  { %v2480_v44 = vadd.f32 %v2472_v35, %v2453_v40 }
 0x447   :  { %v2495_v42 = vpop.permute.xlu2 %2494  ;;  %v2470_v26 = vpop.permute.xlu1 %2469 }
 0x448   :  { %v2468_v14 = vpop.permute.xlu0 %2467  ;;  %v2479_v18 = vadd.f32 %v2470_v26, %v2452_v1 }
 0x449   :  { %v2478_v9 = vadd.f32 %v2468_v14, %v2451_v12 }
 0x44a   :  { %v2504_v5 = vadd.f32 %v2495_v42, %v2479_v18 }
 0x44f   :  { %v2520_v57 = vpop.permute.xlu2 %2519  ;;  %v2493_v0 = vpop.permute.xlu1 %2492 }
 0x450   :  { %v2491_v54 = vpop.permute.xlu0 %2490  ;;  %v2503_v61 = vadd.f32 %v2493_v0, %v2478_v9 }
 0x451   :  { %v2502_v28 = vadd.f32 %v2491_v54, %v2477_v8 }
 0x452   :  { %v2530_v13 = vadd.f32 %v2520_v57, %v2503_v61 }
 0x457   :  { %v2543_v43 = vpop.permute.xlu2 %2542  ;;  %v2518_v3 = vpop.permute.xlu1 %2517 }
 0x458   :  { %v2497_v49 = vpop.permute.xlu0 %2496  ;;  %v2529_v41 = vadd.f32 %v2518_v3, %v2502_v28 }
 0x459   :  { %v2505_v15 = vadd.f32 %v2497_v49, %v2480_v44 }
 0x45a   :  { %v2554_v19 = vadd.f32 %v2543_v43, %v2529_v41 }
 0x45f   :  { %v2549_v45 = vpop.permute.xlu2 %2548  ;;  %v2524_v47 = vpop.permute.xlu1 %2523 }
 0x460   :  { %v2522_v55 = vpop.permute.xlu0 %2521  ;;  %v2532_v10 = vadd.f32 %v2524_v47, %v2505_v15 }
 0x461   :  { %v2531_v34 = vadd.f32 %v2522_v55, %v2504_v5 }
 0x462   :  { %v2557_v56 = vadd.f32 %v2549_v45, %v2532_v10 }
 0x467   :  { %v2547_v29 = vpop.permute.xlu1 %2546  ;;  %v2574_v60 = vpop.permute.xlu2 %2573 }
 0x468   :  { %v2545_v63 = vpop.permute.xlu0 %2544  ;;  %v2556_v17 = vadd.f32 %v2547_v29, %v2531_v34 }
 0x469   :  { %v2555_v33 = vadd.f32 %v2545_v63, %v2530_v13 }
 0x46a   :  { %v2583_v62 = vadd.f32 %v2574_v60, %v2556_v17 }
 0x46f   :  { %v2572_v23 = vpop.permute.xlu1 %2571  ;;  %v2597_v11 = vpop.permute.xlu2 %2596 }
 0x470   :  { %v2582_v16 = vadd.f32 %v2572_v23, %v2555_v33  ;;  %v2570_v53 = vpop.permute.xlu0 %2569 }
 0x471   :  { %v2581_v36 = vadd.f32 %v2570_v53, %v2554_v19 }
 0x472   :  { %v2607_v38 = vadd.f32 %v2597_v11, %v2582_v16 }
 0x474   :  { %v2808_v6 = vmul.f32 -1.442695, %v2607_v38 }
 0x476   :  { %2824 = vpow2.f32 %v2808_v6 }
 0x477   :  { %v2595_v7 = vpop.permute.xlu1 %2594 }
 0x478   :  { %v2606_v50 = vadd.f32 %v2595_v7, %v2581_v36  ;;  %v2576_v32 = vpop.permute.xlu0 %2575 }
 0x479   :  { %v2584_v39 = vadd.f32 %v2576_v32, %v2557_v56 }
 0x47a   :  { %v2807_v25 = vmul.f32 -1.442695, %v2606_v50 }
 0x47c   :  { %v2825_v51 = vpop.eup %2824  ;;  %2826 = vpow2.f32 %v2807_v25 }
 0x47d   :  { %v2623_v27 = vadd.f32 1.0, %v2825_v51 }
 0x47f   :  { %2828 = vrcp.f32 %v2623_v27  ;;  %v2601_v48 = vpop.permute.xlu1 %2600  ;;  %v2652_v26 = vand.u32 2147483648, %v2623_v27  ;;  %v2650_v0 = vand.u32 2147483647, %v2623_v27  ;;  %vm2646_vm5 = vweird.f32 %v2623_v27 }
 0x480   :  { %v2609_v59 = vadd.f32 %v2601_v48, %v2584_v39  ;;  %v2599_v24 = vpop.permute.xlu0 %2598 }
 0x481   :  { %v2608_v31 = vadd.f32 %v2599_v24, %v2583_v62  ;;  %v2653_v47 = vor.u32 1.1754944e-38, %v2652_v26  ;;  %vm2651_vm7 = vcmp.eq.f32.partialorder %v2650_v0, 8.507059e+37 }
 0x482   :  { %v2827_v2 = vpop.eup %2826  ;;  %v2810_v22 = vmul.f32 -1.442695, %v2609_v59 }
 0x483   :  { %v2622_v37 = vadd.f32 1.0, %v2827_v2  ;;  %v2809_v35 = vmul.f32 -1.442695, %v2608_v31 }
 0x484   :  { %2830 = vpow2.f32 %v2810_v22 }
 0x485   :  { %v2829_v52 = vpop.eup %2828  ;;  %2832 = vrcp.f32 %v2622_v37  ;;  %v2637_v12 = vand.u32 2147483648, %v2622_v37  ;;  %v2635_v29 = vand.u32 2147483647, %v2622_v37  ;;  %vm2631_vm9 = vweird.f32 %v2622_v37 }
 0x486   :  { %v2642_v21 = vmul.f32 %v2829_v52, %v2623_v27  ;;  %2834 = vpow2.f32 %v2809_v35  ;;  %vm2647_vm4 = vweird.f32 %v2829_v52 }
 0x487   :  { %vm2648_vm6 = vmor %vm2646_vm5, %vm2647_vm4  ;;  %v2638_v61 = vor.u32 1.1754944e-38, %v2637_v12  ;;  %vm2636_vm11 = vcmp.eq.f32.partialorder %v2635_v29, 8.507059e+37 }
 0x488   :  { %v2643_v42 = vsub.f32 1.0, %v2642_v21 }
 0x48a   :  { %v2831_v14 = vpop.eup %2830  ;;  %v2644_v57 = vmul.f32 %v2829_v52, %v2643_v42 }
 0x48b   :  { %v2833_v54 = vpop.eup %2832  ;;  %v2625_v43 = vadd.f32 1.0, %v2831_v14 }
 0x48c   :  { %v2835_v3 = vpop.eup %2834  ;;  %v2627_v49 = vmul.f32 %v2833_v54, %v2622_v37  ;;  %v2645_v4 = vadd.f32 %v2829_v52, %v2644_v57  ;;  %vm2632_vm8 = vweird.f32 %v2833_v54 }
 0x48d   :  { %2836 = vrcp.f32 %v2625_v43  ;;  %v2624_v45 = vadd.f32 1.0, %v2835_v3  ;;  %vm2633_vm10 = vmor %vm2631_vm9, %vm2632_vm8  ;;  %v2682_v23 = vand.u32 2147483648, %v2625_v43  ;;  %v2680_v16 = vand.u32 2147483647, %v2625_v43 }
 0x48e   :  { %v2628_v58 = vsub.f32 1.0, %v2627_v49  ;;  %v2649_v55 = vsel %vm2648_vm6, %v2829_v52, %v2645_v4  ;;  %vm2676_vm13 = vweird.f32 %v2625_v43 }
 0x48f   :  { %2838 = vrcp.f32 %v2624_v45  ;;  %v2654_v46 = vsel %vm2651_vm7, %v2653_v47, %v2649_v55  ;;  %v2667_v53 = vand.u32 2147483648, %v2624_v45  ;;  %v2665_v11 = vand.u32 2147483647, %v2624_v45 }
 0x490   :  { %v2629_v9 = vmul.f32 %v2833_v54, %v2628_v58  ;;  %2687 = vst.msk [vmem:[#allocation12 + $0x8] sm:$0xff] %vm61_vm0, %v2654_v46  ;;  %v2683_v18 = vor.u32 1.1754944e-38, %v2682_v23  ;;  %vm2661_vm1 = vweird.f32 %v2624_v45  ;;  %vm2681_vm2 = vcmp.eq.f32.partialorder %v2680_v16, 8.507059e+37 }
 0x491   :  { %v2668_v6 = vor.u32 1.1754944e-38, %v2667_v53  ;;  %vm2666_vm4 = vcmp.eq.f32.partialorder %v2665_v11, 8.507059e+37 }
 0x492   :  { %v2630_v60 = vadd.f32 %v2833_v54, %v2629_v9 }
 0x493   :  { %v2837_v20 = vpop.eup %2836 }
 0x494   :  { %v2672_v63 = vmul.f32 %v2837_v20, %v2625_v43  ;;  %v2634_v8 = vsel %vm2633_vm10, %v2833_v54, %v2630_v60  ;;  %vm2677_vm12 = vweird.f32 %v2837_v20 }
 0x495   :  { %v2839_v13 = vpop.eup %2838  ;;  %v2639_v30 = vsel %vm2636_vm11, %v2638_v61, %v2634_v8  ;;  %vm2678_vm15 = vmor %vm2676_vm13, %vm2677_vm12 }
 0x496   :  { %v2673_v28 = vsub.f32 1.0, %v2672_v63  ;;  %v2657_v33 = vmul.f32 %v2839_v13, %v2624_v45  ;;  %2686 = vst.msk [vmem:[#allocation12] sm:$0xff] %vm61_vm0, %v2639_v30  ;;  %vm2662_vm14 = vweird.f32 %v2839_v13 }
 0x497   :  { %vm2663_vm3 = vmor %vm2661_vm1, %vm2662_vm14 }
 0x498   :  { %v2658_v40 = vsub.f32 1.0, %v2657_v33  ;;  %v2674_v41 = vmul.f32 %v2837_v20, %v2673_v28 }
 0x49a   :  { %v2659_v1 = vmul.f32 %v2839_v13, %v2658_v40  ;;  %v2675_v38 = vadd.f32 %v2837_v20, %v2674_v41 }
 0x49c   :  { %v2660_v44 = vadd.f32 %v2839_v13, %v2659_v1  ;;  %v2679_v19 = vsel %vm2678_vm15, %v2837_v20, %v2675_v38 }
 0x49d   :  { %v2684_v15 = vsel %vm2681_vm2, %v2683_v18, %v2679_v19 }
 0x49e   :  { %v2664_v36 = vsel %vm2663_vm3, %v2839_v13, %v2660_v44  ;;  %2689 = vst.msk [vmem:[#allocation12 + $0x18] sm:$0xff] %vm61_vm0, %v2684_v15 }
 0x49f   :  { %v2669_v5 = vsel %vm2666_vm4, %v2668_v6, %v2664_v36 }
 0x4a0   :  { %2688 = vst.msk [vmem:[#allocation12 + $0x10] sm:$0xff] %vm61_vm0, %v2669_v5 }
 0x4a1   :  { %2702 = dma.vmem_to_hbm [thread:$0]  %s2695_s10, 512, %s2697_s9, [#allocation9], %s2908_s21, %s2908_s21, %s2909_s22  }
 0x4a2   :  { %2904 = dma.done.wait [#allocation9], 512  }
 0x4a3   :  { %2905 = vsyncadd [#allocation9], 4294966784 }
 0x4a4   :  { %2707 = vsyncpa [#allocation8], 1 }
 0x4a5   :  { %2708 = vsyncpa [#allocation9], 1 }
 0x4a6   :  { %2709 = vsyncpa [#allocation10], 1 }

</bundles_post_ra>
